<compile_context>
chip_gen: v6e
topology: v6e:2x2x1
jax: 0.10.0
libtpu: 0.0.40
codegen_flags: <defaults>
</compile_context>

<pallas_src>
import functools

import jax
import jax.numpy as jnp
from jax.experimental import pallas as pl
from jax.experimental.pallas import tpu as pltpu

LANE = 128


def _round_up(n, m):
    return ((n + m - 1) // m) * m


# ----------------------------------------------------------------------------
# Fused Pallas kernel: one batch element, full layer stack, VMEM-resident act.
# ----------------------------------------------------------------------------
def _audiodec_fused_kernel(x_ref, w1_ref, b1_ref, whw_ref, bhw_ref,
                           wc_ref, bc_ref, w3_ref, b3_ref,
                           y_ref, logit_ref, *, T, Cp, dilations, n_relu):
    """
    x_ref    : (1, T, Cin_p)            input activation (channels-last, lane-padded)
    w1_ref   : (Cin_p, Cp)    bf16      C_1 (k=1, linear)
    b1_ref   : (1, Cp)        f32
    whw_ref  : (6, 3*Cp, 2*Cp) bf16     HighwayConv im2col weights (k=3)
    bhw_ref  : (6, 1, 2*Cp)   f32
    wc_ref   : (3, Cp, Cp)    bf16      Cs_2 (k=1, ReLU)
    bc_ref   : (3, 1, Cp)     f32
    w3_ref   : (Cp, Mp)       bf16      C_3 (k=1, linear)
    b3_ref   : (1, Mp)        f32
    y_ref    : (1, T, Mp)     f32       sigmoid(logits)
    logit_ref: (1, T, Mp)     f32       logits
    """

    def shift_down(h, s):
        # causal shift: out[t] = h[t - s], zeros for t < s  (static s)
        if s == 0:
            return h
        if s >= T:
            return jnp.zeros_like(h)
        pad = jnp.zeros((s, h.shape[1]), h.dtype)
        return jnp.concatenate([pad, h[:T - s, :]], axis=0)

    # C_1: k=1 conv (linear), 2d -> d (lane-padded)
    x = x_ref[0].astype(jnp.bfloat16)                                   # (T, Cin_p)
    h = jnp.dot(x, w1_ref[...], preferred_element_type=jnp.float32) + b1_ref[...]

    # Highway convs (k=3, causal, dilations [1, 3, 9, 27, 1, 1]) -- im2col matmul
    for li, dil in enumerate(dilations):
        xi = jnp.concatenate(
            [shift_down(h, 2 * dil), shift_down(h, dil), h], axis=1)    # (T, 3*Cp)
        acc = jnp.dot(xi.astype(jnp.bfloat16), whw_ref[li],
                      preferred_element_type=jnp.float32) + bhw_ref[li]  # (T, 2*Cp)
        h1 = acc[:, :Cp]
        h2 = acc[:, Cp:]
        gate = jax.nn.sigmoid(h1)                                        # EUP
        h = h + gate * (h2 - h)          # == gate*h2 + (1-gate)*h, one fewer VPU op

    # Cs_2: three k=1 convs with ReLU
    for li in range(n_relu):
        acc = jnp.dot(h.astype(jnp.bfloat16), wc_ref[li],
                      preferred_element_type=jnp.float32) + bc_ref[li]
        h = jnp.maximum(acc, 0.0)

    # C_3: k=1 conv (linear) d -> n_mels, then (sigmoid, logits) outputs
    logits = jnp.dot(h.astype(jnp.bfloat16), w3_ref[...],
                     preferred_element_type=jnp.float32) + b3_ref[...]
    logit_ref[0] = logits.astype(logit_ref.dtype)
    y_ref[0] = jax.nn.sigmoid(logits).astype(y_ref.dtype)


# ----------------------------------------------------------------------------
# Parameter construction (deterministic synthetic weights, PyTorch-like layout)
# ----------------------------------------------------------------------------
def init_audiodec_params(key, n_mels, d):
    keys = iter(jax.random.split(key, 64))

    def conv_w(k, cin, cout):
        return 0.1 * jax.random.normal(next(keys), (k, cin, cout), jnp.float32)

    def conv_b(cout):
        return 0.01 * jax.random.normal(next(keys), (cout,), jnp.float32)

    params = {
        "C1": (conv_w(1, 2 * d, d), conv_b(d)),
        "HCs": [],
        "Cs2": [(conv_w(1, d, d), conv_b(d)) for _ in range(3)],
        "C3": (conv_w(1, d, n_mels), conv_b(n_mels)),
    }
    dils = [3 ** i for i in range(4)] + [1, 1]          # HCs_1 + HCs_2
    for dil in dils:
        params["HCs"].append((conv_w(3, d, 2 * d), conv_b(2 * d), dil))
    return params


# ----------------------------------------------------------------------------
# Packing: zero-pad channels to 128 lanes, im2col-flatten, cast weights to bf16
# ----------------------------------------------------------------------------
def _pack_conv_w(w, cin_p, cout_p):
    k, cin, cout = w.shape
    wp = jnp.zeros((k, cin_p, cout_p), jnp.float32)
    wp = wp.at[:, :cin, :cout].set(w)
    return wp.reshape(k * cin_p, cout_p).astype(jnp.bfloat16)


def _pack_bias(b, c_p):
    return jnp.zeros((1, c_p), jnp.float32).at[0, :b.shape[0]].set(b)


def _pack_highway_w(w, c_p):
    k, c, _ = w.shape
    wp = jnp.zeros((k, c_p, 2 * c_p), jnp.float32)
    wp = wp.at[:, :c, :c].set(w[:, :, :c])              # H1 -> cols [0:c]
    wp = wp.at[:, :c, c_p:c_p + c].set(w[:, :, c:])     # H2 -> cols [c_p:c_p+c]
    return wp.reshape(k * c_p, 2 * c_p).astype(jnp.bfloat16)


def _pack_highway_b(b, c_p):
    c = b.shape[0] // 2
    out = jnp.zeros((1, 2 * c_p), jnp.float32)
    return out.at[0, :c].set(b[:c]).at[0, c_p:c_p + c].set(b[c:])


def pack_audiodec_params(params, n_mels, d):
    cin_p = _round_up(2 * d, LANE)
    c_p = _round_up(d, LANE)
    m_p = _round_up(n_mels, LANE)
    w1, b1 = params["C1"]
    w3, b3 = params["C3"]
    return {
        "w1": _pack_conv_w(w1, cin_p, c_p),
        "b1": _pack_bias(b1, c_p),
        "whw": jnp.stack([_pack_highway_w(w, c_p) for (w, _, _) in params["HCs"]]),
        "bhw": jnp.stack([_pack_highway_b(b, c_p) for (_, b, _) in params["HCs"]]),
        "wc": jnp.stack([_pack_conv_w(w, c_p, c_p) for (w, _) in params["Cs2"]]),
        "bc": jnp.stack([_pack_bias(b, c_p) for (_, b) in params["Cs2"]]),
        "w3": _pack_conv_w(w3, c_p, m_p),
        "b3": _pack_bias(b3, m_p),
        "dilations": tuple(dil for (_, _, dil) in params["HCs"]),
        "cin_p": cin_p, "c_p": c_p, "m_p": m_p,
    }


# ----------------------------------------------------------------------------
# Full AudioDec forward
# ----------------------------------------------------------------------------
def audiodec_forward(packed, x, n_mels, num_hidden_units):
    """x: (B, 2*d, T) f32 -> (mel = sigmoid(logits), logits), both (B, n_mels, T)."""
    B, cin, T = x.shape
    assert cin == 2 * num_hidden_units
    cin_p, c_p, m_p = packed["cin_p"], packed["c_p"], packed["m_p"]

    # channels-last, lane-padded input (padded channels are zero -> stay inert)
    xt = jnp.transpose(x, (0, 2, 1))                    # (B, T, 2d)
    if cin_p != cin:
        xt = jnp.pad(xt, ((0, 0), (0, 0), (0, cin_p - cin)))

    kern = functools.partial(
        _audiodec_fused_kernel, T=T, Cp=c_p,
        dilations=packed["dilations"], n_relu=packed["wc"].shape[0])

    y_p, logits_p = pl.pallas_call(
        kern,
        out_shape=(jax.ShapeDtypeStruct((B, T, m_p), jnp.float32),
                   jax.ShapeDtypeStruct((B, T, m_p), jnp.float32)),
        grid=(B,),
        in_specs=[
            pl.BlockSpec((1, T, cin_p), lambda i: (i, 0, 0)),
            pl.BlockSpec(packed["w1"].shape, lambda i: (0, 0)),
            pl.BlockSpec(packed["b1"].shape, lambda i: (0, 0)),
            pl.BlockSpec(packed["whw"].shape, lambda i: (0, 0, 0)),
            pl.BlockSpec(packed["bhw"].shape, lambda i: (0, 0, 0)),
            pl.BlockSpec(packed["wc"].shape, lambda i: (0, 0, 0)),
            pl.BlockSpec(packed["bc"].shape, lambda i: (0, 0, 0)),
            pl.BlockSpec(packed["w3"].shape, lambda i: (0, 0)),
            pl.BlockSpec(packed["b3"].shape, lambda i: (0, 0)),
        ],
        out_specs=(pl.BlockSpec((1, T, m_p), lambda i: (i, 0, 0)),
                   pl.BlockSpec((1, T, m_p), lambda i: (i, 0, 0))),
        compiler_params=pltpu.CompilerParams(
            dimension_semantics=("parallel",)),
    )(xt, packed["w1"], packed["b1"], packed["whw"], packed["bhw"],
      packed["wc"], packed["bc"], packed["w3"], packed["b3"])

    # restore PyTorch NCL layout and strip lane padding
    y = jnp.transpose(y_p[..., :n_mels], (0, 2, 1))
    logits = jnp.transpose(logits_p[..., :n_mels], (0, 2, 1))
    return y, logits


# ----------------------------------------------------------------------------
if __name__ == "__main__":
    n_mels, num_hidden = 80, 64
    B, T = 2, 32

    root = jax.random.PRNGKey(0)
    x_key, p_key = jax.random.split(root)
    x = jax.random.normal(x_key, (B, 2 * num_hidden, T), jnp.float32)

    params = init_audiodec_params(p_key, n_mels, num_hidden)
    packed = pack_audiodec_params(params, n_mels, num_hidden)

    mel, logits = audiodec_forward(packed, x, n_mels, num_hidden)
    jax.block_until_ready((mel, logits))

    assert mel.shape == (B, n_mels, T), mel.shape
    assert logits.shape == (B, n_mels, T), logits.shape
    assert bool(jnp.all(jnp.isfinite(mel))) and bool(jnp.all(jnp.isfinite(logits)))
    assert bool(jnp.all((mel >= 0.0) & (mel <= 1.0)))
    print("KERNEL_OK")
</pallas_src>

<mosaic_0001>
module attributes {stable_mosaic.version = 11 : i64} {
  func.func @_audiodec_fused_kernel(%arg0: i32, %arg1: memref<1x32x128xf32, #tpu.memory_space<vmem>>, %arg2: memref<128x128xbf16, #tpu.memory_space<vmem>>, %arg3: memref<1x128xf32, #tpu.memory_space<vmem>>, %arg4: memref<6x384x256xbf16, #tpu.memory_space<vmem>>, %arg5: memref<6x1x256xf32, #tpu.memory_space<vmem>>, %arg6: memref<3x128x128xbf16, #tpu.memory_space<vmem>>, %arg7: memref<3x1x128xf32, #tpu.memory_space<vmem>>, %arg8: memref<128x128xbf16, #tpu.memory_space<vmem>>, %arg9: memref<1x128xf32, #tpu.memory_space<vmem>>, %arg10: memref<1x32x128xf32, #tpu.memory_space<vmem>>, %arg11: memref<1x32x128xf32, #tpu.memory_space<vmem>>) attributes {dimension_semantics = [#tpu.dimension_semantics<parallel>], iteration_bounds = array<i64: 2>, scalar_prefetch = 0 : i64, scratch_operands = 0 : i64, tpu.core_type = #tpu.core_type<tc>, window_params = [{transform_indices = @transform_0, window_bounds = array<i64: 1, 32, 128>}, {pipeline_mode = #tpu.pipeline_mode<synchronous>, transform_indices = @transform_1, window_bounds = array<i64: 128, 128>}, {pipeline_mode = #tpu.pipeline_mode<synchronous>, transform_indices = @transform_2, window_bounds = array<i64: 1, 128>}, {pipeline_mode = #tpu.pipeline_mode<synchronous>, transform_indices = @transform_3, window_bounds = array<i64: 6, 384, 256>}, {pipeline_mode = #tpu.pipeline_mode<synchronous>, transform_indices = @transform_4, window_bounds = array<i64: 6, 1, 256>}, {pipeline_mode = #tpu.pipeline_mode<synchronous>, transform_indices = @transform_5, window_bounds = array<i64: 3, 128, 128>}, {pipeline_mode = #tpu.pipeline_mode<synchronous>, transform_indices = @transform_6, window_bounds = array<i64: 3, 1, 128>}, {pipeline_mode = #tpu.pipeline_mode<synchronous>, transform_indices = @transform_7, window_bounds = array<i64: 128, 128>}, {pipeline_mode = #tpu.pipeline_mode<synchronous>, transform_indices = @transform_8, window_bounds = array<i64: 1, 128>}, {transform_indices = @transform_9, window_bounds = array<i64: 1, 32, 128>}, {transform_indices = @transform_10, window_bounds = array<i64: 1, 32, 128>}]} {
    %c0 = arith.constant 0 : index
    %c0_0 = arith.constant 0 : index
    %c0_1 = arith.constant 0 : index
    %0 = vector.load %arg1[%c0, %c0_0, %c0_1] : memref<1x32x128xf32, #tpu.memory_space<vmem>>, vector<1x32x128xf32>
    %1 = vector.shape_cast %0 : vector<1x32x128xf32> to vector<32x128xf32>
    %2 = arith.truncf %1 : vector<32x128xf32> to vector<32x128xbf16>
    %c0_2 = arith.constant 0 : index
    %c0_3 = arith.constant 0 : index
    %3 = vector.load %arg2[%c0_2, %c0_3] : memref<128x128xbf16, #tpu.memory_space<vmem>>, vector<128x128xbf16>
    %cst = arith.constant dense<0.000000e+00> : vector<32x128xf32>
    %4 = tpu.matmul %2, %3, %cst {dimension_numbers = #tpu.dot_dimension_numbers<[1], [0], [0], [1], [0, 0, 1, 1], [], []>} : vector<32x128xbf16>, vector<128x128xbf16>, vector<32x128xf32> -> vector<32x128xf32>
    %c0_4 = arith.constant 0 : index
    %c0_5 = arith.constant 0 : index
    %5 = vector.load %arg3[%c0_4, %c0_5] : memref<1x128xf32, #tpu.memory_space<vmem>>, vector<1x128xf32>
    %6 = vector.broadcast %5 : vector<1x128xf32> to vector<32x128xf32>
    %7 = arith.addf %4, %6 : vector<32x128xf32>
    %cst_6 = arith.constant 0.000000e+00 : f32
    %8 = vector.broadcast %cst_6 : f32 to vector<2x128xf32>
    %9 = vector.extract_strided_slice %7 {offsets = [0, 0], sizes = [30, 128], strides = [1, 1]} : vector<32x128xf32> to vector<30x128xf32>
    %10 = tpu.concatenate %8, %9 in 0 : vector<2x128xf32>, vector<30x128xf32> -> vector<32x128xf32>
    %cst_7 = arith.constant 0.000000e+00 : f32
    %11 = vector.broadcast %cst_7 : f32 to vector<1x128xf32>
    %12 = vector.extract_strided_slice %7 {offsets = [0, 0], sizes = [31, 128], strides = [1, 1]} : vector<32x128xf32> to vector<31x128xf32>
    %13 = tpu.concatenate %11, %12 in 0 : vector<1x128xf32>, vector<31x128xf32> -> vector<32x128xf32>
    %14 = tpu.concatenate %10, %13, %7 in 1 : vector<32x128xf32>, vector<32x128xf32>, vector<32x128xf32> -> vector<32x384xf32>
    %15 = arith.truncf %14 : vector<32x384xf32> to vector<32x384xbf16>
    %c0_8 = arith.constant 0 : index
    %c0_9 = arith.constant 0 : index
    %c0_10 = arith.constant 0 : index
    %16 = vector.load %arg4[%c0_8, %c0_9, %c0_10] : memref<6x384x256xbf16, #tpu.memory_space<vmem>>, vector<1x384x256xbf16>
    %17 = vector.shape_cast %16 : vector<1x384x256xbf16> to vector<384x256xbf16>
    %cst_11 = arith.constant dense<0.000000e+00> : vector<32x256xf32>
    %18 = tpu.matmul %15, %17, %cst_11 {dimension_numbers = #tpu.dot_dimension_numbers<[1], [0], [0], [1], [0, 0, 1, 1], [], []>} : vector<32x384xbf16>, vector<384x256xbf16>, vector<32x256xf32> -> vector<32x256xf32>
    %c0_12 = arith.constant 0 : index
    %c0_13 = arith.constant 0 : index
    %c0_14 = arith.constant 0 : index
    %19 = vector.load %arg5[%c0_12, %c0_13, %c0_14] : memref<6x1x256xf32, #tpu.memory_space<vmem>>, vector<1x1x256xf32>
    %20 = vector.shape_cast %19 : vector<1x1x256xf32> to vector<1x256xf32>
    %21 = vector.broadcast %20 : vector<1x256xf32> to vector<32x256xf32>
    %22 = arith.addf %18, %21 : vector<32x256xf32>
    %23 = vector.extract_strided_slice %22 {offsets = [0, 0], sizes = [32, 128], strides = [1, 1]} : vector<32x256xf32> to vector<32x128xf32>
    %24 = vector.extract_strided_slice %22 {offsets = [0, 128], sizes = [32, 128], strides = [1, 1]} : vector<32x256xf32> to vector<32x128xf32>
    %25 = arith.negf %23 : vector<32x128xf32>
    %26 = math.exp %25 : vector<32x128xf32>
    %cst_15 = arith.constant 1.000000e+00 : f32
    %27 = vector.broadcast %cst_15 : f32 to vector<32x128xf32>
    %28 = arith.addf %27, %26 : vector<32x128xf32>
    %29 = arith.divf %27, %28 : vector<32x128xf32>
    %30 = arith.subf %24, %7 : vector<32x128xf32>
    %31 = arith.mulf %29, %30 : vector<32x128xf32>
    %32 = arith.addf %7, %31 : vector<32x128xf32>
    %cst_16 = arith.constant 0.000000e+00 : f32
    %33 = vector.broadcast %cst_16 : f32 to vector<6x128xf32>
    %34 = vector.extract_strided_slice %32 {offsets = [0, 0], sizes = [26, 128], strides = [1, 1]} : vector<32x128xf32> to vector<26x128xf32>
    %35 = tpu.concatenate %33, %34 in 0 : vector<6x128xf32>, vector<26x128xf32> -> vector<32x128xf32>
    %cst_17 = arith.constant 0.000000e+00 : f32
    %36 = vector.broadcast %cst_17 : f32 to vector<3x128xf32>
    %37 = vector.extract_strided_slice %32 {offsets = [0, 0], sizes = [29, 128], strides = [1, 1]} : vector<32x128xf32> to vector<29x128xf32>
    %38 = tpu.concatenate %36, %37 in 0 : vector<3x128xf32>, vector<29x128xf32> -> vector<32x128xf32>
    %39 = tpu.concatenate %35, %38, %32 in 1 : vector<32x128xf32>, vector<32x128xf32>, vector<32x128xf32> -> vector<32x384xf32>
    %40 = arith.truncf %39 : vector<32x384xf32> to vector<32x384xbf16>
    %c1 = arith.constant 1 : index
    %c0_18 = arith.constant 0 : index
    %c0_19 = arith.constant 0 : index
    %41 = vector.load %arg4[%c1, %c0_18, %c0_19] : memref<6x384x256xbf16, #tpu.memory_space<vmem>>, vector<1x384x256xbf16>
    %42 = vector.shape_cast %41 : vector<1x384x256xbf16> to vector<384x256xbf16>
    %cst_20 = arith.constant dense<0.000000e+00> : vector<32x256xf32>
    %43 = tpu.matmul %40, %42, %cst_20 {dimension_numbers = #tpu.dot_dimension_numbers<[1], [0], [0], [1], [0, 0, 1, 1], [], []>} : vector<32x384xbf16>, vector<384x256xbf16>, vector<32x256xf32> -> vector<32x256xf32>
    %c1_21 = arith.constant 1 : index
    %c0_22 = arith.constant 0 : index
    %c0_23 = arith.constant 0 : index
    %44 = vector.load %arg5[%c1_21, %c0_22, %c0_23] : memref<6x1x256xf32, #tpu.memory_space<vmem>>, vector<1x1x256xf32>
    %45 = vector.shape_cast %44 : vector<1x1x256xf32> to vector<1x256xf32>
    %46 = vector.broadcast %45 : vector<1x256xf32> to vector<32x256xf32>
    %47 = arith.addf %43, %46 : vector<32x256xf32>
    %48 = vector.extract_strided_slice %47 {offsets = [0, 0], sizes = [32, 128], strides = [1, 1]} : vector<32x256xf32> to vector<32x128xf32>
    %49 = vector.extract_strided_slice %47 {offsets = [0, 128], sizes = [32, 128], strides = [1, 1]} : vector<32x256xf32> to vector<32x128xf32>
    %50 = arith.negf %48 : vector<32x128xf32>
    %51 = math.exp %50 : vector<32x128xf32>
    %cst_24 = arith.constant 1.000000e+00 : f32
    %52 = vector.broadcast %cst_24 : f32 to vector<32x128xf32>
    %53 = arith.addf %52, %51 : vector<32x128xf32>
    %54 = arith.divf %52, %53 : vector<32x128xf32>
    %55 = arith.subf %49, %32 : vector<32x128xf32>
    %56 = arith.mulf %54, %55 : vector<32x128xf32>
    %57 = arith.addf %32, %56 : vector<32x128xf32>
    %cst_25 = arith.constant 0.000000e+00 : f32
    %58 = vector.broadcast %cst_25 : f32 to vector<18x128xf32>
    %59 = vector.extract_strided_slice %57 {offsets = [0, 0], sizes = [14, 128], strides = [1, 1]} : vector<32x128xf32> to vector<14x128xf32>
    %60 = tpu.concatenate %58, %59 in 0 : vector<18x128xf32>, vector<14x128xf32> -> vector<32x128xf32>
    %cst_26 = arith.constant 0.000000e+00 : f32
    %61 = vector.broadcast %cst_26 : f32 to vector<9x128xf32>
    %62 = vector.extract_strided_slice %57 {offsets = [0, 0], sizes = [23, 128], strides = [1, 1]} : vector<32x128xf32> to vector<23x128xf32>
    %63 = tpu.concatenate %61, %62 in 0 : vector<9x128xf32>, vector<23x128xf32> -> vector<32x128xf32>
    %64 = tpu.concatenate %60, %63, %57 in 1 : vector<32x128xf32>, vector<32x128xf32>, vector<32x128xf32> -> vector<32x384xf32>
    %65 = arith.truncf %64 : vector<32x384xf32> to vector<32x384xbf16>
    %c2 = arith.constant 2 : index
    %c0_27 = arith.constant 0 : index
    %c0_28 = arith.constant 0 : index
    %66 = vector.load %arg4[%c2, %c0_27, %c0_28] : memref<6x384x256xbf16, #tpu.memory_space<vmem>>, vector<1x384x256xbf16>
    %67 = vector.shape_cast %66 : vector<1x384x256xbf16> to vector<384x256xbf16>
    %cst_29 = arith.constant dense<0.000000e+00> : vector<32x256xf32>
    %68 = tpu.matmul %65, %67, %cst_29 {dimension_numbers = #tpu.dot_dimension_numbers<[1], [0], [0], [1], [0, 0, 1, 1], [], []>} : vector<32x384xbf16>, vector<384x256xbf16>, vector<32x256xf32> -> vector<32x256xf32>
    %c2_30 = arith.constant 2 : index
    %c0_31 = arith.constant 0 : index
    %c0_32 = arith.constant 0 : index
    %69 = vector.load %arg5[%c2_30, %c0_31, %c0_32] : memref<6x1x256xf32, #tpu.memory_space<vmem>>, vector<1x1x256xf32>
    %70 = vector.shape_cast %69 : vector<1x1x256xf32> to vector<1x256xf32>
    %71 = vector.broadcast %70 : vector<1x256xf32> to vector<32x256xf32>
    %72 = arith.addf %68, %71 : vector<32x256xf32>
    %73 = vector.extract_strided_slice %72 {offsets = [0, 0], sizes = [32, 128], strides = [1, 1]} : vector<32x256xf32> to vector<32x128xf32>
    %74 = vector.extract_strided_slice %72 {offsets = [0, 128], sizes = [32, 128], strides = [1, 1]} : vector<32x256xf32> to vector<32x128xf32>
    %75 = arith.negf %73 : vector<32x128xf32>
    %76 = math.exp %75 : vector<32x128xf32>
    %cst_33 = arith.constant 1.000000e+00 : f32
    %77 = vector.broadcast %cst_33 : f32 to vector<32x128xf32>
    %78 = arith.addf %77, %76 : vector<32x128xf32>
    %79 = arith.divf %77, %78 : vector<32x128xf32>
    %80 = arith.subf %74, %57 : vector<32x128xf32>
    %81 = arith.mulf %79, %80 : vector<32x128xf32>
    %82 = arith.addf %57, %81 : vector<32x128xf32>
    %cst_34 = arith.constant 0.000000e+00 : f32
    %83 = vector.broadcast %cst_34 : f32 to vector<32x128xf32>
    %cst_35 = arith.constant 0.000000e+00 : f32
    %84 = vector.broadcast %cst_35 : f32 to vector<27x128xf32>
    %85 = vector.extract_strided_slice %82 {offsets = [0, 0], sizes = [5, 128], strides = [1, 1]} : vector<32x128xf32> to vector<5x128xf32>
    %86 = tpu.concatenate %84, %85 in 0 : vector<27x128xf32>, vector<5x128xf32> -> vector<32x128xf32>
    %87 = tpu.concatenate %83, %86, %82 in 1 : vector<32x128xf32>, vector<32x128xf32>, vector<32x128xf32> -> vector<32x384xf32>
    %88 = arith.truncf %87 : vector<32x384xf32> to vector<32x384xbf16>
    %c3 = arith.constant 3 : index
    %c0_36 = arith.constant 0 : index
    %c0_37 = arith.constant 0 : index
    %89 = vector.load %arg4[%c3, %c0_36, %c0_37] : memref<6x384x256xbf16, #tpu.memory_space<vmem>>, vector<1x384x256xbf16>
    %90 = vector.shape_cast %89 : vector<1x384x256xbf16> to vector<384x256xbf16>
    %cst_38 = arith.constant dense<0.000000e+00> : vector<32x256xf32>
    %91 = tpu.matmul %88, %90, %cst_38 {dimension_numbers = #tpu.dot_dimension_numbers<[1], [0], [0], [1], [0, 0, 1, 1], [], []>} : vector<32x384xbf16>, vector<384x256xbf16>, vector<32x256xf32> -> vector<32x256xf32>
    %c3_39 = arith.constant 3 : index
    %c0_40 = arith.constant 0 : index
    %c0_41 = arith.constant 0 : index
    %92 = vector.load %arg5[%c3_39, %c0_40, %c0_41] : memref<6x1x256xf32, #tpu.memory_space<vmem>>, vector<1x1x256xf32>
    %93 = vector.shape_cast %92 : vector<1x1x256xf32> to vector<1x256xf32>
    %94 = vector.broadcast %93 : vector<1x256xf32> to vector<32x256xf32>
    %95 = arith.addf %91, %94 : vector<32x256xf32>
    %96 = vector.extract_strided_slice %95 {offsets = [0, 0], sizes = [32, 128], strides = [1, 1]} : vector<32x256xf32> to vector<32x128xf32>
    %97 = vector.extract_strided_slice %95 {offsets = [0, 128], sizes = [32, 128], strides = [1, 1]} : vector<32x256xf32> to vector<32x128xf32>
    %98 = arith.negf %96 : vector<32x128xf32>
    %99 = math.exp %98 : vector<32x128xf32>
    %cst_42 = arith.constant 1.000000e+00 : f32
    %100 = vector.broadcast %cst_42 : f32 to vector<32x128xf32>
    %101 = arith.addf %100, %99 : vector<32x128xf32>
    %102 = arith.divf %100, %101 : vector<32x128xf32>
    %103 = arith.subf %97, %82 : vector<32x128xf32>
    %104 = arith.mulf %102, %103 : vector<32x128xf32>
    %105 = arith.addf %82, %104 : vector<32x128xf32>
    %cst_43 = arith.constant 0.000000e+00 : f32
    %106 = vector.broadcast %cst_43 : f32 to vector<2x128xf32>
    %107 = vector.extract_strided_slice %105 {offsets = [0, 0], sizes = [30, 128], strides = [1, 1]} : vector<32x128xf32> to vector<30x128xf32>
    %108 = tpu.concatenate %106, %107 in 0 : vector<2x128xf32>, vector<30x128xf32> -> vector<32x128xf32>
    %cst_44 = arith.constant 0.000000e+00 : f32
    %109 = vector.broadcast %cst_44 : f32 to vector<1x128xf32>
    %110 = vector.extract_strided_slice %105 {offsets = [0, 0], sizes = [31, 128], strides = [1, 1]} : vector<32x128xf32> to vector<31x128xf32>
    %111 = tpu.concatenate %109, %110 in 0 : vector<1x128xf32>, vector<31x128xf32> -> vector<32x128xf32>
    %112 = tpu.concatenate %108, %111, %105 in 1 : vector<32x128xf32>, vector<32x128xf32>, vector<32x128xf32> -> vector<32x384xf32>
    %113 = arith.truncf %112 : vector<32x384xf32> to vector<32x384xbf16>
    %c4 = arith.constant 4 : index
    %c0_45 = arith.constant 0 : index
    %c0_46 = arith.constant 0 : index
    %114 = vector.load %arg4[%c4, %c0_45, %c0_46] : memref<6x384x256xbf16, #tpu.memory_space<vmem>>, vector<1x384x256xbf16>
    %115 = vector.shape_cast %114 : vector<1x384x256xbf16> to vector<384x256xbf16>
    %cst_47 = arith.constant dense<0.000000e+00> : vector<32x256xf32>
    %116 = tpu.matmul %113, %115, %cst_47 {dimension_numbers = #tpu.dot_dimension_numbers<[1], [0], [0], [1], [0, 0, 1, 1], [], []>} : vector<32x384xbf16>, vector<384x256xbf16>, vector<32x256xf32> -> vector<32x256xf32>
    %c4_48 = arith.constant 4 : index
    %c0_49 = arith.constant 0 : index
    %c0_50 = arith.constant 0 : index
    %117 = vector.load %arg5[%c4_48, %c0_49, %c0_50] : memref<6x1x256xf32, #tpu.memory_space<vmem>>, vector<1x1x256xf32>
    %118 = vector.shape_cast %117 : vector<1x1x256xf32> to vector<1x256xf32>
    %119 = vector.broadcast %118 : vector<1x256xf32> to vector<32x256xf32>
    %120 = arith.addf %116, %119 : vector<32x256xf32>
    %121 = vector.extract_strided_slice %120 {offsets = [0, 0], sizes = [32, 128], strides = [1, 1]} : vector<32x256xf32> to vector<32x128xf32>
    %122 = vector.extract_strided_slice %120 {offsets = [0, 128], sizes = [32, 128], strides = [1, 1]} : vector<32x256xf32> to vector<32x128xf32>
    %123 = arith.negf %121 : vector<32x128xf32>
    %124 = math.exp %123 : vector<32x128xf32>
    %cst_51 = arith.constant 1.000000e+00 : f32
    %125 = vector.broadcast %cst_51 : f32 to vector<32x128xf32>
    %126 = arith.addf %125, %124 : vector<32x128xf32>
    %127 = arith.divf %125, %126 : vector<32x128xf32>
    %128 = arith.subf %122, %105 : vector<32x128xf32>
    %129 = arith.mulf %127, %128 : vector<32x128xf32>
    %130 = arith.addf %105, %129 : vector<32x128xf32>
    %cst_52 = arith.constant 0.000000e+00 : f32
    %131 = vector.broadcast %cst_52 : f32 to vector<2x128xf32>
    %132 = vector.extract_strided_slice %130 {offsets = [0, 0], sizes = [30, 128], strides = [1, 1]} : vector<32x128xf32> to vector<30x128xf32>
    %133 = tpu.concatenate %131, %132 in 0 : vector<2x128xf32>, vector<30x128xf32> -> vector<32x128xf32>
    %cst_53 = arith.constant 0.000000e+00 : f32
    %134 = vector.broadcast %cst_53 : f32 to vector<1x128xf32>
    %135 = vector.extract_strided_slice %130 {offsets = [0, 0], sizes = [31, 128], strides = [1, 1]} : vector<32x128xf32> to vector<31x128xf32>
    %136 = tpu.concatenate %134, %135 in 0 : vector<1x128xf32>, vector<31x128xf32> -> vector<32x128xf32>
    %137 = tpu.concatenate %133, %136, %130 in 1 : vector<32x128xf32>, vector<32x128xf32>, vector<32x128xf32> -> vector<32x384xf32>
    %138 = arith.truncf %137 : vector<32x384xf32> to vector<32x384xbf16>
    %c5 = arith.constant 5 : index
    %c0_54 = arith.constant 0 : index
    %c0_55 = arith.constant 0 : index
    %139 = vector.load %arg4[%c5, %c0_54, %c0_55] : memref<6x384x256xbf16, #tpu.memory_space<vmem>>, vector<1x384x256xbf16>
    %140 = vector.shape_cast %139 : vector<1x384x256xbf16> to vector<384x256xbf16>
    %cst_56 = arith.constant dense<0.000000e+00> : vector<32x256xf32>
    %141 = tpu.matmul %138, %140, %cst_56 {dimension_numbers = #tpu.dot_dimension_numbers<[1], [0], [0], [1], [0, 0, 1, 1], [], []>} : vector<32x384xbf16>, vector<384x256xbf16>, vector<32x256xf32> -> vector<32x256xf32>
    %c5_57 = arith.constant 5 : index
    %c0_58 = arith.constant 0 : index
    %c0_59 = arith.constant 0 : index
    %142 = vector.load %arg5[%c5_57, %c0_58, %c0_59] : memref<6x1x256xf32, #tpu.memory_space<vmem>>, vector<1x1x256xf32>
    %143 = vector.shape_cast %142 : vector<1x1x256xf32> to vector<1x256xf32>
    %144 = vector.broadcast %143 : vector<1x256xf32> to vector<32x256xf32>
    %145 = arith.addf %141, %144 : vector<32x256xf32>
    %146 = vector.extract_strided_slice %145 {offsets = [0, 0], sizes = [32, 128], strides = [1, 1]} : vector<32x256xf32> to vector<32x128xf32>
    %147 = vector.extract_strided_slice %145 {offsets = [0, 128], sizes = [32, 128], strides = [1, 1]} : vector<32x256xf32> to vector<32x128xf32>
    %148 = arith.negf %146 : vector<32x128xf32>
    %149 = math.exp %148 : vector<32x128xf32>
    %cst_60 = arith.constant 1.000000e+00 : f32
    %150 = vector.broadcast %cst_60 : f32 to vector<32x128xf32>
    %151 = arith.addf %150, %149 : vector<32x128xf32>
    %152 = arith.divf %150, %151 : vector<32x128xf32>
    %153 = arith.subf %147, %130 : vector<32x128xf32>
    %154 = arith.mulf %152, %153 : vector<32x128xf32>
    %155 = arith.addf %130, %154 : vector<32x128xf32>
    %156 = arith.truncf %155 : vector<32x128xf32> to vector<32x128xbf16>
    %c0_61 = arith.constant 0 : index
    %c0_62 = arith.constant 0 : index
    %c0_63 = arith.constant 0 : index
    %157 = vector.load %arg6[%c0_61, %c0_62, %c0_63] : memref<3x128x128xbf16, #tpu.memory_space<vmem>>, vector<1x128x128xbf16>
    %158 = vector.shape_cast %157 : vector<1x128x128xbf16> to vector<128x128xbf16>
    %cst_64 = arith.constant dense<0.000000e+00> : vector<32x128xf32>
    %159 = tpu.matmul %156, %158, %cst_64 {dimension_numbers = #tpu.dot_dimension_numbers<[1], [0], [0], [1], [0, 0, 1, 1], [], []>} : vector<32x128xbf16>, vector<128x128xbf16>, vector<32x128xf32> -> vector<32x128xf32>
    %c0_65 = arith.constant 0 : index
    %c0_66 = arith.constant 0 : index
    %c0_67 = arith.constant 0 : index
    %160 = vector.load %arg7[%c0_65, %c0_66, %c0_67] : memref<3x1x128xf32, #tpu.memory_space<vmem>>, vector<1x1x128xf32>
    %161 = vector.shape_cast %160 : vector<1x1x128xf32> to vector<1x128xf32>
    %162 = vector.broadcast %161 : vector<1x128xf32> to vector<32x128xf32>
    %163 = arith.addf %159, %162 : vector<32x128xf32>
    %cst_68 = arith.constant 0.000000e+00 : f32
    %164 = vector.broadcast %cst_68 : f32 to vector<32x128xf32>
    %165 = arith.maximumf %163, %164 : vector<32x128xf32>
    %166 = arith.truncf %165 : vector<32x128xf32> to vector<32x128xbf16>
    %c1_69 = arith.constant 1 : index
    %c0_70 = arith.constant 0 : index
    %c0_71 = arith.constant 0 : index
    %167 = vector.load %arg6[%c1_69, %c0_70, %c0_71] : memref<3x128x128xbf16, #tpu.memory_space<vmem>>, vector<1x128x128xbf16>
    %168 = vector.shape_cast %167 : vector<1x128x128xbf16> to vector<128x128xbf16>
    %cst_72 = arith.constant dense<0.000000e+00> : vector<32x128xf32>
    %169 = tpu.matmul %166, %168, %cst_72 {dimension_numbers = #tpu.dot_dimension_numbers<[1], [0], [0], [1], [0, 0, 1, 1], [], []>} : vector<32x128xbf16>, vector<128x128xbf16>, vector<32x128xf32> -> vector<32x128xf32>
    %c1_73 = arith.constant 1 : index
    %c0_74 = arith.constant 0 : index
    %c0_75 = arith.constant 0 : index
    %170 = vector.load %arg7[%c1_73, %c0_74, %c0_75] : memref<3x1x128xf32, #tpu.memory_space<vmem>>, vector<1x1x128xf32>
    %171 = vector.shape_cast %170 : vector<1x1x128xf32> to vector<1x128xf32>
    %172 = vector.broadcast %171 : vector<1x128xf32> to vector<32x128xf32>
    %173 = arith.addf %169, %172 : vector<32x128xf32>
    %cst_76 = arith.constant 0.000000e+00 : f32
    %174 = vector.broadcast %cst_76 : f32 to vector<32x128xf32>
    %175 = arith.maximumf %173, %174 : vector<32x128xf32>
    %176 = arith.truncf %175 : vector<32x128xf32> to vector<32x128xbf16>
    %c2_77 = arith.constant 2 : index
    %c0_78 = arith.constant 0 : index
    %c0_79 = arith.constant 0 : index
    %177 = vector.load %arg6[%c2_77, %c0_78, %c0_79] : memref<3x128x128xbf16, #tpu.memory_space<vmem>>, vector<1x128x128xbf16>
    %178 = vector.shape_cast %177 : vector<1x128x128xbf16> to vector<128x128xbf16>
    %cst_80 = arith.constant dense<0.000000e+00> : vector<32x128xf32>
    %179 = tpu.matmul %176, %178, %cst_80 {dimension_numbers = #tpu.dot_dimension_numbers<[1], [0], [0], [1], [0, 0, 1, 1], [], []>} : vector<32x128xbf16>, vector<128x128xbf16>, vector<32x128xf32> -> vector<32x128xf32>
    %c2_81 = arith.constant 2 : index
    %c0_82 = arith.constant 0 : index
    %c0_83 = arith.constant 0 : index
    %180 = vector.load %arg7[%c2_81, %c0_82, %c0_83] : memref<3x1x128xf32, #tpu.memory_space<vmem>>, vector<1x1x128xf32>
    %181 = vector.shape_cast %180 : vector<1x1x128xf32> to vector<1x128xf32>
    %182 = vector.broadcast %181 : vector<1x128xf32> to vector<32x128xf32>
    %183 = arith.addf %179, %182 : vector<32x128xf32>
    %cst_84 = arith.constant 0.000000e+00 : f32
    %184 = vector.broadcast %cst_84 : f32 to vector<32x128xf32>
    %185 = arith.maximumf %183, %184 : vector<32x128xf32>
    %186 = arith.truncf %185 : vector<32x128xf32> to vector<32x128xbf16>
    %c0_85 = arith.constant 0 : index
    %c0_86 = arith.constant 0 : index
    %187 = vector.load %arg8[%c0_85, %c0_86] : memref<128x128xbf16, #tpu.memory_space<vmem>>, vector<128x128xbf16>
    %cst_87 = arith.constant dense<0.000000e+00> : vector<32x128xf32>
    %188 = tpu.matmul %186, %187, %cst_87 {dimension_numbers = #tpu.dot_dimension_numbers<[1], [0], [0], [1], [0, 0, 1, 1], [], []>} : vector<32x128xbf16>, vector<128x128xbf16>, vector<32x128xf32> -> vector<32x128xf32>
    %c0_88 = arith.constant 0 : index
    %c0_89 = arith.constant 0 : index
    %189 = vector.load %arg9[%c0_88, %c0_89] : memref<1x128xf32, #tpu.memory_space<vmem>>, vector<1x128xf32>
    %190 = vector.broadcast %189 : vector<1x128xf32> to vector<32x128xf32>
    %191 = arith.addf %188, %190 : vector<32x128xf32>
    %c0_90 = arith.constant 0 : index
    %c0_91 = arith.constant 0 : index
    %c0_92 = arith.constant 0 : index
    %192 = vector.load %arg11[%c0_90, %c0_91, %c0_92] : memref<1x32x128xf32, #tpu.memory_space<vmem>>, vector<1x32x128xf32>
    %193 = vector.shape_cast %192 : vector<1x32x128xf32> to vector<32x128xf32>
    %194 = vector.shape_cast %191 : vector<32x128xf32> to vector<1x32x128xf32>
    tpu.vector_store %arg11[%c0_90, %c0_91, %c0_92], %194 {strides = array<i32>} : memref<1x32x128xf32, #tpu.memory_space<vmem>>, vector<1x32x128xf32>,
    %195 = arith.negf %191 : vector<32x128xf32>
    %196 = math.exp %195 : vector<32x128xf32>
    %cst_93 = arith.constant 1.000000e+00 : f32
    %197 = vector.broadcast %cst_93 : f32 to vector<32x128xf32>
    %198 = arith.addf %197, %196 : vector<32x128xf32>
    %199 = arith.divf %197, %198 : vector<32x128xf32>
    %c0_94 = arith.constant 0 : index
    %c0_95 = arith.constant 0 : index
    %c0_96 = arith.constant 0 : index
    %200 = vector.load %arg10[%c0_94, %c0_95, %c0_96] : memref<1x32x128xf32, #tpu.memory_space<vmem>>, vector<1x32x128xf32>
    %201 = vector.shape_cast %200 : vector<1x32x128xf32> to vector<32x128xf32>
    %202 = vector.shape_cast %199 : vector<32x128xf32> to vector<1x32x128xf32>
    tpu.vector_store %arg10[%c0_94, %c0_95, %c0_96], %202 {strides = array<i32>} : memref<1x32x128xf32, #tpu.memory_space<vmem>>, vector<1x32x128xf32>,
    return
  }
  func.func @transform_0(%arg0: i32) -> (i32, i32, i32) {
    %c0_i32 = arith.constant 0 : i32
    %c0_i32_0 = arith.constant 0 : i32
    %c0_i32_1 = arith.constant 0 : i32
    return %arg0, %c0_i32, %c0_i32_0 : i32, i32, i32
  }
  func.func @transform_1(%arg0: i32) -> (i32, i32) {
    %c0_i32 = arith.constant 0 : i32
    %c0_i32_0 = arith.constant 0 : i32
    %c0_i32_1 = arith.constant 0 : i32
    return %c0_i32, %c0_i32_0 : i32, i32
  }
  func.func @transform_2(%arg0: i32) -> (i32, i32) {
    %c0_i32 = arith.constant 0 : i32
    %c0_i32_0 = arith.constant 0 : i32
    %c0_i32_1 = arith.constant 0 : i32
    return %c0_i32, %c0_i32_0 : i32, i32
  }
  func.func @transform_3(%arg0: i32) -> (i32, i32, i32) {
    %c0_i32 = arith.constant 0 : i32
    %c0_i32_0 = arith.constant 0 : i32
    %c0_i32_1 = arith.constant 0 : i32
    %c0_i32_2 = arith.constant 0 : i32
    return %c0_i32, %c0_i32_0, %c0_i32_1 : i32, i32, i32
  }
  func.func @transform_4(%arg0: i32) -> (i32, i32, i32) {
    %c0_i32 = arith.constant 0 : i32
    %c0_i32_0 = arith.constant 0 : i32
    %c0_i32_1 = arith.constant 0 : i32
    %c0_i32_2 = arith.constant 0 : i32
    return %c0_i32, %c0_i32_0, %c0_i32_1 : i32, i32, i32
  }
  func.func @transform_5(%arg0: i32) -> (i32, i32, i32) {
    %c0_i32 = arith.constant 0 : i32
    %c0_i32_0 = arith.constant 0 : i32
    %c0_i32_1 = arith.constant 0 : i32
    %c0_i32_2 = arith.constant 0 : i32
    return %c0_i32, %c0_i32_0, %c0_i32_1 : i32, i32, i32
  }
  func.func @transform_6(%arg0: i32) -> (i32, i32, i32) {
    %c0_i32 = arith.constant 0 : i32
    %c0_i32_0 = arith.constant 0 : i32
    %c0_i32_1 = arith.constant 0 : i32
    %c0_i32_2 = arith.constant 0 : i32
    return %c0_i32, %c0_i32_0, %c0_i32_1 : i32, i32, i32
  }
  func.func @transform_7(%arg0: i32) -> (i32, i32) {
    %c0_i32 = arith.constant 0 : i32
    %c0_i32_0 = arith.constant 0 : i32
    %c0_i32_1 = arith.constant 0 : i32
    return %c0_i32, %c0_i32_0 : i32, i32
  }
  func.func @transform_8(%arg0: i32) -> (i32, i32) {
    %c0_i32 = arith.constant 0 : i32
    %c0_i32_0 = arith.constant 0 : i32
    %c0_i32_1 = arith.constant 0 : i32
    return %c0_i32, %c0_i32_0 : i32, i32
  }
  func.func @transform_9(%arg0: i32) -> (i32, i32, i32) {
    %c0_i32 = arith.constant 0 : i32
    %c0_i32_0 = arith.constant 0 : i32
    %c0_i32_1 = arith.constant 0 : i32
    return %arg0, %c0_i32, %c0_i32_0 : i32, i32, i32
  }
  func.func @transform_10(%arg0: i32) -> (i32, i32, i32) {
    %c0_i32 = arith.constant 0 : i32
    %c0_i32_0 = arith.constant 0 : i32
    %c0_i32_1 = arith.constant 0 : i32
    return %arg0, %c0_i32, %c0_i32_0 : i32, i32, i32
  }
}

</mosaic_0001>

<bundles_post_ra>
// kernel: tpu_custom_call.1
= control target key start
LH: loop header
LB: loop body
LE: loop exit
PB: predicated region body
PF: predicated region fallthrough
CT: control target
= control target key end

     0   :  { %s6552_s0 = inlined_call_operand.hbm [shape: f32[2,32,128], index: 0, kind: input, shape index: {}]   ;;  %s6553_s1 = inlined_call_operand.hbm [shape: bf16[128,128], index: 1, kind: input, shape index: {}]   ;;  %s6554_s2 = inlined_call_operand.hbm [shape: f32[1,128], index: 2, kind: input, shape index: {}]   ;;  %s6555_s3 = inlined_call_operand.hbm [shape: bf16[6,384,256], index: 3, kind: input, shape index: {}]   ;;  %s6556_s4 = inlined_call_operand.hbm [shape: f32[6,1,256], index: 4, kind: input, shape index: {}]   ;;  %s6557_s5 = inlined_call_operand.hbm [shape: bf16[3,128,128], index: 5, kind: input, shape index: {}]   ;;  %s6558_s6 = inlined_call_operand.hbm [shape: f32[3,1,128], index: 6, kind: input, shape index: {}]   ;;  %s6559_s7 = inlined_call_operand.hbm [shape: bf16[128,128], index: 7, kind: input, shape index: {}]   ;;  %s6560_s8 = inlined_call_operand.hbm [shape: f32[1,128], index: 8, kind: input, shape index: {}]   ;;  %s6561_s9 = inlined_call_operand.hbm [shape: f32[2,32,128], index: 9, kind: output, shape index: {0}]   ;;  %s6562_s10 = inlined_call_operand.hbm [shape: f32[2,32,128], index: 10, kind: output, shape index: {1}]  }
   0x1   :  { %6569 = sst [smem:[#allocation27_spill]] %s6553_s1 }
   0x2   :  { %6570 = sst [smem:[#allocation28_spill]] %s6554_s2 }
   0x3   :  { %6571 = sst [smem:[#allocation29_spill]] %s6555_s3 }
   0x4   :  { %6572 = sst [smem:[#allocation30_spill]] %s6556_s4 }
   0x5   :  { %16 = vsyncpa [#allocation3], 0 }
   0x6   :  { %18 = vsyncpa [#allocation3 + $0x1], 0 }
   0x7   :  { %19 = vsyncpa [#allocation6], 0 }
   0x8   :  { %20 = vsyncpa [#allocation9], 0 }
   0x9   :  { %21 = vsyncpa [#allocation12], 0 }
   0xa   :  { %22 = vsyncpa [#allocation15], 0 }
   0xb   :  { %23 = vsyncpa [#allocation4], 0 }
   0xc   :  { %25 = vsyncpa [#allocation4 + $0x1], 0 }
   0xd   :  { %26 = vsyncpa [#allocation19], 0 }
   0xe   :  { %28 = vsyncpa [#allocation19 + $0x1], 0  ;;  %s5963_s13 = smov 0   ;;  %s5965_s14 = smov 0  }
   0xf   :  { %s5967_s15 = smov 0   ;;  %s5969_s16 = smov 0  }
  0x10 LB: > { %s5883_s17 = smov [#allocation5]   ;;  %s5984_s19 = sadd.s32 4294967295, %s5881_s16   ;;  %s5881_s16 = sphi %s5969_s16, %s6611_s16   ;;  %s5877_s15 = sphi %s5967_s15, %s6610_s15   ;;  %s5873_s14 = sphi %s5965_s14, %s6609_s14   ;;  %s5869_s13 = sphi %s5963_s13, %s6608_s13  }
  0x11   : > { %s297_s18 = sshll.u32 %s5883_s17, 4  ;;  %p4214_p0 = scmp.ge.s32.totalorder %s5881_s16, 1  ;;  %s298_s18 = int_to_ptr.vmem [resolvable:$true] %s297_s18 }
  0x12   : > { %p6565_p1 = scmp.eq.s32.totalorder %s5984_s19, 0  ;;  %p285_p2 = scmp.lt.s32.totalorder %s5881_s16, 3 }
  0x13   : > { %s5884_s21 = smov [#allocation8]   ;;  %s5885_s24 = smov [#allocation11]  }
  0x14   : > { %p5989_p3 = pnand %p4214_p0, %p285_p2  ;;  %s321_s22 = sshll.u32 %s5884_s21, 4  ;;  %s6002_s22 = int_to_ptr.vmem [resolvable:$true] %s321_s22 }
  0x15   : > { %s6004_s25 = sshll.u32 %s5885_s24, 4  ;;  %s5546_s27 = scalar_lea.vmem %s298_s18, 1024  ;;  %s348_s25 = int_to_ptr.vmem [resolvable:$true] %s6004_s25 }
  0x16   : > { %s6573_s20 = scalar_select %p5989_p3, 1, 0 }
  0x17   : > { %p4843_p5 = pneg %p5989_p3  ;;  %p5547_p8 = scmp.ne.s32.totalorder %s298_s18, %s5546_s27 }
  0x18   : > { %p5554_p11 = scmp.lt.s32.totalorder %s298_s18, %s298_s18  ;;  %p5555_p12 = scmp.lt.s32.totalorder %s5546_s27, %s5546_s27 }
  0x19   : > { %p5998_p6 = pnand %p4843_p5, %p6565_p1 }
  0x1a   : > { %p5556_p13 = por %p5555_p12, %p5554_p11 }
  0x1b   : > { %p6008_p7 = pneg %p5998_p6 }
  0x1d   : > { %p5549_p9 = pnand %p5547_p8, %p6008_p7 }
  0x1f   : > { %p5550_p10 = pneg %p5549_p9 }
  0x21   : > { %p5557_p0 = pnand %p5556_p13, %p5550_p10 }
  0x23   : > { %5560 = shalt.err (!%p5557_p0)
}
  0x24   : > { %s5886_s28 = smov 64   ;;  %s5887_s29 = smov 4  }
  0x25   : > { %s6576_s1 = sld [smem:[#allocation27_spill]]  ;;  %s5572_s12 = scalar_lea.vmem %s6002_s22, 36864 }
  0x26   : > { %p5573_p2 = scmp.ne.s32.totalorder %s6002_s22, %s5572_s12  ;;  %p5580_p9 = scmp.lt.s32.totalorder %s6002_s22, %s6002_s22 }
  0x27   : > { %p5581_p10 = scmp.lt.s32.totalorder %s5572_s12, %s5572_s12 }
  0x28   : > { %p5575_p5 = pnand %p5573_p2, %p6008_p7 }
  0x29   : > { %p5582_p11 = por %p5581_p10, %p5580_p9 }
  0x2a   : > { %p5576_p8 = pneg %p5575_p5 }
  0x2b   : > { %4846 = dma.hbm_to_vmem [thread:$0]  (!%p5998_p6), %s6576_s1, 1024, %s298_s18, [#allocation6], %s5886_s28, %s5886_s28, %s5887_s29  }
  0x2c   : > { %p5583_p12 = pnand %p5582_p11, %p5576_p8 }
  0x2e   : > { %5586 = shalt.err (!%p5583_p12)
}
  0x2f   : > { %s6563_s17 = smov 128   ;;  %s6564_s21 = smov 8  }
  0x30   : > { %s6577_s3 = sld [smem:[#allocation29_spill]]  ;;  %s5598_s27 = scalar_lea.vmem %s348_s25, 3072 }
  0x31   : > { %p5599_p13 = scmp.ne.s32.totalorder %s348_s25, %s5598_s27  ;;  %p5606_p5 = scmp.lt.s32.totalorder %s348_s25, %s348_s25 }
  0x32   : > { %p5607_p8 = scmp.lt.s32.totalorder %s5598_s27, %s5598_s27 }
  0x33   : > { %p5601_p0 = pnand %p5599_p13, %p6008_p7 }
  0x34   : > { %p5608_p9 = por %p5607_p8, %p5606_p5 }
  0x35   : > { %p5602_p2 = pneg %p5601_p0 }
  0x36   : > { %4852 = dma.hbm_to_vmem [thread:$0]  (!%p5998_p6), %s6577_s3, 36864, %s6002_s22, [#allocation9], %s6563_s17, %s6563_s17, %s6564_s21  }
  0x37   : > { %p5609_p10 = pnand %p5608_p9, %p5602_p2 }
  0x39   : > { %5612 = shalt.err (!%p5609_p10)
}
  0x3a   : > { %4858 = dma.hbm_to_vmem [thread:$0]  (!%p5998_p6), %s6557_s5, 3072, %s348_s25, [#allocation12], %s5886_s28, %s5886_s28, %s5887_s29  }
  0x3b   : > { %s5890_s22 = smov [#allocation14]   ;;  %s5891_s18 = smov [#allocation7]  }
  0x3c   : > { %s373_s12 = sshll.u32 %s5890_s22, 4  ;;  %s311_s24 = sshll.u32 %s5891_s18, 4  ;;  %s374_s12 = int_to_ptr.vmem [resolvable:$true] %s373_s12  ;;  %s312_s24 = int_to_ptr.vmem [resolvable:$true] %s311_s24 }
  0x3d   : > { %s5624_s17 = scalar_lea.vmem %s374_s12, 1024  ;;  %p5632_p0 = scmp.lt.s32.totalorder %s374_s12, %s374_s12 }
  0x3e   : > { %p5625_p11 = scmp.ne.s32.totalorder %s374_s12, %s5624_s17  ;;  %p5633_p2 = scmp.lt.s32.totalorder %s5624_s17, %s5624_s17 }
  0x40   : > { %p5627_p12 = pnand %p5625_p11, %p6008_p7  ;;  %p5634_p5 = por %p5633_p2, %p5632_p0 }
  0x42   : > { %p5628_p13 = pneg %p5627_p12 }
  0x44   : > { %p5635_p8 = pnand %p5634_p5, %p5628_p13 }
  0x46   : > { %5638 = shalt.err (!%p5635_p8)
}
  0x47   : > { %4864 = dma.hbm_to_vmem [thread:$0]  (!%p5998_p6), %s6559_s7, 1024, %s374_s12, [#allocation15], %s5886_s28, %s5886_s28, %s5887_s29  }
  0x48   : > { %s5650_s30 = scalar_lea.vmem %s312_s24, 16  ;;  %s5657_s17 = scalar_lea.vmem %s312_s24, 32 }
  0x49   : > { %p5651_p9 = scmp.ne.s32.totalorder %s312_s24, %s5650_s30  ;;  %p5658_p12 = scmp.lt.s32.totalorder %s312_s24, %s312_s24 }
  0x4a   : > { %p5659_p13 = scmp.lt.s32.totalorder %s5657_s17, %s5650_s30 }
  0x4b   : > { %p5653_p10 = pnand %p5651_p9, %p6008_p7 }
  0x4c   : > { %p5660_p0 = por %p5659_p13, %p5658_p12 }
  0x4d   : > { %p5654_p11 = pneg %p5653_p10 }
  0x4f   : > { %p5661_p2 = pnand %p5660_p0, %p5654_p11 }
  0x51   : > { %5664 = shalt.err (!%p5661_p2)
}
  0x52   : > { %s6578_s2 = sld [smem:[#allocation28_spill]]  ;;  %s5892_s28 = smov [#allocation10]  }
  0x53   : > { %s334_s29 = sshll.u32 %s5892_s28, 4  ;;  %s335_s29 = int_to_ptr.vmem [resolvable:$true] %s334_s29 }
  0x54   : > { %s5676_s12 = scalar_lea.vmem %s335_s29, 192  ;;  %p5684_p10 = scmp.lt.s32.totalorder %s335_s29, %s335_s29 }
  0x55   : > { %p5677_p5 = scmp.ne.s32.totalorder %s335_s29, %s5676_s12  ;;  %p5685_p4 = scmp.lt.s32.totalorder %s5676_s12, %s5676_s12 }
  0x57   : > { %p5679_p8 = pnand %p5677_p5, %p6008_p7  ;;  %p5686_p12 = por %p5685_p4, %p5684_p10 }
  0x58   : > { %4849 = dma.hbm_to_vmem [thread:$0]  (!%p5998_p6), %s6578_s2, 16, %s312_s24, [#allocation6]  }
  0x59   : > { %p5680_p9 = pneg %p5679_p8 }
  0x5b   : > { %p5687_p11 = pnand %p5686_p12, %p5680_p9 }
  0x5d   : > { %5690 = shalt.err (!%p5687_p11)
}
  0x5e   : > { %s5893_s18 = smov 32   ;;  %s5894_s25 = smov 2  }
  0x5f   : > { %s6579_s4 = sld [smem:[#allocation30_spill]]  ;;  %s5895_s30 = smov [#allocation13]  }
  0x60   : > { %s360_s17 = sshll.u32 %s5895_s30, 4  ;;  %s361_s17 = int_to_ptr.vmem [resolvable:$true] %s360_s17 }
  0x61   : > { %s5702_s11 = scalar_lea.vmem %s361_s17, 48  ;;  %s5709_s22 = scalar_lea.vmem %s361_s17, 64 }
  0x62   : > { %p5703_p13 = scmp.ne.s32.totalorder %s361_s17, %s5702_s11  ;;  %p5710_p4 = scmp.lt.s32.totalorder %s361_s17, %s361_s17 }
  0x63   : > { %p5711_p5 = scmp.lt.s32.totalorder %s5709_s22, %s5702_s11 }
  0x64   : > { %p5705_p0 = pnand %p5703_p13, %p6008_p7 }
  0x65   : > { %4855 = dma.hbm_to_vmem [thread:$0]  (!%p5998_p6), %s6579_s4, 192, %s335_s29, [#allocation9], %s5893_s18, %s5893_s18, %s5894_s25  }
  0x66   : > { %p5706_p2 = pneg %p5705_p0  ;;  %p5712_p8 = por %p5711_p5, %p5710_p4 }
  0x68   : > { %p5713_p9 = pnand %p5712_p8, %p5706_p2 }
  0x6a   : > { %5716 = shalt.err (!%p5713_p9)
}
  0x6b   : > { %s5896_s28 = smov 16   ;;  %s5897_s12 = smov 1  }
  0x6c   : > { %4861 = dma.hbm_to_vmem [thread:$0]  (!%p5998_p6), %s6558_s6, 48, %s361_s17, [#allocation12], %s5896_s28, %s5896_s28, %s5897_s12  }
  0x6d   : > { %s5898_s25 = smov [#allocation16]  }
  0x6e   : > { %s387_s27 = sshll.u32 %s5898_s25, 4  ;;  %s388_s27 = int_to_ptr.vmem [resolvable:$true] %s387_s27 }
  0x6f   : > { %s5728_s24 = scalar_lea.vmem %s388_s27, 16  ;;  %s5735_s30 = scalar_lea.vmem %s388_s27, 32 }
  0x70   : > { %p5729_p10 = scmp.ne.s32.totalorder %s388_s27, %s5728_s24  ;;  %p5736_p13 = scmp.lt.s32.totalorder %s388_s27, %s388_s27 }
  0x71   : > { %p5737_p0 = scmp.lt.s32.totalorder %s5735_s30, %s5728_s24 }
  0x72   : > { %p5731_p12 = pnand %p5729_p10, %p6008_p7 }
  0x73   : > { %p5738_p2 = por %p5737_p0, %p5736_p13 }
  0x74   : > { %p5732_p11 = pneg %p5731_p12 }
  0x76   : > { %p5739_p4 = pnand %p5738_p2, %p5732_p11 }
  0x78   : > { %5742 = shalt.err (!%p5739_p4)
}
  0x79   : > { %4867 = dma.hbm_to_vmem [thread:$0]  (!%p5998_p6), %s6560_s8, 16, %s388_s27, [#allocation15]  }
  0x7a   : > { %s4213_s26 = sadd.s32 4294967294, %s5881_s16   ;;  %s6088_s23 = sadd.s32 1, %s5881_s16  }
  0x7b   : > { %s38_s17 = ssub.s32 %s5881_s16, %s6088_s23  ;;  %s41_s28 = sadd.s32 1, %s5877_s15 }
  0x7c   : > { %p39_p7 = scmp.eq.s32.totalorder %s38_s17, 0  ;;  %p48_p5 = scmp.ne.s32.totalorder %s5877_s15, %s5873_s14 }
  0x7d   : > { %p49_p8 = scmp.eq.s32.totalorder %s5881_s16, 0  ;;  %p54_p9 = scmp.ne.s32.totalorder %s5873_s14, %s5869_s13 }
  0x7e   : > { %s6099_s12 = scalar_select %p39_p7, %s5877_s15, %s41_s28  }
  0x7f   : > { %p6101_p10 = por %p49_p8, %p48_p5  ;;  %p6107_p6 = por %p6565_p1, %p54_p9 }
  0x80   : > { %p246_p12 = scmp.eq.s32.totalorder %s5984_s19, 1  ;;  %p252_p11 = scmp.eq.s32.totalorder %s4213_s26, 1 }
  0x81   : > { %s6581_s18 = scalar_select %p6107_p6, 1, 0 }
  0x82   : > { %p4887_p13 = scmp.lt.s32.totalorder %s5881_s16, 2  ;;  %s398_s25 = sand.u32 1, %s5877_s15  }
  0x83   : > { %p6114_p0 = por %p246_p12, %p48_p5  ;;  %p6118_p2 = por %p252_p11, %p54_p9 }
  0x84   : > { %s4224_s30 = sshll.u32 %s398_s25, 5  ;;  %s4652_s11 = sshll.u32 %s5881_s16, 9 }
  0x85   : > { %s6582_s27 = scalar_select %p6114_p0, 1, 0 }
  0x86   : > { %s6583_s24 = scalar_select %p6118_p2, 1, 0 }
  0x87   : > { %s6126_s28 = scalar_lea.hbm %s6552_s0, %s4652_s11  ;;  %s402_s26 = scalar_lea.vmem [#allocation2], %s4224_s30 }
  0x88   : > { %s409_s21 = sshll.u32 %s402_s26, 4  ;;  %p6132_p4 = pnand %p4887_p13, %p6101_p10  ;;  %s6128_s21 = int_to_ptr.vmem [resolvable:$true] %s409_s21 }
  0x89   : > { %s6136_s2 = scalar_lea.sflag [#allocation3], %s398_s25  ;;  %s5743_s3 = scalar_lea.hbm %s6126_s28, 512 }
  0x8a   : > { %p5744_p7 = scmp.ne.s32.totalorder %s6126_s28, %s5743_s3  ;;  %p5745_p5 = pneg %p6132_p4 }
  0x8b   : > { %s5748_s30 = scalar_lea.hbm %s6552_s0, 1024  ;;  %p5749_p10 = scmp.lt.s32.totalorder %s6126_s28, %s6552_s0 }
  0x8c   : > { %p5746_p8 = pnand %p5745_p5, %p5744_p7  ;;  %p5750_p12 = scmp.lt.s32.totalorder %s5748_s30, %s5743_s3 }
  0x8e   : > { %p5747_p9 = pneg %p5746_p8  ;;  %p5751_p11 = por %p5750_p12, %p5749_p10 }
  0x90   : > { %p5752_p13 = pnand %p5751_p11, %p5747_p9 }
  0x92   : > { %5755 = shalt.err (!%p5752_p13)
}
  0x93   : > { %s5756_s29 = scalar_lea.vmem %s6128_s21, 512  ;;  %s5899_s25 = smov [#allocation2]  }
  0x94   : > { %p5757_p1 = scmp.ne.s32.totalorder %s6128_s21, %s5756_s29  ;;  %s5761_s4 = sshll.u32 %s5899_s25, 4  ;;  %s5762_s4 = int_to_ptr.vmem [resolvable:$false] %s5761_s4 }
  0x95   : > { %s5763_s11 = scalar_lea.vmem %s5762_s4, 1024  ;;  %p5764_p8 = scmp.lt.s32.totalorder %s6128_s21, %s5762_s4 }
  0x96   : > { %p5759_p2 = pnand %p5757_p1, %p5745_p5  ;;  %p5765_p0 = scmp.lt.s32.totalorder %s5763_s11, %s5756_s29 }
  0x98   : > { %p5760_p7 = pneg %p5759_p2  ;;  %p5766_p6 = por %p5765_p0, %p5764_p8 }
  0x9a   : > { %p5767_p3 = pnand %p5766_p6, %p5760_p7 }
  0x9c   : > { %5770 = shalt.err (!%p5767_p3)
}
  0x9d   : > { %s6585_s3 = smov 8   ;;  %s6586_s22 = smov 128  }
  0x9e   : > { %4871 = dma.hbm_to_vmem [thread:$0]  (!%p6132_p4), %s6126_s28, 512, %s6128_s21, %s6136_s2, %s6586_s22, %s6586_s22, %s6585_s3  }
  0x9f   : > { %p6587_p1 = scmp.ne.s32.totalorder %s6573_s20, 0 }
  0xa0   : > { %s6163_s30 = sand.u32 (!%p6587_p1), 1, %s5873_s14   ;;  %p6588_p3 = scmp.ne.s32.totalorder (!%p6587_p1), %s6581_s18, 0 }
  0xa1   : > { %421 = sbr.rel (%p6587_p1) target bundleno = 2746 (0xaba), region = 56  ;;  %s6166_s4 = sshll.u32 (!%p6587_p1), %s6163_s30, 5 }
  0xa2   : > { %s424_s1 = scalar_lea.sflag (!%p6587_p1), [#allocation3], %s6163_s30  ;;  %s6170_s17 = scalar_lea.vmem (!%p6587_p1), [#allocation2], %s6166_s4 }
  0xa6   : > { %5840 = dma.done.wait (%p6588_p3), %s424_s1, 512  }
  0xa7   : > { %5842 = vsyncadd (%p6588_p3), %s424_s1, 4294966784  ;;  %p6589_p6 = scmp.eq.s32.totalorder %s5984_s19, 0 }
  0xa9   : > { %5844 = dma.done.wait (%p6589_p6), [#allocation6], 1040   ;;  %p6590_p0 = pmov %p6589_p6 }
  0xab   : > { %5846 = vsyncadd (%p6590_p0), [#allocation6], 4294966256  ;;  %p6591_p2 = pmov %p6590_p0 }
  0xac   : > { %p6592_p4 = pmov %p6590_p0 }
  0xad   : > { %5848 = dma.done.wait (%p6591_p2), [#allocation9], 37056  }
  0xae   : > { %5850 = vsyncadd (%p6592_p4), [#allocation9], 4294930240  ;;  %p6593_p5 = pmov %p6590_p0 }
  0xaf   : > { %p6594_p9 = pmov %p6590_p0 }
  0xb0   : > { %5852 = dma.done.wait (%p6593_p5), [#allocation12], 3120  }
  0xb1   : > { %5854 = vsyncadd (%p6594_p9), [#allocation12], 4294964176  ;;  %p6595_p10 = pmov %p6590_p0 }
  0xb2   : > { %p6596_p12 = pmov %p6590_p0 }
  0xb3   : > { %5856 = dma.done.wait (%p6595_p10), [#allocation15], 1040  }
  0xb4   : > { %5858 = vsyncadd (%p6596_p12), [#allocation15], 4294966256  ;;  %v4951_v0 = vld [vmem:[#allocation5 + $0x38] sm:$0xff]   ;;  %v4952_v1 = vld [vmem:[#allocation5 + $0x30] sm:$0xff]   ;;  %v5900_v61 = vmov 0   ;;  %vm645_vm0 = vcmask 1040384  }
  0xb5   : > { %4705 = vmatprep.subr.bf16.mxu0 %v4951_v0  ;;  %v4953_v2 = vld [vmem:[#allocation5 + $0x28] sm:$0xff]   ;;  %v4954_v3 = vld [vmem:[#allocation5 + $0x20] sm:$0xff]   ;;  %v4961_v8 = vld [vmem:[#allocation8 + $0x70] ss:$8 sps:$4 sm:$0xff]   ;;  %vm632_vm1 = vcmask 1041408   ;;  %vm5901_vm4 = vmmov 1  }
  0xb6   : > { %4706 = vmatpush3.bf16.msra.mxu0 %v4951_v0  ;;  %v502_v4 = vld [vmem:[%s6170_s17] sm:$0xff]  ;;  %v503_v5 = vld [vmem:[%s6170_s17 + $0x8] sm:$0xff]  ;;  %v4955_v10 = vld [vmem:[#allocation5 + $0x18] sm:$0xff]   ;;  %vm1123_vm7 = vcmask 1042432   ;;  %vm1110_vm9 = vcmask 1045504   ;;  %s500_s2 = scalar_lea.vmem [#allocation18], %s6166_s4 }
  0xb7   : > { %4707 = vmatprep.subr.bf16.mxu0 %v4952_v1  ;;  %v506_v6 = vpack.c.bf16 %v503_v5, %v502_v4  ;;  %v4959_v7 = vld [vmem:[#allocation8 + $0x74] ss:$8 sps:$4 sm:$0xff]   ;;  %v4962_v9 = vld [vmem:[#allocation8 + $0x64] ss:$8 sps:$4 sm:$0xff]   ;;  %v4964_v11 = vld [vmem:[#allocation8 + $0x60] ss:$8 sps:$4 sm:$0xff]  }
  0xb8   : > { %964 = vmatprep.subr.bf16.mxu1 %v4959_v7  ;;  %v4965_v12 = vld [vmem:[#allocation8 + $0x54] ss:$8 sps:$4 sm:$0xff]   ;;  %v4967_v14 = vld [vmem:[#allocation8 + $0x50] ss:$8 sps:$4 sm:$0xff]   ;;  %v4968_v15 = vld [vmem:[#allocation8 + $0x44] ss:$8 sps:$4 sm:$0xff]  }
  0xb9   : > { %4721 = vmatprep.mubr.bf16.mxu0 %v506_v6  ;;  %965 = vmatpush1.bf16.msra.mxu1 %v4961_v8  ;;  %v4956_v13 = vld [vmem:[#allocation5 + $0x10] sm:$0xff]   ;;  %v4957_v16 = vld [vmem:[#allocation5 + $0x8] sm:$0xff]   ;;  %v4958_v19 = vld [vmem:[#allocation5] sm:$0xff]   ;;  %s4032_s20 = sshll.u32 %s500_s2, 4  ;;  %s4653_s21 = sshll.u32 %s5984_s19, 9  ;;  %s6465_s20 = int_to_ptr.vmem [resolvable:$true] %s4032_s20 }
  0xba   : > { %4708 = vmatpush3.bf16.msra.mxu0 %v4952_v1  ;;  %966 = vmatprep.subr.bf16.mxu1 %v4962_v9  ;;  %v4970_v17 = vld [vmem:[#allocation8 + $0x40] ss:$8 sps:$4 sm:$0xff]   ;;  %v4971_v18 = vld [vmem:[#allocation8 + $0x34] ss:$8 sps:$4 sm:$0xff]   ;;  %v4973_v20 = vld [vmem:[#allocation8 + $0x30] ss:$8 sps:$4 sm:$0xff]   ;;  %s6472_s26 = scalar_lea.hbm %s6562_s10, %s4653_s21 }
  0xbb   : > { %4709 = vmatprep.subr.bf16.mxu0 %v4953_v2  ;;  %v504_v21 = vld [vmem:[%s6170_s17 + $0x10] sm:$0xff]  ;;  %v505_v23 = vld [vmem:[%s6170_s17 + $0x18] sm:$0xff]  ;;  %v4976_v25 = vld [vmem:[#allocation8 + $0x20] ss:$8 sps:$4 sm:$0xff]   ;;  %s4003_s29 = scalar_lea.sflag [#allocation19], %s6163_s30  ;;  %s5771_s25 = scalar_lea.vmem %s6465_s20, 512 }
  0xbc   : > { %v4974_v22 = vld [vmem:[#allocation8 + $0x24] ss:$8 sps:$4 sm:$0xff]   ;;  %v4984_v24 = vld [vmem:[#allocation8 + $0x174] ss:$8 sps:$4 sm:$0xff]   ;;  %v507_v26 = vpack.c.bf16 %v505_v23, %v504_v21  ;;  %v4979_v28 = vld [vmem:[#allocation8 + $0x10] ss:$8 sps:$4 sm:$0xff]   ;;  %p5772_p11 = scmp.ne.s32.totalorder %s6465_s20, %s5771_s25 }
  0xbd   : > { %967 = vmatpush1.bf16.msra.mxu1 %v4964_v11  ;;  %v4977_v27 = vld [vmem:[#allocation8 + $0x14] ss:$8 sps:$4 sm:$0xff]   ;;  %v4982_v29 = vld [vmem:[#allocation8 + $0x170] ss:$8 sps:$4 sm:$0xff]   ;;  %v4980_v30 = vld [vmem:[#allocation8 + $0x4] ss:$8 sps:$4 sm:$0xff]  }
  0xbe   : > { %4710 = vmatpush3.bf16.msra.mxu0 %v4953_v2  ;;  %968 = vmatprep.subr.bf16.mxu1 %v4965_v12  ;;  %v4990_v31 = vld [vmem:[#allocation8 + $0x164] ss:$8 sps:$4 sm:$0xff]   ;;  %v4988_v32 = vld [vmem:[#allocation8 + $0x160] ss:$8 sps:$4 sm:$0xff]   ;;  %v4996_v33 = vld [vmem:[#allocation8 + $0x154] ss:$8 sps:$4 sm:$0xff]  }
  0xbf   : > { %4711 = vmatprep.subr.bf16.mxu0 %v4954_v3  ;;  %v4985_v34 = vld [vmem:[#allocation8] ss:$8 sps:$4 sm:$0xff]   ;;  %v4986_v35 = vld [vmem:[#allocation8 + $0xf4] ss:$8 sps:$4 sm:$0xff]   ;;  %v4994_v36 = vld [vmem:[#allocation8 + $0x150] ss:$8 sps:$4 sm:$0xff]  }
  0xc0   : > { %v5002_v37 = vld [vmem:[#allocation8 + $0x144] ss:$8 sps:$4 sm:$0xff]   ;;  %v4991_v38 = vld [vmem:[#allocation8 + $0xf0] ss:$8 sps:$4 sm:$0xff]   ;;  %v5000_v40 = vld [vmem:[#allocation8 + $0x140] ss:$8 sps:$4 sm:$0xff]  }
  0xc1   : > { %969 = vmatpush1.bf16.msra.mxu1 %v4967_v14  ;;  %v4992_v39 = vld [vmem:[#allocation8 + $0xe4] ss:$8 sps:$4 sm:$0xff]   ;;  %v5008_v41 = vld [vmem:[#allocation8 + $0x134] ss:$8 sps:$4 sm:$0xff]   ;;  %v4997_v42 = vld [vmem:[#allocation8 + $0xe0] ss:$8 sps:$4 sm:$0xff]  }
  0xc2   : > { %4712 = vmatpush3.bf16.msra.mxu0 %v4954_v3  ;;  %970 = vmatprep.subr.bf16.mxu1 %v4968_v15  ;;  %v4998_v43 = vld [vmem:[#allocation8 + $0xd4] ss:$8 sps:$4 sm:$0xff]   ;;  %v5006_v44 = vld [vmem:[#allocation8 + $0x130] ss:$8 sps:$4 sm:$0xff]   ;;  %v5014_v45 = vld [vmem:[#allocation8 + $0x124] ss:$8 sps:$4 sm:$0xff]  }
  0xc3   : > { %4713 = vmatprep.subr.bf16.mxu0 %v4955_v10  ;;  %v5003_v46 = vld [vmem:[#allocation8 + $0xd0] ss:$8 sps:$4 sm:$0xff]   ;;  %v5004_v47 = vld [vmem:[#allocation8 + $0xc4] ss:$8 sps:$4 sm:$0xff]   ;;  %v5012_v48 = vld [vmem:[#allocation8 + $0x120] ss:$8 sps:$4 sm:$0xff]  }
  0xc4   : > { %v5009_v49 = vld [vmem:[#allocation8 + $0xc0] ss:$8 sps:$4 sm:$0xff]   ;;  %v5010_v50 = vld [vmem:[#allocation8 + $0xb4] ss:$8 sps:$4 sm:$0xff]   ;;  %v5015_v51 = vld [vmem:[#allocation8 + $0xb0] ss:$8 sps:$4 sm:$0xff]  }
  0xc5   : > { %971 = vmatpush1.bf16.msra.mxu1 %v4970_v17  ;;  %v5016_v52 = vld [vmem:[#allocation8 + $0xa4] ss:$8 sps:$4 sm:$0xff]   ;;  %v5020_v53 = vld [vmem:[#allocation8 + $0x114] ss:$8 sps:$4 sm:$0xff]   ;;  %v5018_v54 = vld [vmem:[#allocation8 + $0x110] ss:$8 sps:$4 sm:$0xff]  }
  0xc6   : > { %4714 = vmatpush3.bf16.msra.mxu0 %v4955_v10  ;;  %972 = vmatprep.subr.bf16.mxu1 %v4971_v18  ;;  %v5021_v55 = vld [vmem:[#allocation8 + $0xa0] ss:$8 sps:$4 sm:$0xff]   ;;  %v5022_v56 = vld [vmem:[#allocation8 + $0x94] ss:$8 sps:$4 sm:$0xff]   ;;  %v5026_v57 = vld [vmem:[#allocation8 + $0x104] ss:$8 sps:$4 sm:$0xff]  }
  0xc7   : > { %4715 = vmatprep.subr.bf16.mxu0 %v4956_v13  ;;  %v5024_v58 = vld [vmem:[#allocation8 + $0x100] ss:$8 sps:$4 sm:$0xff]   ;;  %v5027_v59 = vld [vmem:[#allocation8 + $0x90] ss:$8 sps:$4 sm:$0xff]   ;;  %v5028_v60 = vld [vmem:[#allocation8 + $0x84] ss:$8 sps:$4 sm:$0xff]  }
  0xc8   : > { %v5030_v62 = vld [vmem:[#allocation8 + $0x80] ss:$8 sps:$4 sm:$0xff]   ;;  %v5033_v63 = vld [vmem:[#allocation8 + $0x1f4] ss:$8 sps:$4 sm:$0xff]   ;;  %vm6207_vm2 = vmneg %vm645_vm0  ;;  %p6605_p13 = scmp.ne.s32.totalorder %s6582_s27, 0  ;;  %s5904_s11 = smov [#allocation18]  }
  0xc9   : > { %973 = vmatpush1.bf16.msra.mxu1 %v4973_v20  ;;  %v4239_v1 = vld [vmem:[#allocation7] ss:$0 sm:$0xff]  ;;  %vm4300_vm3 = vmneg %vm632_vm1  ;;  %v5031_v17 = vld [vmem:[#allocation8 + $0x1f0] ss:$8 sps:$4 sm:$0xff]   ;;  %s5775_s3 = sshll.u32 %s5904_s11, 4  ;;  %s5776_s3 = int_to_ptr.vmem [resolvable:$false] %s5775_s3 }
  0xca   : > { %4716 = vmatpush3.bf16.msra.mxu0 %v4956_v13  ;;  %974 = vmatprep.subr.bf16.mxu1 %v4974_v22  ;;  %v5036_v18 = vld [vmem:[#allocation8 + $0x1e4] ss:$8 sps:$4 sm:$0xff]   ;;  %vm6223_vm5 = vmpackc.low %vm5901_vm4, %vm6207_vm2  ;;  %p5773_p7 = pnand %p5772_p11, %p6605_p13  ;;  %s5777_s22 = scalar_lea.vmem %s5776_s3, 1024 }
  0xcb   : > { %4717 = vmatprep.subr.bf16.mxu0 %v4957_v16  ;;  %vm6230_vm6 = vmpackc.low %vm5901_vm4, %vm4300_vm3  ;;  %p5778_p1 = scmp.lt.s32.totalorder %s6465_s20, %s5776_s3  ;;  %p5779_p3 = scmp.lt.s32.totalorder %s5777_s22, %s5771_s25 }
  0xcc   : > { %vm6264_vm8 = vmneg %vm1123_vm7  ;;  %p5774_p8 = pneg %p5773_p7 }
  0xcd   : > { %975 = vmatpush1.bf16.msra.mxu1 %v4976_v25  ;;  %vm4360_vm10 = vmneg %vm1110_vm9  ;;  %p5780_p6 = por %p5779_p3, %p5778_p1 }
  0xce   : > { %4718 = vmatpush3.bf16.msra.mxu0 %v4957_v16  ;;  %976 = vmatprep.subr.bf16.mxu1 %v4977_v27  ;;  %v5034_v27 = vld [vmem:[#allocation8 + $0x1e0] ss:$8 sps:$4 sm:$0xff]   ;;  %vm4357_vm11 = vmpackc.low %vm5901_vm4, %vm6264_vm8 }
  0xcf   : > { %4719 = vmatprep.subr.bf16.mxu0 %v4958_v19  ;;  %vm4361_vm12 = vmpackc.low %vm5901_vm4, %vm4360_vm10  ;;  %p5781_p0 = pnand %p5780_p6, %p5774_p8 }
  0xd0   : > { %vm4417_vm13 = vmpackc.low %vm6207_vm2, %vm5901_vm4 }
  0xd1   : > { %977 = vmatpush1.bf16.msra.mxu1 %v4979_v28  ;;  %vm4477_vm14 = vmpackc.low %vm6264_vm8, %vm5901_vm4 }
  0xd2   : > { %4720 = vmatpush3.bf16.msra.mxu0 %v4958_v19  ;;  %978 = vmatprep.subr.bf16.mxu1 %v4980_v30 }
  0xd3   : > { %1017 = vmatprep.subr.bf16.mxu0 %v4984_v24 }
  0xd5   : > { %4722 = vmatmul.mubr.bf16.vlgmr.msra.gmra.mxu0 %v507_v26  ;;  %979 = vmatpush1.bf16.msra.mxu1 %v4985_v34 }
  0xd6   : > { %1018 = vmatpush1.bf16.msra.mxu0 %v4982_v29  ;;  %980 = vmatprep.subr.bf16.mxu1 %v4986_v35  ;;  %v5039_v29 = vld [vmem:[#allocation8 + $0x1d4] ss:$8 sps:$4 sm:$0xff]  }
  0xd7   : > { %1019 = vmatprep.subr.bf16.mxu0 %v4990_v31  ;;  %1049 = vmatprep.mubr.bf16.mxu0 %v5900_v61 }
  0xd9   : > { %981 = vmatpush2.bf16.msra.mxu1 %v4991_v38  ;;  %v5042_v38 = vld [vmem:[#allocation8 + $0x1c4] ss:$8 sps:$4 sm:$0xff]  }
  0xda   : > { %1020 = vmatpush1.bf16.msra.mxu0 %v4988_v32  ;;  %982 = vmatprep.subr.bf16.mxu1 %v4992_v39  ;;  %v5045_v39 = vld [vmem:[#allocation8 + $0x1b4] ss:$8 sps:$4 sm:$0xff]  }
  0xdb   : > { %1021 = vmatprep.subr.bf16.mxu0 %v4996_v33  ;;  %v5037_v33 = vld [vmem:[#allocation8 + $0x1d0] ss:$8 sps:$4 sm:$0xff]  }
  0xdd   : > { %983 = vmatpush2.bf16.msra.mxu1 %v4997_v42  ;;  %v5046_v42 = vld [vmem:[#allocation8 + $0x1a0] ss:$8 sps:$4 sm:$0xff]  }
  0xde   : > { %1022 = vmatpush1.bf16.msra.mxu0 %v4994_v36  ;;  %984 = vmatprep.subr.bf16.mxu1 %v4998_v43  ;;  %v5051_v43 = vld [vmem:[#allocation8 + $0x194] ss:$8 sps:$4 sm:$0xff]  }
  0xdf   : > { %1023 = vmatprep.subr.bf16.mxu0 %v5002_v37  ;;  %v5040_v37 = vld [vmem:[#allocation8 + $0x1c0] ss:$8 sps:$4 sm:$0xff]  }
  0xe1   : > { %985 = vmatpush2.bf16.msra.mxu1 %v5003_v46  ;;  %v5057_v46 = vld [vmem:[#allocation8 + $0x2f4] ss:$8 sps:$4 sm:$0xff]  }
  0xe2   : > { %1024 = vmatpush1.bf16.msra.mxu0 %v5000_v40  ;;  %986 = vmatprep.subr.bf16.mxu1 %v5004_v47  ;;  %v5043_v40 = vld [vmem:[#allocation8 + $0x1b0] ss:$8 sps:$4 sm:$0xff]   ;;  %v5052_v47 = vld [vmem:[#allocation8 + $0x180] ss:$8 sps:$4 sm:$0xff]  }
  0xe3   : > { %1025 = vmatprep.subr.bf16.mxu0 %v5008_v41  ;;  %v5048_v41 = vld [vmem:[#allocation8 + $0x1a4] ss:$8 sps:$4 sm:$0xff]  }
  0xe5   : > { %987 = vmatpush2.bf16.msra.mxu1 %v5009_v49  ;;  %v5060_v49 = vld [vmem:[#allocation8 + $0x274] ss:$8 sps:$4 sm:$0xff]  }
  0xe6   : > { %1026 = vmatpush1.bf16.msra.mxu0 %v5006_v44  ;;  %988 = vmatprep.subr.bf16.mxu1 %v5010_v50  ;;  %v5049_v44 = vld [vmem:[#allocation8 + $0x190] ss:$8 sps:$4 sm:$0xff]   ;;  %v5063_v50 = vld [vmem:[#allocation8 + $0x2e4] ss:$8 sps:$4 sm:$0xff]  }
  0xe7   : > { %1027 = vmatprep.subr.bf16.mxu0 %v5014_v45  ;;  %v5054_v45 = vld [vmem:[#allocation8 + $0x184] ss:$8 sps:$4 sm:$0xff]  }
  0xe9   : > { %989 = vmatpush2.bf16.msra.mxu1 %v5015_v51  ;;  %v5058_v51 = vld [vmem:[#allocation8 + $0x270] ss:$8 sps:$4 sm:$0xff]  }
  0xea   : > { %1028 = vmatpush1.bf16.msra.mxu0 %v5012_v48  ;;  %990 = vmatprep.subr.bf16.mxu1 %v5016_v52  ;;  %v5055_v48 = vld [vmem:[#allocation8 + $0x2f0] ss:$8 sps:$4 sm:$0xff]   ;;  %v5061_v52 = vld [vmem:[#allocation8 + $0x2e0] ss:$8 sps:$4 sm:$0xff]  }
  0xeb   : > { %1029 = vmatprep.subr.bf16.mxu0 %v5020_v53  ;;  %v5066_v53 = vld [vmem:[#allocation8 + $0x264] ss:$8 sps:$4 sm:$0xff]  }
  0xed   : > { %991 = vmatpush2.bf16.msra.mxu1 %v5021_v55  ;;  %v5064_v55 = vld [vmem:[#allocation8 + $0x260] ss:$8 sps:$4 sm:$0xff]  }
  0xee   : > { %1030 = vmatpush1.bf16.msra.mxu0 %v5018_v54  ;;  %992 = vmatprep.subr.bf16.mxu1 %v5022_v56  ;;  %v5069_v54 = vld [vmem:[#allocation8 + $0x2d4] ss:$8 sps:$4 sm:$0xff]   ;;  %v5067_v56 = vld [vmem:[#allocation8 + $0x2d0] ss:$8 sps:$4 sm:$0xff]  }
  0xef   : > { %1031 = vmatprep.subr.bf16.mxu0 %v5026_v57  ;;  %v5072_v57 = vld [vmem:[#allocation8 + $0x254] ss:$8 sps:$4 sm:$0xff]  }
  0xf1   : > { %993 = vmatpush2.bf16.msra.mxu1 %v5027_v59  ;;  %v5070_v59 = vld [vmem:[#allocation8 + $0x250] ss:$8 sps:$4 sm:$0xff]  }
  0xf2   : > { %1032 = vmatpush1.bf16.msra.mxu0 %v5024_v58  ;;  %994 = vmatprep.subr.bf16.mxu1 %v5028_v60  ;;  %v5075_v58 = vld [vmem:[#allocation8 + $0x2c4] ss:$8 sps:$4 sm:$0xff]   ;;  %v5073_v60 = vld [vmem:[#allocation8 + $0x2c0] ss:$8 sps:$4 sm:$0xff]  }
  0xf3   : > { %1444 = vmatprep.subr.bf16.mxu0 %v5033_v63  ;;  %v5081_v63 = vld [vmem:[#allocation8 + $0x2b4] ss:$8 sps:$4 sm:$0xff]  }
  0xf5   : > { %995 = vmatpush2.bf16.msra.mxu1 %v5030_v62  ;;  %v5078_v62 = vld [vmem:[#allocation8 + $0x244] ss:$8 sps:$4 sm:$0xff]  }
  0xf6   : > { %1497 = vmatprep.subr.bf16.mxu1 %v5057_v46 }
 0x195   : > { %v4723_v0 = vpop.f32.mrf.mxu0 }
 0x196   : > { %v6197_v3 = vadd.f32 %v4723_v0, %v4239_v1  ;;  %v5076_v0 = vld [vmem:[#allocation8 + $0x240] ss:$8 sps:$4 sm:$0xff]  }
 0x197   : > { %v613_v2 = vpop.f32.mrf.mxu0 }
 0x198   : > { %v6199_v4 = vadd.f32 %v4239_v1, %v613_v2  ;;  %v649_v12 = vrot.slane %v6197_v3, 7  ;;  %v636_v30 = vrot.slane %v6197_v3, 6  ;;  %v5084_v2 = vld [vmem:[#allocation8 + $0x234] ss:$8 sps:$4 sm:$0xff]  }
 0x199   : > { %v4724_v5 = vpop.f32.mrf.mxu0 }
 0x19a   : > { %v6201_v6 = vadd.f32 %v4724_v5, %v4239_v1  ;;  %v646_v9 = vrot.slane %v6199_v4, 7  ;;  %v633_v11 = vrot.slane %v6199_v4, 6  ;;  %v5087_v5 = vld [vmem:[#allocation8 + $0x2a4] ss:$8 sps:$4 sm:$0xff]  }
 0x19b   : > { %v616_v7 = vpop.f32.mrf.mxu0 }
 0x19c   : > { %v6203_v8 = vadd.f32 %v4239_v1, %v616_v7  ;;  %v651_v16 = vrot.slane %v6201_v6, 7  ;;  %v638_v31 = vrot.slane %v6201_v6, 6  ;;  %v663_v32 = vpack.c.bf16 %v6201_v6, %v6197_v3  ;;  %v5079_v1 = vld [vmem:[#allocation8 + $0x2b0] ss:$8 sps:$4 sm:$0xff]  }
 0x19d   : > { %v5082_v7 = vld [vmem:[#allocation8 + $0x230] ss:$8 sps:$4 sm:$0xff]  }
 0x19e   : > { %v660_v13 = vpack.c.bf16 %v6203_v8, %v6199_v4  ;;  %v647_v14 = vrot.slane %v6203_v8, 7  ;;  %v634_v15 = vrot.slane %v6203_v8, 6  ;;  %v652_v26 = vsel %vm645_vm0, %v649_v12, %v651_v16  ;;  %v5099_v16 = vld [vmem:[#allocation8 + $0x284] ss:$8 sps:$4 sm:$0xff]  }
 0x19f   : > { %v639_v35 = vsel %vm632_vm1, %v636_v30, %v638_v31 }
 0x1a0   : > { %1050 = vmatmul.mubr.bf16.vlgmr.msra.gmra.mxu0 %v660_v13  ;;  %v648_v19 = vsel %vm645_vm0, %v646_v9, %v647_v14  ;;  %v635_v21 = vsel %vm632_vm1, %v633_v11, %v634_v15  ;;  %v650_v22 = vsel %vm645_vm0, %v647_v14, %v649_v12  ;;  %v637_v34 = vsel %vm632_vm1, %v634_v15, %v636_v30  ;;  %v5093_v12 = vld [vmem:[#allocation8 + $0x294] ss:$8 sps:$4 sm:$0xff]   ;;  %v5088_v13 = vld [vmem:[#allocation8 + $0x220] ss:$8 sps:$4 sm:$0xff]   ;;  %v5091_v14 = vld [vmem:[#allocation8 + $0x290] ss:$8 sps:$4 sm:$0xff]  }
 0x1a1   : > { %v4298_v23 = vpack.c.bf16 %v648_v19, %v646_v9  ;;  %v4302_v25 = vpack.c.bf16 %v635_v21, %v633_v11  ;;  %1059 = vmatprep.mubr.bf16.mxu0 %v5900_v61  ;;  %1445 = vmatpush1.bf16.msra.mxu0 %v5031_v17  ;;  %v662_v28 = vpack.c.bf16 %v652_v26, %v650_v22  ;;  %v5085_v9 = vld [vmem:[#allocation8 + $0x2a0] ss:$8 sps:$4 sm:$0xff]   ;;  %v5090_v11 = vld [vmem:[#allocation8 + $0x224] ss:$8 sps:$4 sm:$0xff]   ;;  %v5096_v15 = vld [vmem:[#allocation8 + $0x214] ss:$8 sps:$4 sm:$0xff]  }
 0x1a2   : > { %1446 = vmatprep.subr.bf16.mxu0 %v5036_v18  ;;  %v661_v36 = vpack.c.bf16 %v639_v35, %v637_v34  ;;  %v5094_v17 = vld [vmem:[#allocation8 + $0x210] ss:$8 sps:$4 sm:$0xff]   ;;  %v5097_v18 = vld [vmem:[#allocation8 + $0x280] ss:$8 sps:$4 sm:$0xff]   ;;  %v5102_v19 = vld [vmem:[#allocation8 + $0x204] ss:$8 sps:$4 sm:$0xff]  }
 0x1a3   : > { %4299 = vmatprep.mubr.msk.bf16.mxu1 %vm6223_vm5, %v4298_v23  ;;  %v5100_v21 = vld [vmem:[#allocation8 + $0x200] ss:$8 sps:$4 sm:$0xff]   ;;  %v5105_v22 = vld [vmem:[#allocation8 + $0x374] ss:$8 sps:$4 sm:$0xff]   ;;  %v714_v23 = vlaneseq }
 0x1a4   : > { %4303 = vmatmul.mubr.msk.bf16.vlgmr.msra.gmra.mxu1 %vm6230_vm6, %v4302_v25 }
 0x1a5   : > { %1006 = vmatprep.mubr.bf16.mxu1 %v662_v28  ;;  %1447 = vmatpush1.bf16.msra.mxu0 %v5034_v27  ;;  %v715_v25 = vshrl.u32 %v714_v23, 7  ;;  %v712_v27 = vld [vmem:[#allocation10] sm:$0x3] }
 0x1a6   : > { %1448 = vmatprep.subr.bf16.mxu0 %v5039_v29  ;;  %1498 = vmatpush1.bf16.msra.mxu1 %v5055_v48 }
 0x1a7   : > { %1499 = vmatprep.subr.bf16.mxu1 %v5063_v50  ;;  %v6247_v26 = vsub.s32 0, %v715_v25 }
 0x1a8   : > { %1060 = vmatmul.mubr.bf16.gmra.mxu0 %v663_v32 }
 0x1a9   : > { %1449 = vmatpush1.bf16.msra.mxu0 %v5037_v33  ;;  %v717_v29 = vrot.slane %v712_v27, %v6247_v26 }
 0x1aa   : > { %1450 = vmatprep.subr.bf16.mxu0 %v5042_v38  ;;  %1500 = vmatpush1.bf16.msra.mxu1 %v5061_v52 }
 0x1ab   : > { %1501 = vmatprep.subr.bf16.mxu1 %v5069_v54 }
 0x1ac   : > { %1007 = vmatmul.mubr.bf16.gmra.mxu1 %v661_v36 }
 0x1ad   : > { %1529 = vmatprep.mubr.bf16.mxu1 %v5900_v61  ;;  %1451 = vmatpush1.bf16.msra.mxu0 %v5040_v37 }
 0x1ae   : > { %1452 = vmatprep.subr.bf16.mxu0 %v5045_v39  ;;  %1502 = vmatpush1.bf16.msra.mxu1 %v5067_v56 }
 0x1af   : > { %1503 = vmatprep.subr.bf16.mxu1 %v5075_v58 }
 0x1b1   : > { %1453 = vmatpush1.bf16.msra.mxu0 %v5043_v40 }
 0x1b2   : > { %1454 = vmatprep.subr.bf16.mxu0 %v5048_v41  ;;  %1504 = vmatpush1.bf16.msra.mxu1 %v5073_v60 }
 0x1b3   : > { %1505 = vmatprep.subr.bf16.mxu1 %v5081_v63 }
 0x1b5   : > { %1455 = vmatpush1.bf16.msra.mxu0 %v5046_v42 }
 0x1b6   : > { %1456 = vmatprep.subr.bf16.mxu0 %v5051_v43  ;;  %1506 = vmatpush1.bf16.msra.mxu1 %v5079_v1 }
 0x1b7   : > { %1507 = vmatprep.subr.bf16.mxu1 %v5087_v5 }
 0x1b9   : > { %1457 = vmatpush1.bf16.msra.mxu0 %v5049_v44 }
 0x1ba   : > { %1458 = vmatprep.subr.bf16.mxu0 %v5054_v45  ;;  %1508 = vmatpush1.bf16.msra.mxu1 %v5085_v9 }
 0x1bb   : > { %1509 = vmatprep.subr.bf16.mxu1 %v5093_v12 }
 0x1bd   : > { %1459 = vmatpush1.bf16.msra.mxu0 %v5052_v47 }
 0x1be   : > { %1460 = vmatprep.subr.bf16.mxu0 %v5060_v49  ;;  %1510 = vmatpush1.bf16.msra.mxu1 %v5091_v14 }
 0x1bf   : > { %1511 = vmatprep.subr.bf16.mxu1 %v5099_v16 }
 0x1c1   : > { %1461 = vmatpush2.bf16.msra.mxu0 %v5058_v51 }
 0x1c2   : > { %1462 = vmatprep.subr.bf16.mxu0 %v5066_v53  ;;  %1512 = vmatpush1.bf16.msra.mxu1 %v5097_v18 }
 0x1c3   : > { %1912 = vmatprep.subr.bf16.mxu1 %v5105_v22 }
 0x1c5   : > { %1463 = vmatpush2.bf16.msra.mxu0 %v5064_v55  ;;  %v6250_v55 = vsub.s32 1, %v715_v25 }
 0x1c6   : > { %1464 = vmatprep.subr.bf16.mxu0 %v5072_v57 }
 0x1c7   : > { %v721_v58 = vrot.slane %v712_v27, %v6250_v55 }
 0x1c9   : > { %1465 = vmatpush2.bf16.msra.mxu0 %v5070_v59 }
 0x1ca   : > { %1466 = vmatprep.subr.bf16.mxu0 %v5078_v62 }
 0x1cd   : > { %1467 = vmatpush2.bf16.msra.mxu0 %v5076_v0 }
 0x1ce   : > { %1468 = vmatprep.subr.bf16.mxu0 %v5084_v2 }
 0x1d1   : > { %1469 = vmatpush2.bf16.msra.mxu0 %v5082_v7 }
 0x1d2   : > { %1470 = vmatprep.subr.bf16.mxu0 %v5090_v11 }
 0x1d5   : > { %1471 = vmatpush2.bf16.msra.mxu0 %v5088_v13 }
 0x1d6   : > { %1472 = vmatprep.subr.bf16.mxu0 %v5096_v15 }
 0x1d9   : > { %1473 = vmatpush2.bf16.msra.mxu0 %v5094_v17 }
 0x1da   : > { %1474 = vmatprep.subr.bf16.mxu0 %v5102_v19 }
 0x1dd   : > { %1475 = vmatpush2.bf16.msra.mxu0 %v5100_v21 }
 0x260   : > { %v1051_v28 = vpop.f32.mrf.mxu0 }
 0x262   : > { %v1053_v30 = vpop.f32.mrf.mxu0 }
 0x264   : > { %v998_v31 = vpop.f32.mrf.mxu1  ;;  %v1055_v32 = vpop.f32.mrf.mxu0 }
 0x265   : > { %v999_v33 = vadd.f32 %v998_v31, %v717_v29 }
 0x266   : > { %v1000_v34 = vpop.f32.mrf.mxu1  ;;  %v1057_v35 = vpop.f32.mrf.mxu0 }
 0x267   : > { %v1052_v36 = vadd.f32 %v1051_v28, %v999_v33  ;;  %v1001_v62 = vadd.f32 %v1000_v34, %v721_v58 }
 0x268   : > { %v1002_v37 = vpop.f32.mrf.mxu1  ;;  %v1061_v40 = vpop.f32.mrf.mxu0 }
 0x269   : > { %v4304_v38 = vmul.f32 -1.442695, %v1052_v36  ;;  %v1003_v39 = vadd.f32 %v1002_v37, %v717_v29  ;;  %v1054_v1 = vadd.f32 %v1053_v30, %v1001_v62  ;;  %v5108_v36 = vld [vmem:[#allocation8 + $0x364] ss:$8 sps:$4 sm:$0xff]   ;;  %v5117_v62 = vld [vmem:[#allocation8 + $0x334] ss:$8 sps:$4 sm:$0xff]  }
 0x26a   : > { %v1004_v41 = vpop.f32.mrf.mxu1  ;;  %v1063_v46 = vpop.f32.mrf.mxu0 }
 0x26b   : > { %5423 = vpow2.f32 %v4304_v38  ;;  %v1056_v42 = vadd.f32 %v1055_v32, %v1003_v39  ;;  %v1005_v2 = vadd.f32 %v1004_v41, %v721_v58  ;;  %v1094_v9 = vsub.f32 %v1054_v1, %v6199_v4  ;;  %v5103_v32 = vld [vmem:[#allocation8 + $0x370] ss:$8 sps:$4 sm:$0xff]   ;;  %v5118_v1 = vld [vmem:[#allocation8 + $0x320] ss:$8 sps:$4 sm:$0xff]  }
 0x26c   : > { %v1008_v43 = vpop.f32.mrf.mxu1  ;;  %v1065_v52 = vpop.f32.mrf.mxu0 }
 0x26d   : > { %v4305_v44 = vmul.f32 -1.442695, %v1056_v42  ;;  %v1009_v45 = vadd.f32 %v1008_v43, %v717_v29  ;;  %v1058_v11 = vadd.f32 %v1057_v35, %v1005_v2  ;;  %v5123_v2 = vld [vmem:[#allocation8 + $0x314] ss:$8 sps:$4 sm:$0xff]  }
 0x26e   : > { %v1010_v47 = vpop.f32.mrf.mxu1  ;;  %v1067_v23 = vpop.f32.mrf.mxu0 }
 0x26f   : > { %5425 = vpow2.f32 %v4305_v44  ;;  %v1062_v48 = vadd.f32 %v1061_v40, %v1009_v45  ;;  %v1011_v12 = vadd.f32 %v1010_v47, %v721_v58  ;;  %v1095_v16 = vsub.f32 %v1058_v11, %v6203_v8  ;;  %v5111_v45 = vld [vmem:[#allocation8 + $0x354] ss:$8 sps:$4 sm:$0xff]  }
 0x270   : > { %v1012_v49 = vpop.f32.mrf.mxu1  ;;  %v5129_v11 = vld [vmem:[#allocation8 + $0x3f4] ss:$8 sps:$4 sm:$0xff]  }
 0x271   : > { %v4306_v50 = vmul.f32 -1.442695, %v1062_v48  ;;  %v1013_v51 = vadd.f32 %v1012_v49, %v717_v29  ;;  %v1064_v17 = vadd.f32 %v1063_v46, %v1011_v12  ;;  %v5109_v49 = vld [vmem:[#allocation8 + $0x350] ss:$8 sps:$4 sm:$0xff]  }
 0x272   : > { %v1014_v14 = vpop.f32.mrf.mxu1  ;;  %v5127_v12 = vld [vmem:[#allocation8 + $0x3f0] ss:$8 sps:$4 sm:$0xff]  }
 0x273   : > { %5427 = vpow2.f32 %v4306_v50  ;;  %v1066_v53 = vadd.f32 %v1065_v52, %v1013_v51  ;;  %v1015_v18 = vadd.f32 %v1014_v14, %v721_v58  ;;  %v1096_v27 = vsub.f32 %v1064_v17, %v6197_v3  ;;  %v5130_v14 = vld [vmem:[#allocation8 + $0x470] ss:$8 sps:$4 sm:$0xff]   ;;  %v5138_v17 = vld [vmem:[#allocation8 + $0x464] ss:$8 sps:$4 sm:$0xff]  }
 0x275   : > { %v4307_v54 = vmul.f32 -1.442695, %v1066_v53  ;;  %v1068_v28 = vadd.f32 %v1067_v23, %v1015_v18  ;;  %v5114_v53 = vld [vmem:[#allocation8 + $0x344] ss:$8 sps:$4 sm:$0xff]   ;;  %v5136_v18 = vld [vmem:[#allocation8 + $0x460] ss:$8 sps:$4 sm:$0xff]  }
 0x276   : > { %v5144_v23 = vld [vmem:[#allocation8 + $0x454] ss:$8 sps:$4 sm:$0xff]  }
 0x277   : > { %5429 = vpow2.f32 %v4307_v54  ;;  %v1097_v38 = vsub.f32 %v1068_v28, %v6201_v6  ;;  %v5147_v28 = vld [vmem:[#allocation8 + $0x3c4] ss:$8 sps:$4 sm:$0xff]  }
 0x278   : > { %v5424_v56 = vpop.eup %5423 }
 0x279   : > { %v1082_v57 = vadd.f32 1.0, %v5424_v56 }
 0x27b   : > { %5431 = vrcp.f32 %v1082_v57 }
 0x27c   : > { %v5426_v59 = vpop.eup %5425 }
 0x27d   : > { %v1083_v60 = vadd.f32 1.0, %v5426_v59 }
 0x27f   : > { %5433 = vrcp.f32 %v1083_v60  ;;  %v5112_v60 = vld [vmem:[#allocation8 + $0x340] ss:$8 sps:$4 sm:$0xff]  }
 0x280   : > { %v5428_v63 = vpop.eup %5427 }
 0x281   : > { %v1084_v0 = vadd.f32 1.0, %v5428_v63  ;;  %v5115_v63 = vld [vmem:[#allocation8 + $0x330] ss:$8 sps:$4 sm:$0xff]  }
 0x283   : > { %5435 = vrcp.f32 %v1084_v0  ;;  %v5120_v0 = vld [vmem:[#allocation8 + $0x324] ss:$8 sps:$4 sm:$0xff]  }
 0x284   : > { %v5430_v5 = vpop.eup %5429 }
 0x285   : > { %v1085_v7 = vadd.f32 1.0, %v5430_v5  ;;  %v5121_v5 = vld [vmem:[#allocation8 + $0x310] ss:$8 sps:$4 sm:$0xff]  }
 0x287   : > { %5437 = vrcp.f32 %v1085_v7  ;;  %v5126_v7 = vld [vmem:[#allocation8 + $0x304] ss:$8 sps:$4 sm:$0xff]  }
 0x288   : > { %v5432_v13 = vpop.eup %5431 }
 0x289   : > { %v1098_v15 = vmul.f32 %v5432_v13, %v1094_v9  ;;  %v5124_v9 = vld [vmem:[#allocation8 + $0x300] ss:$8 sps:$4 sm:$0xff]   ;;  %v5132_v13 = vld [vmem:[#allocation8 + $0x474] ss:$8 sps:$4 sm:$0xff]  }
 0x28a   : > { %1965 = vmatprep.subr.bf16.mxu0 %v5132_v13 }
 0x28b   : > { %v6256_v21 = vadd.f32 %v1098_v15, %v6199_v4  ;;  %v5135_v15 = vld [vmem:[#allocation8 + $0x3e4] ss:$8 sps:$4 sm:$0xff]  }
 0x28c   : > { %v5434_v19 = vpop.eup %5433 }
 0x28d   : > { %v1099_v22 = vmul.f32 %v5434_v19, %v1095_v16  ;;  %v1124_v30 = vrot.slane %v6256_v21, 5  ;;  %v1111_v4 = vrot.slane %v6256_v21, 2  ;;  %v5133_v16 = vld [vmem:[#allocation8 + $0x3e0] ss:$8 sps:$4 sm:$0xff]   ;;  %v5141_v19 = vld [vmem:[#allocation8 + $0x3d4] ss:$8 sps:$4 sm:$0xff]  }
 0x28f   : > { %v6259_v25 = vadd.f32 %v1099_v22, %v6203_v8  ;;  %v5139_v22 = vld [vmem:[#allocation8 + $0x3d0] ss:$8 sps:$4 sm:$0xff]  }
 0x290   : > { %v5436_v29 = vpop.eup %5435 }
 0x291   : > { %v1112_v33 = vrot.slane %v6259_v25, 2  ;;  %v1100_v34 = vmul.f32 %v5436_v29, %v1096_v27  ;;  %v1138_v8 = vpack.c.bf16 %v6259_v25, %v6256_v21  ;;  %v1125_v35 = vrot.slane %v6259_v25, 5  ;;  %v5142_v27 = vld [vmem:[#allocation8 + $0x450] ss:$8 sps:$4 sm:$0xff]   ;;  %v5145_v29 = vld [vmem:[#allocation8 + $0x3c0] ss:$8 sps:$4 sm:$0xff]  }
 0x293   : > { %v6275_v37 = vadd.f32 %v1100_v34, %v6197_v3  ;;  %1530 = vmatmul.mubr.bf16.vlgmr.msra.gmra.mxu1 %v1138_v8  ;;  %v1126_v39 = vsel %vm1123_vm7, %v1124_v30, %v1125_v35  ;;  %v1113_v40 = vsel %vm1110_vm9, %v1111_v4, %v1112_v33  ;;  %v5106_v3 = vld [vmem:[#allocation8 + $0x360] ss:$8 sps:$4 sm:$0xff]   ;;  %v5156_v34 = vld [vmem:[#allocation8 + $0x434] ss:$8 sps:$4 sm:$0xff]   ;;  %v5154_v8 = vld [vmem:[#allocation8 + $0x430] ss:$8 sps:$4 sm:$0xff]  }
 0x294   : > { %v5438_v41 = vpop.eup %5437  ;;  %v4358_v42 = vpack.c.bf16 %v1126_v39, %v1124_v30  ;;  %v4362_v43 = vpack.c.bf16 %v1113_v40, %v1111_v4  ;;  %1539 = vmatprep.mubr.bf16.mxu1 %v5900_v61  ;;  %1913 = vmatpush1.bf16.msra.mxu1 %v5103_v32  ;;  %v5150_v30 = vld [vmem:[#allocation8 + $0x444] ss:$8 sps:$4 sm:$0xff]   ;;  %v5148_v4 = vld [vmem:[#allocation8 + $0x440] ss:$8 sps:$4 sm:$0xff]   ;;  %v5153_v32 = vld [vmem:[#allocation8 + $0x3b4] ss:$8 sps:$4 sm:$0xff]  }
 0x295   : > { %v1101_v44 = vmul.f32 %v5438_v41, %v1097_v38  ;;  %1914 = vmatprep.subr.bf16.mxu1 %v5108_v36  ;;  %v1127_v47 = vrot.slane %v6275_v37, 5  ;;  %v1114_v48 = vrot.slane %v6275_v37, 2  ;;  %v5157_v36 = vld [vmem:[#allocation8 + $0x3a0] ss:$8 sps:$4 sm:$0xff]   ;;  %v5162_v38 = vld [vmem:[#allocation8 + $0x424] ss:$8 sps:$4 sm:$0xff]  }
 0x296   : > { %4359 = vmatprep.mubr.msk.bf16.mxu0 %vm4357_vm11, %v4358_v42  ;;  %v5160_v39 = vld [vmem:[#allocation8 + $0x420] ss:$8 sps:$4 sm:$0xff]   ;;  %v5165_v40 = vld [vmem:[#allocation8 + $0x394] ss:$8 sps:$4 sm:$0xff]   ;;  %v5163_v41 = vld [vmem:[#allocation8 + $0x390] ss:$8 sps:$4 sm:$0xff]  }
 0x297   : > { %v6286_v46 = vadd.f32 %v1101_v44, %v6201_v6  ;;  %4363 = vmatmul.mubr.msk.bf16.vlgmr.msra.gmra.mxu0 %vm4361_vm12, %v4362_v43  ;;  %v1128_v6 = vsel %vm1123_vm7, %v1125_v35, %v1127_v47  ;;  %v1115_v56 = vsel %vm1110_vm9, %v1112_v33, %v1114_v48  ;;  %v5151_v33 = vld [vmem:[#allocation8 + $0x3b0] ss:$8 sps:$4 sm:$0xff]   ;;  %v5159_v35 = vld [vmem:[#allocation8 + $0x3a4] ss:$8 sps:$4 sm:$0xff]   ;;  %v5168_v42 = vld [vmem:[#allocation8 + $0x414] ss:$8 sps:$4 sm:$0xff]  }
 0x298   : > { %1915 = vmatpush1.bf16.msra.mxu1 %v5106_v3  ;;  %1966 = vmatpush1.bf16.msra.mxu0 %v5130_v14  ;;  %v5166_v43 = vld [vmem:[#allocation8 + $0x410] ss:$8 sps:$4 sm:$0xff]   ;;  %v5171_v3 = vld [vmem:[#allocation8 + $0x384] ss:$8 sps:$4 sm:$0xff]   ;;  %v5169_v44 = vld [vmem:[#allocation8 + $0x380] ss:$8 sps:$4 sm:$0xff]  }
 0x299   : > { %v1141_v50 = vpack.c.bf16 %v6286_v46, %v6275_v37  ;;  %v1129_v51 = vrot.slane %v6286_v46, 5  ;;  %v1116_v52 = vrot.slane %v6286_v46, 2  ;;  %1916 = vmatprep.subr.bf16.mxu1 %v5111_v45  ;;  %1967 = vmatprep.subr.bf16.mxu0 %v5138_v17  ;;  %v5174_v45 = vld [vmem:[#allocation8 + $0x404] ss:$8 sps:$4 sm:$0xff]  }
 0x29b   : > { %1540 = vmatmul.mubr.bf16.gmra.mxu1 %v1141_v50  ;;  %v1130_v54 = vsel %vm1123_vm7, %v1127_v47, %v1129_v51  ;;  %v1117_v57 = vsel %vm1110_vm9, %v1114_v48, %v1116_v52  ;;  %v5172_v47 = vld [vmem:[#allocation8 + $0x400] ss:$8 sps:$4 sm:$0xff]   ;;  %v5177_v48 = vld [vmem:[#allocation8 + $0x4f4] ss:$8 sps:$4 sm:$0xff]  }
 0x29c   : > { %v1140_v58 = vpack.c.bf16 %v1130_v54, %v1128_v6  ;;  %v1139_v59 = vpack.c.bf16 %v1117_v57, %v1115_v56  ;;  %1917 = vmatpush1.bf16.msra.mxu1 %v5109_v49  ;;  %1968 = vmatpush1.bf16.msra.mxu0 %v5136_v18  ;;  %v1192_v49 = vld [vmem:[#allocation10 + $0x2] sm:$0x3] }
 0x29d   : > { %1918 = vmatprep.subr.bf16.mxu1 %v5114_v53  ;;  %1969 = vmatprep.subr.bf16.mxu0 %v5144_v23  ;;  %v1197_v51 = vrot.slane %v1192_v49, %v6247_v26  ;;  %v1201_v23 = vrot.slane %v1192_v49, %v6250_v55 }
 0x29e   : > { %1486 = vmatprep.mubr.bf16.mxu0 %v1140_v58 }
 0x29f   : > { %1487 = vmatmul.mubr.bf16.gmra.mxu0 %v1139_v59 }
 0x2a0   : > { %1919 = vmatpush1.bf16.msra.mxu1 %v5112_v60  ;;  %1997 = vmatprep.mubr.bf16.mxu0 %v5900_v61 }
 0x2a1   : > { %1920 = vmatprep.subr.bf16.mxu1 %v5117_v62  ;;  %1970 = vmatpush1.bf16.msra.mxu0 %v5142_v27 }
 0x2a2   : > { %1971 = vmatprep.subr.bf16.mxu0 %v5150_v30 }
 0x2a4   : > { %1921 = vmatpush1.bf16.msra.mxu1 %v5115_v63 }
 0x2a5   : > { %1922 = vmatprep.subr.bf16.mxu1 %v5120_v0  ;;  %1972 = vmatpush1.bf16.msra.mxu0 %v5148_v4 }
 0x2a6   : > { %1973 = vmatprep.subr.bf16.mxu0 %v5156_v34 }
 0x2a8   : > { %1923 = vmatpush1.bf16.msra.mxu1 %v5118_v1 }
 0x2a9   : > { %1924 = vmatprep.subr.bf16.mxu1 %v5123_v2  ;;  %1974 = vmatpush1.bf16.msra.mxu0 %v5154_v8 }
 0x2aa   : > { %1975 = vmatprep.subr.bf16.mxu0 %v5162_v38 }
 0x2ac   : > { %1925 = vmatpush1.bf16.msra.mxu1 %v5121_v5 }
 0x2ad   : > { %1926 = vmatprep.subr.bf16.mxu1 %v5126_v7  ;;  %1976 = vmatpush1.bf16.msra.mxu0 %v5160_v39 }
 0x2ae   : > { %1977 = vmatprep.subr.bf16.mxu0 %v5168_v42 }
 0x2b0   : > { %1927 = vmatpush1.bf16.msra.mxu1 %v5124_v9 }
 0x2b1   : > { %1928 = vmatprep.subr.bf16.mxu1 %v5129_v11  ;;  %1978 = vmatpush1.bf16.msra.mxu0 %v5166_v43 }
 0x2b2   : > { %1979 = vmatprep.subr.bf16.mxu0 %v5174_v45 }
 0x2b4   : > { %1929 = vmatpush2.bf16.msra.mxu1 %v5127_v12 }
 0x2b5   : > { %1930 = vmatprep.subr.bf16.mxu1 %v5135_v15  ;;  %1980 = vmatpush1.bf16.msra.mxu0 %v5172_v47 }
 0x2b6   : > { %2363 = vmatprep.subr.bf16.mxu0 %v5177_v48 }
 0x2b8   : > { %1931 = vmatpush2.bf16.msra.mxu1 %v5133_v16 }
 0x2b9   : > { %1932 = vmatprep.subr.bf16.mxu1 %v5141_v19 }
 0x2bc   : > { %1933 = vmatpush2.bf16.msra.mxu1 %v5139_v22 }
 0x2bd   : > { %1934 = vmatprep.subr.bf16.mxu1 %v5147_v28 }
 0x2c0   : > { %1935 = vmatpush2.bf16.msra.mxu1 %v5145_v29 }
 0x2c1   : > { %1936 = vmatprep.subr.bf16.mxu1 %v5153_v32 }
 0x2c4   : > { %1937 = vmatpush2.bf16.msra.mxu1 %v5151_v33 }
 0x2c5   : > { %1938 = vmatprep.subr.bf16.mxu1 %v5159_v35 }
 0x2c8   : > { %1939 = vmatpush2.bf16.msra.mxu1 %v5157_v36 }
 0x2c9   : > { %1940 = vmatprep.subr.bf16.mxu1 %v5165_v40 }
 0x2cc   : > { %1941 = vmatpush2.bf16.msra.mxu1 %v5163_v41 }
 0x2cd   : > { %1942 = vmatprep.subr.bf16.mxu1 %v5171_v3 }
 0x2d0   : > { %1943 = vmatpush2.bf16.msra.mxu1 %v5169_v44 }
 0x353   : > { %v1531_v50 = vpop.f32.mrf.mxu1 }
 0x355   : > { %v1533_v52 = vpop.f32.mrf.mxu1 }
 0x357   : > { %v1478_v53 = vpop.f32.mrf.mxu0  ;;  %v1535_v6 = vpop.f32.mrf.mxu1 }
 0x358   : > { %v1479_v54 = vadd.f32 %v1478_v53, %v1197_v51 }
 0x359   : > { %v1480_v56 = vpop.f32.mrf.mxu0  ;;  %v1537_v57 = vpop.f32.mrf.mxu1 }
 0x35a   : > { %v1532_v58 = vadd.f32 %v1531_v50, %v1479_v54  ;;  %v1481_v29 = vadd.f32 %v1480_v56, %v1201_v23  ;;  %v5175_v54 = vld [vmem:[#allocation8 + $0x4f0] ss:$8 sps:$4 sm:$0xff]  }
 0x35b   : > { %v1482_v59 = vpop.f32.mrf.mxu0  ;;  %v1541_v63 = vpop.f32.mrf.mxu1 }
 0x35c   : > { %v4364_v60 = vmul.f32 -1.442695, %v1532_v58  ;;  %v1483_v62 = vadd.f32 %v1482_v59, %v1197_v51  ;;  %v1534_v32 = vadd.f32 %v1533_v52, %v1481_v29  ;;  %v5902_v52 = vmov 0.0   ;;  %v5180_v58 = vld [vmem:[#allocation8 + $0x4e4] ss:$8 sps:$4 sm:$0xff]  }
 0x35d   : > { %v1484_v0 = vpop.f32.mrf.mxu0  ;;  %v1543_v9 = vpop.f32.mrf.mxu1  ;;  %v5903_v59 = vmov 0.0|0.0   ;;  %v5198_v29 = vld [vmem:[#allocation8 + $0x484] ss:$8 sps:$4 sm:$0xff]  }
 0x35e   : > { %5439 = vpow2.f32 %v4364_v60  ;;  %v1536_v1 = vadd.f32 %v1535_v6, %v1483_v62  ;;  %v1485_v33 = vadd.f32 %v1484_v0, %v1201_v23  ;;  %v1574_v35 = vsub.f32 %v1534_v32, %v6256_v21  ;;  %v5199_v32 = vld [vmem:[#allocation8 + $0x570] ss:$8 sps:$4 sm:$0xff]  }
 0x35f   : > { %v1488_v2 = vpop.f32.mrf.mxu0  ;;  %v1545_v16 = vpop.f32.mrf.mxu1 }
 0x360   : > { %v4365_v5 = vmul.f32 -1.442695, %v1536_v1  ;;  %v1489_v7 = vadd.f32 %v1488_v2, %v1197_v51  ;;  %v1538_v36 = vadd.f32 %v1537_v57, %v1485_v33  ;;  %v5178_v1 = vld [vmem:[#allocation8 + $0x4e0] ss:$8 sps:$4 sm:$0xff]   ;;  %v5204_v33 = vld [vmem:[#allocation8 + $0x564] ss:$8 sps:$4 sm:$0xff]  }
 0x361   : > { %v1490_v11 = vpop.f32.mrf.mxu0  ;;  %v1547_v49 = vpop.f32.mrf.mxu1 }
 0x362   : > { %5441 = vpow2.f32 %v4365_v5  ;;  %v1542_v12 = vadd.f32 %v1541_v63, %v1489_v7  ;;  %v1491_v38 = vadd.f32 %v1490_v11, %v1201_v23  ;;  %v1575_v43 = vsub.f32 %v1538_v36, %v6259_v25  ;;  %v5183_v7 = vld [vmem:[#allocation8 + $0x4d4] ss:$8 sps:$4 sm:$0xff]  }
 0x363   : > { %v1492_v13 = vpop.f32.mrf.mxu0  ;;  %v5210_v36 = vld [vmem:[#allocation8 + $0x554] ss:$8 sps:$4 sm:$0xff]  }
 0x364   : > { %v4366_v14 = vmul.f32 -1.442695, %v1542_v12  ;;  %v1493_v15 = vadd.f32 %v1492_v13, %v1197_v51  ;;  %v1544_v3 = vadd.f32 %v1543_v9, %v1491_v38  ;;  %v5208_v38 = vld [vmem:[#allocation8 + $0x550] ss:$8 sps:$4 sm:$0xff]  }
 0x365   : > { %v1494_v40 = vpop.f32.mrf.mxu0 }
 0x366   : > { %5443 = vpow2.f32 %v4366_v14  ;;  %v1546_v17 = vadd.f32 %v1545_v16, %v1493_v15  ;;  %v1495_v44 = vadd.f32 %v1494_v40, %v1201_v23  ;;  %v1576_v51 = vsub.f32 %v1544_v3, %v6275_v37  ;;  %v5181_v14 = vld [vmem:[#allocation8 + $0x4d0] ss:$8 sps:$4 sm:$0xff]   ;;  %v5190_v23 = vld [vmem:[#allocation8 + $0x4a0] ss:$8 sps:$4 sm:$0xff]   ;;  %v5219_v3 = vld [vmem:[#allocation8 + $0x5d4] ss:$8 sps:$4 sm:$0xff]  }
 0x367   : > { %v5211_v40 = vld [vmem:[#allocation8 + $0x5e0] ss:$8 sps:$4 sm:$0xff]  }
 0x368   : > { %v4367_v18 = vmul.f32 -1.442695, %v1546_v17  ;;  %v5186_v17 = vld [vmem:[#allocation8 + $0x4c4] ss:$8 sps:$4 sm:$0xff]  }
 0x36a   : > { %5445 = vpow2.f32 %v4367_v18  ;;  %v5184_v18 = vld [vmem:[#allocation8 + $0x4c0] ss:$8 sps:$4 sm:$0xff]  }
 0x36b   : > { %v5440_v19 = vpop.eup %5439 }
 0x36c   : > { %v1562_v22 = vadd.f32 1.0, %v5440_v19  ;;  %v5187_v19 = vld [vmem:[#allocation8 + $0x4b0] ss:$8 sps:$4 sm:$0xff]  }
 0x36e   : > { %5447 = vrcp.f32 %v1562_v22  ;;  %v5192_v22 = vld [vmem:[#allocation8 + $0x4a4] ss:$8 sps:$4 sm:$0xff]  }
 0x36f   : > { %v5442_v27 = vpop.eup %5441 }
 0x370   : > { %v1563_v28 = vadd.f32 1.0, %v5442_v27  ;;  %v5195_v27 = vld [vmem:[#allocation8 + $0x494] ss:$8 sps:$4 sm:$0xff]  }
 0x372   : > { %5449 = vrcp.f32 %v1563_v28  ;;  %v5193_v28 = vld [vmem:[#allocation8 + $0x490] ss:$8 sps:$4 sm:$0xff]  }
 0x373   : > { %v5444_v30 = vpop.eup %5443 }
 0x374   : > { %v1564_v4 = vadd.f32 1.0, %v5444_v30  ;;  %v5196_v30 = vld [vmem:[#allocation8 + $0x480] ss:$8 sps:$4 sm:$0xff]  }
 0x376   : > { %5451 = vrcp.f32 %v1564_v4  ;;  %v5201_v4 = vld [vmem:[#allocation8 + $0x574] ss:$8 sps:$4 sm:$0xff]  }
 0x377   : > { %v5446_v34 = vpop.eup %5445 }
 0x378   : > { %v1565_v8 = vadd.f32 1.0, %v5446_v34  ;;  %v5202_v34 = vld [vmem:[#allocation8 + $0x560] ss:$8 sps:$4 sm:$0xff]  }
 0x37a   : > { %5453 = vrcp.f32 %v1565_v8  ;;  %v5207_v8 = vld [vmem:[#allocation8 + $0x5f4] ss:$8 sps:$4 sm:$0xff]  }
 0x37b   : > { %v5448_v39 = vpop.eup %5447  ;;  %2416 = vmatprep.subr.bf16.mxu1 %v5207_v8 }
 0x37c   : > { %v1578_v41 = vmul.f32 %v5448_v39, %v1574_v35  ;;  %v5205_v35 = vld [vmem:[#allocation8 + $0x5f0] ss:$8 sps:$4 sm:$0xff]   ;;  %v5213_v39 = vld [vmem:[#allocation8 + $0x5e4] ss:$8 sps:$4 sm:$0xff]  }
 0x37e   : > { %v6303_v42 = vadd.f32 %v1578_v41, %v6256_v21  ;;  %v1548_v21 = vadd.f32 %v1547_v49, %v1495_v44  ;;  %v5216_v41 = vld [vmem:[#allocation8 + $0x544] ss:$8 sps:$4 sm:$0xff]   ;;  %v5217_v44 = vld [vmem:[#allocation8 + $0x5d0] ss:$8 sps:$4 sm:$0xff]   ;;  %v5223_v49 = vld [vmem:[#allocation8 + $0x5c0] ss:$8 sps:$4 sm:$0xff]  }
 0x37f   : > { %v5450_v45 = vpop.eup %5449 }
 0x380   : > { %v1579_v47 = vmul.f32 %v5450_v45, %v1575_v43  ;;  %v1595_v48 = vrot.slane %v6303_v42, 7  ;;  %v1577_v60 = vsub.f32 %v1548_v21, %v6286_v46  ;;  %v1588_v0 = vrot.slane %v6303_v42, 6  ;;  %v5214_v43 = vld [vmem:[#allocation8 + $0x540] ss:$8 sps:$4 sm:$0xff]   ;;  %v5222_v45 = vld [vmem:[#allocation8 + $0x534] ss:$8 sps:$4 sm:$0xff]  }
 0x381   : > { %v5226_v21 = vld [vmem:[#allocation8 + $0x520] ss:$8 sps:$4 sm:$0xff]  }
 0x382   : > { %v6311_v50 = vadd.f32 %v1579_v47, %v6259_v25  ;;  %v4418_v53 = vpack.c.bf16 %v1595_v48, %v5902_v52  ;;  %v5220_v47 = vld [vmem:[#allocation8 + $0x530] ss:$8 sps:$4 sm:$0xff]  }
 0x383   : > { %v5452_v6 = vpop.eup %5451 }
 0x384   : > { %v1580_v56 = vmul.f32 %v5452_v6, %v1576_v51  ;;  %4419 = vmatprep.mubr.msk.bf16.mxu1 %vm4417_vm13, %v4418_v53  ;;  %v1606_v57 = vpack.c.bf16 %v6311_v50, %v6303_v42  ;;  %v1589_v10 = vrot.slane %v6311_v50, 6  ;;  %v1596_v62 = vrot.slane %v6311_v50, 7  ;;  %v5228_v51 = vld [vmem:[#allocation8 + $0x524] ss:$8 sps:$4 sm:$0xff]   ;;  %v5231_v53 = vld [vmem:[#allocation8 + $0x5b4] ss:$8 sps:$4 sm:$0xff]  }
 0x385   : > { %1945 = vmatmul.mubr.bf16.vlgmr.msra.gmra.mxu1 %v5903_v59  ;;  %v5229_v6 = vld [vmem:[#allocation8 + $0x5b0] ss:$8 sps:$4 sm:$0xff]  }
 0x386   : > { %v6320_v25 = vadd.f32 %v1580_v56, %v6275_v37  ;;  %1998 = vmatmul.mubr.bf16.vlgmr.msra.gmra.mxu0 %v1606_v57  ;;  %v1590_v37 = vsel %vm632_vm1, %v1588_v0, %v1589_v10  ;;  %v1597_v9 = vsel %vm645_vm0, %v1595_v48, %v1596_v62  ;;  %2417 = vmatpush1.bf16.msra.mxu1 %v5205_v35  ;;  %v5225_v48 = vld [vmem:[#allocation8 + $0x5c4] ss:$8 sps:$4 sm:$0xff]   ;;  %v5232_v56 = vld [vmem:[#allocation8 + $0x510] ss:$8 sps:$4 sm:$0xff]  }
 0x387   : > { %v5454_v63 = vpop.eup %5453  ;;  %2007 = vmatprep.mubr.bf16.mxu0 %v5900_v61  ;;  %2364 = vmatpush1.bf16.msra.mxu0 %v5175_v54  ;;  %v4422_v15 = vpack.c.bf16 %v1590_v37, %v1588_v0  ;;  %v5234_v54 = vld [vmem:[#allocation8 + $0x514] ss:$8 sps:$4 sm:$0xff]   ;;  %v5237_v57 = vld [vmem:[#allocation8 + $0x5a4] ss:$8 sps:$4 sm:$0xff]  }
 0x388   : > { %v1581_v2 = vmul.f32 %v5454_v63, %v1577_v60  ;;  %v1598_v5 = vrot.slane %v6320_v25, 7  ;;  %2365 = vmatprep.subr.bf16.mxu0 %v5180_v58  ;;  %2418 = vmatprep.subr.bf16.mxu1 %v5213_v39  ;;  %v5235_v58 = vld [vmem:[#allocation8 + $0x5a0] ss:$8 sps:$4 sm:$0xff]   ;;  %v5240_v10 = vld [vmem:[#allocation8 + $0x504] ss:$8 sps:$4 sm:$0xff]  }
 0x389   : > { %v5238_v60 = vld [vmem:[#allocation8 + $0x500] ss:$8 sps:$4 sm:$0xff]   ;;  %v5241_v63 = vld [vmem:[#allocation8 + $0x590] ss:$8 sps:$4 sm:$0xff]   ;;  %v5246_v0 = vld [vmem:[#allocation8 + $0x584] ss:$8 sps:$4 sm:$0xff]  }
 0x38a   : > { %v1599_v11 = vsel %vm645_vm0, %v1596_v62, %v1598_v5  ;;  %v6331_v12 = vadd.f32 %v1581_v2, %v6286_v46  ;;  %v5189_v46 = vld [vmem:[#allocation8 + $0x4b4] ss:$8 sps:$4 sm:$0xff]   ;;  %2419 = vmatpush1.bf16.msra.mxu1 %v5211_v40  ;;  %v1660_v5 = vld [vmem:[#allocation10 + $0x4] sm:$0x3] }
 0x38b   : > { %v1608_v13 = vpack.c.bf16 %v1599_v11, %v1597_v9  ;;  %2366 = vmatpush1.bf16.msra.mxu0 %v5178_v1  ;;  %2420 = vmatprep.subr.bf16.mxu1 %v5219_v3  ;;  %v5243_v62 = vld [vmem:[#allocation8 + $0x594] ss:$8 sps:$4 sm:$0xff]   ;;  %v5244_v1 = vld [vmem:[#allocation8 + $0x580] ss:$8 sps:$4 sm:$0xff]  }
 0x38c   : > { %v1609_v16 = vpack.c.bf16 %v6331_v12, %v6320_v25  ;;  %2367 = vmatprep.subr.bf16.mxu0 %v5183_v7  ;;  %v5249_v2 = vld [vmem:[#allocation8 + $0x674] ss:$8 sps:$4 sm:$0xff]   ;;  %v1665_v7 = vrot.slane %v1660_v5, %v6247_v26 }
 0x38d   : > { %1954 = vmatprep.mubr.bf16.mxu1 %v1608_v13 }
 0x38e   : > { %4423 = vmatmul.mubr.msk.bf16.gmra.mxu1 %vm6230_vm6, %v4422_v15  ;;  %2008 = vmatmul.mubr.bf16.gmra.mxu0 %v1609_v16 }
 0x38f   : > { %2368 = vmatpush1.bf16.msra.mxu0 %v5181_v14  ;;  %2395 = vmatprep.mubr.bf16.mxu0 %v5903_v59 }
 0x390   : > { %2369 = vmatprep.subr.bf16.mxu0 %v5186_v17  ;;  %2448 = vmatprep.mubr.bf16.mxu1 %v5900_v61 }
 0x391   : > { %2421 = vmatpush1.bf16.msra.mxu1 %v5217_v44 }
 0x392   : > { %2422 = vmatprep.subr.bf16.mxu1 %v5225_v48 }
 0x393   : > { %2370 = vmatpush1.bf16.msra.mxu0 %v5184_v18 }
 0x394   : > { %2371 = vmatprep.subr.bf16.mxu0 %v5189_v46 }
 0x395   : > { %2423 = vmatpush1.bf16.msra.mxu1 %v5223_v49 }
 0x396   : > { %2424 = vmatprep.subr.bf16.mxu1 %v5231_v53 }
 0x397   : > { %2372 = vmatpush1.bf16.msra.mxu0 %v5187_v19 }
 0x398   : > { %2373 = vmatprep.subr.bf16.mxu0 %v5192_v22 }
 0x399   : > { %2425 = vmatpush1.bf16.msra.mxu1 %v5229_v6 }
 0x39a   : > { %2426 = vmatprep.subr.bf16.mxu1 %v5237_v57 }
 0x39b   : > { %2374 = vmatpush1.bf16.msra.mxu0 %v5190_v23 }
 0x39c   : > { %2375 = vmatprep.subr.bf16.mxu0 %v5195_v27 }
 0x39d   : > { %2427 = vmatpush1.bf16.msra.mxu1 %v5235_v58 }
 0x39e   : > { %2428 = vmatprep.subr.bf16.mxu1 %v5243_v62 }
 0x39f   : > { %2376 = vmatpush1.bf16.msra.mxu0 %v5193_v28 }
 0x3a0   : > { %2377 = vmatprep.subr.bf16.mxu0 %v5198_v29 }
 0x3a1   : > { %2429 = vmatpush1.bf16.msra.mxu1 %v5241_v63 }
 0x3a2   : > { %2430 = vmatprep.subr.bf16.mxu1 %v5246_v0 }
 0x3a3   : > { %2378 = vmatpush1.bf16.msra.mxu0 %v5196_v30 }
 0x3a4   : > { %2379 = vmatprep.subr.bf16.mxu0 %v5201_v4 }
 0x3a5   : > { %2431 = vmatpush1.bf16.msra.mxu1 %v5244_v1 }
 0x3a6   : > { %2841 = vmatprep.subr.bf16.mxu1 %v5249_v2 }
 0x3a7   : > { %2380 = vmatpush2.bf16.msra.mxu0 %v5199_v32 }
 0x3a8   : > { %2381 = vmatprep.subr.bf16.mxu0 %v5204_v33 }
 0x3ab   : > { %2382 = vmatpush2.bf16.msra.mxu0 %v5202_v34 }
 0x3ac   : > { %2383 = vmatprep.subr.bf16.mxu0 %v5210_v36 }
 0x3af   : > { %2384 = vmatpush2.bf16.msra.mxu0 %v5208_v38 }
 0x3b0   : > { %2385 = vmatprep.subr.bf16.mxu0 %v5216_v41 }
 0x3b3   : > { %2386 = vmatpush2.bf16.msra.mxu0 %v5214_v43  ;;  %v1669_v43 = vrot.slane %v1660_v5, %v6250_v55 }
 0x3b4   : > { %2387 = vmatprep.subr.bf16.mxu0 %v5222_v45 }
 0x3b7   : > { %2388 = vmatpush2.bf16.msra.mxu0 %v5220_v47 }
 0x3b8   : > { %2389 = vmatprep.subr.bf16.mxu0 %v5228_v51 }
 0x3bb   : > { %2390 = vmatpush2.bf16.msra.mxu0 %v5226_v21 }
 0x3bc   : > { %2391 = vmatprep.subr.bf16.mxu0 %v5234_v54 }
 0x3bf   : > { %2392 = vmatpush2.bf16.msra.mxu0 %v5232_v56 }
 0x3c0   : > { %2393 = vmatprep.subr.bf16.mxu0 %v5240_v10 }
 0x3c3   : > { %2394 = vmatpush2.bf16.msra.mxu0 %v5238_v60 }
 0x3c6   : > { %2396 = vmatmul.mubr.bf16.vlgmr.msra.gmra.mxu0 %v5903_v59 }
 0x445   : > { %v1946_v37 = vpop.f32.mrf.mxu1 }
 0x446   : > { %v1947_v9 = vadd.f32 %v1946_v37, %v1665_v7  ;;  %v1999_v11 = vpop.f32.mrf.mxu0 }
 0x447   : > { %v1948_v13 = vpop.f32.mrf.mxu1 }
 0x448   : > { %v2000_v14 = vadd.f32 %v1999_v11, %v1947_v9  ;;  %v2001_v15 = vpop.f32.mrf.mxu0  ;;  %v1949_v45 = vadd.f32 %v1948_v13, %v1669_v43  ;;  %v5247_v11 = vld [vmem:[#allocation8 + $0x670] ss:$8 sps:$4 sm:$0xff]  }
 0x449   : > { %v1950_v16 = vpop.f32.mrf.mxu1 }
 0x44a   : > { %v4424_v17 = vmul.f32 -1.442695, %v2000_v14  ;;  %v1951_v18 = vadd.f32 %v1950_v16, %v1665_v7  ;;  %v2003_v46 = vpop.f32.mrf.mxu0  ;;  %v2002_v49 = vadd.f32 %v2001_v15, %v1949_v45  ;;  %v5252_v15 = vld [vmem:[#allocation8 + $0x664] ss:$8 sps:$4 sm:$0xff]   ;;  %v5288_v45 = vld [vmem:[#allocation8 + $0x6d4] ss:$8 sps:$4 sm:$0xff]  }
 0x44b   : > { %v1952_v19 = vpop.f32.mrf.mxu1 }
 0x44c   : > { %5455 = vpow2.f32 %v4424_v17  ;;  %v2004_v22 = vadd.f32 %v2003_v46, %v1951_v18  ;;  %v2005_v23 = vpop.f32.mrf.mxu0  ;;  %v1953_v51 = vadd.f32 %v1952_v19, %v1669_v43  ;;  %v2042_v6 = vsub.f32 %v2002_v49, %v6303_v42  ;;  %v5255_v18 = vld [vmem:[#allocation8 + $0x654] ss:$8 sps:$4 sm:$0xff]   ;;  %v5289_v49 = vld [vmem:[#allocation8 + $0x740] ss:$8 sps:$4 sm:$0xff]  }
 0x44e   : > { %v4425_v27 = vmul.f32 -1.442695, %v2004_v22  ;;  %v1956_v28 = vpop.f32.mrf.mxu1  ;;  %v2009_v29 = vpop.f32.mrf.mxu0  ;;  %v2006_v54 = vadd.f32 %v2005_v23, %v1953_v51  ;;  %v5294_v51 = vld [vmem:[#allocation8 + $0x6c4] ss:$8 sps:$4 sm:$0xff]  }
 0x44f   : > { %v1957_v30 = vadd.f32 %v1956_v28, %v1665_v7  ;;  %v5256_v28 = vld [vmem:[#allocation8 + $0x640] ss:$8 sps:$4 sm:$0xff]  }
 0x450   : > { %5457 = vpow2.f32 %v4425_v27  ;;  %v1958_v4 = vpop.f32.mrf.mxu1  ;;  %v2011_v32 = vpop.f32.mrf.mxu0  ;;  %v2043_v62 = vsub.f32 %v2006_v54, %v6311_v50  ;;  %v5258_v27 = vld [vmem:[#allocation8 + $0x644] ss:$8 sps:$4 sm:$0xff]   ;;  %v5300_v54 = vld [vmem:[#allocation8 + $0x6b4] ss:$8 sps:$4 sm:$0xff]  }
 0x451   : > { %v2010_v33 = vadd.f32 %v2009_v29, %v1957_v30  ;;  %v1959_v10 = vadd.f32 %v1958_v4, %v1669_v43  ;;  %v5261_v29 = vld [vmem:[#allocation8 + $0x634] ss:$8 sps:$4 sm:$0xff]   ;;  %v5259_v30 = vld [vmem:[#allocation8 + $0x630] ss:$8 sps:$4 sm:$0xff]   ;;  %v5262_v4 = vld [vmem:[#allocation8 + $0x620] ss:$8 sps:$4 sm:$0xff]  }
 0x452   : > { %v1960_v34 = vpop.f32.mrf.mxu1  ;;  %v2013_v36 = vpop.f32.mrf.mxu0 }
 0x453   : > { %v4426_v8 = vmul.f32 -1.442695, %v2010_v33  ;;  %v1961_v35 = vadd.f32 %v1960_v34, %v1665_v7  ;;  %v2012_v5 = vadd.f32 %v2011_v32, %v1959_v10  ;;  %v5265_v32 = vld [vmem:[#allocation8 + $0x610] ss:$8 sps:$4 sm:$0xff]   ;;  %v5270_v33 = vld [vmem:[#allocation8 + $0x604] ss:$8 sps:$4 sm:$0xff]  }
 0x454   : > { %v1962_v58 = vpop.f32.mrf.mxu1  ;;  %v2015_v37 = vpop.f32.mrf.mxu0  ;;  %v5273_v34 = vld [vmem:[#allocation8 + $0x774] ss:$8 sps:$4 sm:$0xff]   ;;  %v5306_v10 = vld [vmem:[#allocation8 + $0x6a4] ss:$8 sps:$4 sm:$0xff]  }
 0x455   : > { %5459 = vpow2.f32 %v4426_v8  ;;  %v2014_v38 = vadd.f32 %v2013_v36, %v1961_v35  ;;  %v1963_v0 = vadd.f32 %v1962_v58, %v1669_v43  ;;  %v2044_v16 = vsub.f32 %v2012_v5, %v6320_v25  ;;  %v5268_v8 = vld [vmem:[#allocation8 + $0x600] ss:$8 sps:$4 sm:$0xff]   ;;  %v5271_v35 = vld [vmem:[#allocation8 + $0x770] ss:$8 sps:$4 sm:$0xff]   ;;  %2894 = vmatprep.subr.bf16.mxu0 %v5273_v34  ;;  %v5276_v36 = vld [vmem:[#allocation8 + $0x6f4] ss:$8 sps:$4 sm:$0xff]  }
 0x456   : > { %2895 = vmatpush1.bf16.msra.mxu0 %v5271_v35  ;;  %v5285_v43 = vld [vmem:[#allocation8 + $0x754] ss:$8 sps:$4 sm:$0xff]   ;;  %v5301_v58 = vld [vmem:[#allocation8 + $0x720] ss:$8 sps:$4 sm:$0xff]   ;;  %v5310_v5 = vld [vmem:[#allocation8 + $0x690] ss:$8 sps:$4 sm:$0xff]  }
 0x457   : > { %v4427_v39 = vmul.f32 -1.442695, %v2014_v38  ;;  %v5279_v38 = vld [vmem:[#allocation8 + $0x764] ss:$8 sps:$4 sm:$0xff]  }
 0x458   : > { %2896 = vmatprep.subr.bf16.mxu0 %v5279_v38 }
 0x459   : > { %v5456_v40 = vpop.eup %5455  ;;  %5461 = vpow2.f32 %v4427_v39  ;;  %v5274_v39 = vld [vmem:[#allocation8 + $0x6f0] ss:$8 sps:$4 sm:$0xff]  }
 0x45a   : > { %v2030_v41 = vadd.f32 1.0, %v5456_v40  ;;  %v5277_v40 = vld [vmem:[#allocation8 + $0x760] ss:$8 sps:$4 sm:$0xff]  }
 0x45b   : > { %2897 = vmatpush1.bf16.msra.mxu0 %v5277_v40 }
 0x45c   : > { %5463 = vrcp.f32 %v2030_v41  ;;  %v5282_v41 = vld [vmem:[#allocation8 + $0x6e4] ss:$8 sps:$4 sm:$0xff]   ;;  %2898 = vmatprep.subr.bf16.mxu0 %v5285_v43 }
 0x45d   : > { %v5458_v3 = vpop.eup %5457 }
 0x45e   : > { %v2031_v44 = vadd.f32 1.0, %v5458_v3  ;;  %v5280_v3 = vld [vmem:[#allocation8 + $0x6e0] ss:$8 sps:$4 sm:$0xff]  }
 0x460   : > { %5465 = vrcp.f32 %v2031_v44  ;;  %v5283_v44 = vld [vmem:[#allocation8 + $0x750] ss:$8 sps:$4 sm:$0xff]  }
 0x461   : > { %2899 = vmatpush1.bf16.msra.mxu0 %v5283_v44 }
 0x462   : > { %v5460_v47 = vpop.eup %5459 }
 0x463   : > { %v2032_v48 = vadd.f32 1.0, %v5460_v47  ;;  %v5291_v47 = vld [vmem:[#allocation8 + $0x744] ss:$8 sps:$4 sm:$0xff]  }
 0x464   : > { %2900 = vmatprep.subr.bf16.mxu0 %v5291_v47 }
 0x465   : > { %5467 = vrcp.f32 %v2032_v48  ;;  %v5286_v48 = vld [vmem:[#allocation8 + $0x6d0] ss:$8 sps:$4 sm:$0xff]   ;;  %2901 = vmatpush1.bf16.msra.mxu0 %v5289_v49 }
 0x466   : > { %v5462_v21 = vpop.eup %5461 }
 0x467   : > { %v2033_v53 = vadd.f32 1.0, %v5462_v21  ;;  %v5297_v21 = vld [vmem:[#allocation8 + $0x734] ss:$8 sps:$4 sm:$0xff]  }
 0x468   : > { %2902 = vmatprep.subr.bf16.mxu0 %v5297_v21 }
 0x469   : > { %v5464_v56 = vpop.eup %5463  ;;  %5469 = vrcp.f32 %v2033_v53  ;;  %v5292_v53 = vld [vmem:[#allocation8 + $0x6c0] ss:$8 sps:$4 sm:$0xff]  }
 0x46a   : > { %v2046_v57 = vmul.f32 %v5464_v56, %v2042_v6  ;;  %v5295_v6 = vld [vmem:[#allocation8 + $0x730] ss:$8 sps:$4 sm:$0xff]   ;;  %v5303_v56 = vld [vmem:[#allocation8 + $0x724] ss:$8 sps:$4 sm:$0xff]  }
 0x46b   : > { %2903 = vmatpush1.bf16.msra.mxu0 %v5295_v6 }
 0x46c   : > { %v6344_v60 = vadd.f32 %v2046_v57, %v6303_v42  ;;  %v2016_v42 = vadd.f32 %v2015_v37, %v1963_v0  ;;  %v5298_v57 = vld [vmem:[#allocation8 + $0x6b0] ss:$8 sps:$4 sm:$0xff]   ;;  %2904 = vmatprep.subr.bf16.mxu0 %v5303_v56  ;;  %v5313_v37 = vld [vmem:[#allocation8 + $0x700] ss:$8 sps:$4 sm:$0xff]  }
 0x46d   : > { %v5466_v63 = vpop.eup %5465  ;;  %v5307_v0 = vld [vmem:[#allocation8 + $0x710] ss:$8 sps:$4 sm:$0xff]  }
 0x46e   : > { %v2047_v1 = vmul.f32 %v5466_v63, %v2043_v62  ;;  %v2055_v2 = vrot.slane %v6344_v60, 5  ;;  %v5309_v62 = vld [vmem:[#allocation8 + $0x714] ss:$8 sps:$4 sm:$0xff]   ;;  %v5304_v63 = vld [vmem:[#allocation8 + $0x6a0] ss:$8 sps:$4 sm:$0xff]  }
 0x46f   : > { %2905 = vmatpush1.bf16.msra.mxu0 %v5301_v58 }
 0x470   : > { %v6352_v7 = vadd.f32 %v2047_v1, %v6311_v50  ;;  %v4478_v9 = vpack.c.bf16 %v2055_v2, %v5902_v52  ;;  %v2045_v50 = vsub.f32 %v2016_v42, %v6331_v12  ;;  %v5250_v52 = vld [vmem:[#allocation8 + $0x660] ss:$8 sps:$4 sm:$0xff]   ;;  %2906 = vmatprep.subr.bf16.mxu0 %v5309_v62  ;;  %v5312_v1 = vld [vmem:[#allocation8 + $0x694] ss:$8 sps:$4 sm:$0xff]   ;;  %v5315_v2 = vld [vmem:[#allocation8 + $0x704] ss:$8 sps:$4 sm:$0xff]  }
 0x471   : > { %v5316_v42 = vld [vmem:[#allocation8 + $0x680] ss:$8 sps:$4 sm:$0xff]  }
 0x472   : > { %v5468_v13 = vpop.eup %5467  ;;  %v2058_v14 = vpack.c.bf16 %v6352_v7, %v6344_v60  ;;  %4479 = vmatprep.mubr.msk.bf16.mxu0 %vm4477_vm14, %v4478_v9  ;;  %v5318_v9 = vld [vmem:[#allocation8 + $0x684] ss:$8 sps:$4 sm:$0xff]  }
 0x473   : > { %2406 = vmatmul.mubr.bf16.gmra.mxu0 %v5903_v59  ;;  %v2048_v31 = vmul.f32 %v5468_v13, %v2044_v16  ;;  %v5253_v59 = vld [vmem:[#allocation8 + $0x650] ss:$8 sps:$4 sm:$0xff]  }
 0x474   : > { %2449 = vmatmul.mubr.bf16.vlgmr.msra.gmra.mxu1 %v2058_v14  ;;  %2926 = vmatprep.mubr.bf16.mxu0 %v5900_v61  ;;  %v2111_v14 = vld [vmem:[#allocation10 + $0x6] sm:$0x3] }
 0x475   : > { %2458 = vmatprep.mubr.bf16.mxu1 %v5900_v61  ;;  %2842 = vmatpush1.bf16.msra.mxu1 %v5247_v11  ;;  %v6363_v19 = vadd.f32 %v2048_v31, %v6320_v25  ;;  %v5264_v25 = vld [vmem:[#allocation8 + $0x624] ss:$8 sps:$4 sm:$0xff]   ;;  %v5321_v11 = vld [vmem:[#allocation8 + $0x7f4] ss:$8 sps:$4 sm:$0xff]   ;;  %v2116_v16 = vrot.slane %v2111_v14, %v6247_v26 }
 0x476   : > { %v5470_v17 = vpop.eup %5469  ;;  %2843 = vmatprep.subr.bf16.mxu1 %v5252_v15  ;;  %2907 = vmatpush1.bf16.msra.mxu0 %v5307_v0 }
 0x477   : > { %v2049_v46 = vmul.f32 %v5470_v17, %v2045_v50  ;;  %2908 = vmatprep.subr.bf16.mxu0 %v5315_v2 }
 0x479   : > { %v6366_v22 = vadd.f32 %v2049_v46, %v6331_v12  ;;  %2844 = vmatpush1.bf16.msra.mxu1 %v5250_v52  ;;  %v5267_v12 = vld [vmem:[#allocation8 + $0x614] ss:$8 sps:$4 sm:$0xff]  }
 0x47a   : > { %2845 = vmatprep.subr.bf16.mxu1 %v5255_v18  ;;  %2909 = vmatpush1.bf16.msra.mxu0 %v5313_v37 }
 0x47b   : > { %v2060_v23 = vpack.c.bf16 %v6366_v22, %v6363_v19  ;;  %3319 = vmatprep.subr.bf16.mxu0 %v5321_v11 }
 0x47d   : > { %2459 = vmatmul.mubr.bf16.gmra.mxu1 %v2060_v23 }
 0x47e   : > { %2846 = vmatpush1.bf16.msra.mxu1 %v5253_v59 }
 0x47f   : > { %2847 = vmatprep.subr.bf16.mxu1 %v5258_v27 }
 0x482   : > { %2848 = vmatpush1.bf16.msra.mxu1 %v5256_v28 }
 0x483   : > { %2849 = vmatprep.subr.bf16.mxu1 %v5261_v29 }
 0x486   : > { %2850 = vmatpush1.bf16.msra.mxu1 %v5259_v30  ;;  %v2397_v13 = vpop.f32.mrf.mxu0 }
 0x487   : > { %2851 = vmatprep.subr.bf16.mxu1 %v5264_v25  ;;  %v2398_v50 = vadd.f32 %v2397_v13, %v2116_v16 }
 0x488   : > { %v2399_v15 = vpop.f32.mrf.mxu0 }
 0x48a   : > { %2852 = vmatpush1.bf16.msra.mxu1 %v5262_v4  ;;  %v2401_v31 = vpop.f32.mrf.mxu0 }
 0x48b   : > { %2853 = vmatprep.subr.bf16.mxu1 %v5267_v12  ;;  %v2402_v59 = vadd.f32 %v2401_v31, %v2116_v16 }
 0x48c   : > { %v2403_v52 = vpop.f32.mrf.mxu0 }
 0x48e   : > { %2854 = vmatpush1.bf16.msra.mxu1 %v5265_v32 }
 0x48f   : > { %2855 = vmatprep.subr.bf16.mxu1 %v5270_v33 }
 0x492   : > { %2856 = vmatpush1.bf16.msra.mxu1 %v5268_v8 }
 0x493   : > { %2857 = vmatprep.subr.bf16.mxu1 %v5276_v36 }
 0x496   : > { %2858 = vmatpush2.bf16.msra.mxu1 %v5274_v39 }
 0x497   : > { %2859 = vmatprep.subr.bf16.mxu1 %v5282_v41 }
 0x49a   : > { %2860 = vmatpush2.bf16.msra.mxu1 %v5280_v3  ;;  %v2120_v3 = vrot.slane %v2111_v14, %v6250_v55 }
 0x49b   : > { %2861 = vmatprep.subr.bf16.mxu1 %v5288_v45 }
 0x49c   : > { %v2400_v47 = vadd.f32 %v2399_v15, %v2120_v3  ;;  %v5319_v15 = vld [vmem:[#allocation8 + $0x7f0] ss:$8 sps:$4 sm:$0xff]  }
 0x49e   : > { %2862 = vmatpush2.bf16.msra.mxu1 %v5286_v48 }
 0x49f   : > { %2863 = vmatprep.subr.bf16.mxu1 %v5294_v51 }
 0x4a2   : > { %2864 = vmatpush2.bf16.msra.mxu1 %v5292_v53  ;;  %v2404_v53 = vadd.f32 %v2403_v52, %v2120_v3 }
 0x4a3   : > { %2865 = vmatprep.subr.bf16.mxu1 %v5300_v54 }
 0x4a6   : > { %2866 = vmatpush2.bf16.msra.mxu1 %v5298_v57 }
 0x4a7   : > { %2867 = vmatprep.subr.bf16.mxu1 %v5306_v10 }
 0x4aa   : > { %2868 = vmatpush2.bf16.msra.mxu1 %v5304_v63 }
 0x4ab   : > { %2869 = vmatprep.subr.bf16.mxu1 %v5312_v1 }
 0x4ae   : > { %2870 = vmatpush2.bf16.msra.mxu1 %v5310_v5 }
 0x4af   : > { %2871 = vmatprep.subr.bf16.mxu1 %v5318_v9 }
 0x4b2   : > { %2872 = vmatpush2.bf16.msra.mxu1 %v5316_v42 }
 0x533   : > { %v2407_v27 = vpop.f32.mrf.mxu0 }
 0x534   : > { %v2450_v17 = vpop.f32.mrf.mxu1  ;;  %v2408_v30 = vadd.f32 %v2407_v27, %v2116_v16 }
 0x535   : > { %v2451_v18 = vadd.f32 %v2450_v17, %v2398_v50  ;;  %v2409_v4 = vpop.f32.mrf.mxu0  ;;  %v5324_v17 = vld [vmem:[#allocation8 + $0x7e4] ss:$8 sps:$4 sm:$0xff]  }
 0x536   : > { %v2452_v46 = vpop.f32.mrf.mxu1  ;;  %v2410_v10 = vadd.f32 %v2409_v4, %v2120_v3 }
 0x537   : > { %v4480_v23 = vmul.f32 -1.442695, %v2451_v18  ;;  %v2411_v34 = vpop.f32.mrf.mxu0  ;;  %v2453_v51 = vadd.f32 %v2452_v46, %v2400_v47  ;;  %v5336_v47 = vld [vmem:[#allocation8 + $0x7a4] ss:$8 sps:$4 sm:$0xff]  }
 0x538   : > { %v2454_v28 = vpop.f32.mrf.mxu1  ;;  %v2412_v35 = vadd.f32 %v2411_v34, %v2116_v16 }
 0x539   : > { %5471 = vpow2.f32 %v4480_v23  ;;  %v2455_v29 = vadd.f32 %v2454_v28, %v2402_v59  ;;  %v2493_v54 = vsub.f32 %v2453_v51, %v6344_v60  ;;  %v2413_v62 = vpop.f32.mrf.mxu0  ;;  %v5337_v51 = vld [vmem:[#allocation8 + $0x790] ss:$8 sps:$4 sm:$0xff]  }
 0x53a   : > { %v2456_v25 = vpop.f32.mrf.mxu1  ;;  %v2414_v9 = vadd.f32 %v2413_v62, %v2120_v3  ;;  %v5330_v3 = vld [vmem:[#allocation8 + $0x7c4] ss:$8 sps:$4 sm:$0xff]  }
 0x53b   : > { %v4481_v12 = vmul.f32 -1.442695, %v2455_v29  ;;  %v2457_v56 = vadd.f32 %v2456_v25, %v2404_v53  ;;  %v5322_v29 = vld [vmem:[#allocation8 + $0x7e0] ss:$8 sps:$4 sm:$0xff]   ;;  %v5327_v25 = vld [vmem:[#allocation8 + $0x7d4] ss:$8 sps:$4 sm:$0xff]  }
 0x53c   : > { %v5345_v53 = vld [vmem:[#allocation8 + $0x8f4] ss:$8 sps:$4 sm:$0xff]   ;;  %v5354_v62 = vld [vmem:[#allocation8 + $0x864] ss:$8 sps:$4 sm:$0xff]  }
 0x53d   : > { %5473 = vpow2.f32 %v4481_v12  ;;  %v2460_v32 = vpop.f32.mrf.mxu1  ;;  %v2494_v63 = vsub.f32 %v2457_v56, %v6352_v7  ;;  %3372 = vmatprep.subr.bf16.mxu1 %v5345_v53  ;;  %v5348_v56 = vld [vmem:[#allocation8 + $0x874] ss:$8 sps:$4 sm:$0xff]  }
 0x53e   : > { %v2461_v33 = vadd.f32 %v2460_v32, %v2408_v30 }
 0x53f   : > { %v2462_v8 = vpop.f32.mrf.mxu1 }
 0x540   : > { %v4482_v36 = vmul.f32 -1.442695, %v2461_v33  ;;  %v2463_v2 = vadd.f32 %v2462_v8, %v2410_v10  ;;  %v5325_v33 = vld [vmem:[#allocation8 + $0x7d0] ss:$8 sps:$4 sm:$0xff]   ;;  %v5349_v10 = vld [vmem:[#allocation8 + $0x8e0] ss:$8 sps:$4 sm:$0xff]  }
 0x541   : > { %v2464_v38 = vpop.f32.mrf.mxu1 }
 0x542   : > { %5475 = vpow2.f32 %v4482_v36  ;;  %v2465_v39 = vadd.f32 %v2464_v38, %v2412_v35  ;;  %v2495_v14 = vsub.f32 %v2463_v2, %v6363_v19  ;;  %v5355_v2 = vld [vmem:[#allocation8 + $0x8d0] ss:$8 sps:$4 sm:$0xff]  }
 0x543   : > { %v2466_v5 = vpop.f32.mrf.mxu1 }
 0x544   : > { %v4483_v40 = vmul.f32 -1.442695, %v2465_v39  ;;  %v2467_v11 = vadd.f32 %v2466_v5, %v2414_v9  ;;  %v5360_v5 = vld [vmem:[#allocation8 + $0x854] ss:$8 sps:$4 sm:$0xff]   ;;  %v5358_v9 = vld [vmem:[#allocation8 + $0x850] ss:$8 sps:$4 sm:$0xff]  }
 0x546   : > { %v5472_v41 = vpop.eup %5471  ;;  %5477 = vpow2.f32 %v4483_v40 }
 0x547   : > { %v2481_v43 = vadd.f32 1.0, %v5472_v41 }
 0x549   : > { %5479 = vrcp.f32 %v2481_v43  ;;  %v5328_v43 = vld [vmem:[#allocation8 + $0x7c0] ss:$8 sps:$4 sm:$0xff]  }
 0x54a   : > { %v5474_v44 = vpop.eup %5473 }
 0x54b   : > { %v2482_v45 = vadd.f32 1.0, %v5474_v44  ;;  %v5333_v44 = vld [vmem:[#allocation8 + $0x7b4] ss:$8 sps:$4 sm:$0xff]  }
 0x54d   : > { %5481 = vrcp.f32 %v2482_v45  ;;  %v5331_v45 = vld [vmem:[#allocation8 + $0x7b0] ss:$8 sps:$4 sm:$0xff]  }
 0x54f   : > { %v5476_v48 = vpop.eup %5475 }
 0x550   : > { %v2483_v49 = vadd.f32 1.0, %v5476_v48  ;;  %v5334_v48 = vld [vmem:[#allocation8 + $0x7a0] ss:$8 sps:$4 sm:$0xff]  }
 0x552   : > { %5483 = vrcp.f32 %v2483_v49  ;;  %v5339_v49 = vld [vmem:[#allocation8 + $0x794] ss:$8 sps:$4 sm:$0xff]  }
 0x553   : > { %v5478_v21 = vpop.eup %5477 }
 0x554   : > { %v2484_v6 = vadd.f32 1.0, %v5478_v21  ;;  %v5342_v21 = vld [vmem:[#allocation8 + $0x784] ss:$8 sps:$4 sm:$0xff]  }
 0x556   : > { %v5480_v57 = vpop.eup %5479  ;;  %5485 = vrcp.f32 %v2484_v6  ;;  %v5340_v6 = vld [vmem:[#allocation8 + $0x780] ss:$8 sps:$4 sm:$0xff]  }
 0x557   : > { %v2497_v58 = vmul.f32 %v5480_v57, %v2493_v54  ;;  %v5343_v54 = vld [vmem:[#allocation8 + $0x8f0] ss:$8 sps:$4 sm:$0xff]   ;;  %v5351_v57 = vld [vmem:[#allocation8 + $0x8e4] ss:$8 sps:$4 sm:$0xff]  }
 0x559   : > { %v6375_v1 = vadd.f32 %v2497_v58, %v6344_v60  ;;  %v5346_v58 = vld [vmem:[#allocation8 + $0x870] ss:$8 sps:$4 sm:$0xff]  }
 0x55a   : > { %v5482_v0 = vpop.eup %5481 }
 0x55b   : > { %v2498_v37 = vmul.f32 %v5482_v0, %v2494_v63  ;;  %v2509_v13 = vrot.slane %v6375_v1, 6  ;;  %v2521_v50 = vrot.slane %v6375_v1, 7  ;;  %v5357_v63 = vld [vmem:[#allocation8 + $0x8d4] ss:$8 sps:$4 sm:$0xff]   ;;  %v5352_v0 = vld [vmem:[#allocation8 + $0x860] ss:$8 sps:$4 sm:$0xff]  }
 0x55d   : > { %v6378_v42 = vadd.f32 %v2498_v37, %v6352_v7  ;;  %v2496_v7 = vsub.f32 %v2467_v11, %v6366_v22  ;;  %v5363_v37 = vld [vmem:[#allocation8 + $0x8c4] ss:$8 sps:$4 sm:$0xff]   ;;  %v5361_v11 = vld [vmem:[#allocation8 + $0x8c0] ss:$8 sps:$4 sm:$0xff]  }
 0x55f   : > { %v5484_v16 = vpop.eup %5483  ;;  %v2510_v31 = vrot.slane %v6378_v42, 6  ;;  %v2535_v60 = vpack.c.bf16 %v6378_v42, %v6375_v1  ;;  %v2522_v52 = vrot.slane %v6378_v42, 7 }
 0x560   : > { %v2499_v18 = vmul.f32 %v5484_v16, %v2495_v14  ;;  %v5369_v14 = vld [vmem:[#allocation8 + $0x8b4] ss:$8 sps:$4 sm:$0xff]   ;;  %v5367_v16 = vld [vmem:[#allocation8 + $0x8b0] ss:$8 sps:$4 sm:$0xff]  }
 0x561   : > { %2927 = vmatmul.mubr.bf16.vlgmr.msra.gmra.mxu0 %v2535_v60  ;;  %v2523_v46 = vsel %vm645_vm0, %v2521_v50, %v2522_v52  ;;  %v2511_v59 = vsel %vm632_vm1, %v2509_v13, %v2510_v31  ;;  %v5375_v60 = vld [vmem:[#allocation8 + $0x8a4] ss:$8 sps:$4 sm:$0xff]  }
 0x562   : > { %v6391_v23 = vadd.f32 %v2499_v18, %v6363_v19  ;;  %v4534_v27 = vpack.c.bf16 %v2523_v46, %v2521_v50  ;;  %v4538_v28 = vpack.c.bf16 %v2511_v59, %v2509_v13  ;;  %2936 = vmatprep.mubr.bf16.mxu0 %v5900_v61  ;;  %3320 = vmatpush1.bf16.msra.mxu0 %v5319_v15  ;;  %v5366_v13 = vld [vmem:[#allocation8 + $0x844] ss:$8 sps:$4 sm:$0xff]   ;;  %v5364_v15 = vld [vmem:[#allocation8 + $0x840] ss:$8 sps:$4 sm:$0xff]   ;;  %v5370_v50 = vld [vmem:[#allocation8 + $0x830] ss:$8 sps:$4 sm:$0xff]  }
 0x563   : > { %v5486_v30 = vpop.eup %5485  ;;  %3321 = vmatprep.subr.bf16.mxu0 %v5324_v17  ;;  %v5378_v17 = vld [vmem:[#allocation8 + $0x824] ss:$8 sps:$4 sm:$0xff]   ;;  %v5381_v18 = vld [vmem:[#allocation8 + $0x894] ss:$8 sps:$4 sm:$0xff]   ;;  %v5379_v46 = vld [vmem:[#allocation8 + $0x890] ss:$8 sps:$4 sm:$0xff]  }
 0x564   : > { %v2500_v4 = vmul.f32 %v5486_v30, %v2496_v7  ;;  %4535 = vmatprep.mubr.msk.bf16.mxu1 %vm6223_vm5, %v4534_v27  ;;  %v2524_v19 = vrot.slane %v6391_v23, 7  ;;  %v2512_v32 = vrot.slane %v6391_v23, 6  ;;  %v5376_v7 = vld [vmem:[#allocation8 + $0x820] ss:$8 sps:$4 sm:$0xff]   ;;  %v5384_v59 = vld [vmem:[#allocation8 + $0x814] ss:$8 sps:$4 sm:$0xff]  }
 0x565   : > { %4539 = vmatmul.mubr.msk.bf16.vlgmr.msra.gmra.mxu1 %vm6230_vm6, %v4538_v28  ;;  %v5387_v27 = vld [vmem:[#allocation8 + $0x884] ss:$8 sps:$4 sm:$0xff]   ;;  %v5382_v28 = vld [vmem:[#allocation8 + $0x810] ss:$8 sps:$4 sm:$0xff]  }
 0x566   : > { %v6399_v12 = vadd.f32 %v2500_v4, %v6366_v22  ;;  %3322 = vmatpush1.bf16.msra.mxu0 %v5322_v29  ;;  %v2525_v36 = vsel %vm645_vm0, %v2522_v52, %v2524_v19  ;;  %v2513_v38 = vsel %vm632_vm1, %v2510_v31, %v2512_v32  ;;  %3373 = vmatpush1.bf16.msra.mxu1 %v5343_v54  ;;  %v5372_v31 = vld [vmem:[#allocation8 + $0x834] ss:$8 sps:$4 sm:$0xff]   ;;  %v5373_v52 = vld [vmem:[#allocation8 + $0x8a0] ss:$8 sps:$4 sm:$0xff]   ;;  %v5390_v30 = vld [vmem:[#allocation8 + $0x804] ss:$8 sps:$4 sm:$0xff]  }
 0x567   : > { %3323 = vmatprep.subr.bf16.mxu0 %v5327_v25  ;;  %3374 = vmatprep.subr.bf16.mxu1 %v5351_v57  ;;  %v5385_v29 = vld [vmem:[#allocation8 + $0x880] ss:$8 sps:$4 sm:$0xff]  }
 0x568   : > { %v2538_v34 = vpack.c.bf16 %v6399_v12, %v6391_v23  ;;  %v2526_v8 = vrot.slane %v6399_v12, 7  ;;  %v2514_v35 = vrot.slane %v6399_v12, 6  ;;  %v5388_v25 = vld [vmem:[#allocation8 + $0x800] ss:$8 sps:$4 sm:$0xff]  }
 0x569   : > { %v2589_v4 = vld [vmem:[#allocation10 + $0x8] sm:$0x3] }
 0x56a   : > { %2937 = vmatmul.mubr.bf16.gmra.mxu0 %v2538_v34  ;;  %v2527_v22 = vsel %vm645_vm0, %v2524_v19, %v2526_v8  ;;  %v2515_v39 = vsel %vm632_vm1, %v2512_v32, %v2514_v35  ;;  %3375 = vmatpush1.bf16.msra.mxu1 %v5349_v10  ;;  %v2594_v32 = vrot.slane %v2589_v4, %v6247_v26 }
 0x56b   : > { %v2537_v40 = vpack.c.bf16 %v2527_v22, %v2525_v36  ;;  %v2536_v41 = vpack.c.bf16 %v2515_v39, %v2513_v38  ;;  %3324 = vmatpush1.bf16.msra.mxu0 %v5325_v33  ;;  %3376 = vmatprep.subr.bf16.mxu1 %v5357_v63  ;;  %v2598_v63 = vrot.slane %v2589_v4, %v6250_v55 }
 0x56c   : > { %3325 = vmatprep.subr.bf16.mxu0 %v5330_v3 }
 0x56d   : > { %2883 = vmatprep.mubr.bf16.mxu1 %v2537_v40 }
 0x56e   : > { %2884 = vmatmul.mubr.bf16.gmra.mxu1 %v2536_v41 }
 0x56f   : > { %3404 = vmatprep.mubr.bf16.mxu1 %v5900_v61  ;;  %3326 = vmatpush1.bf16.msra.mxu0 %v5328_v43 }
 0x570   : > { %3327 = vmatprep.subr.bf16.mxu0 %v5333_v44  ;;  %3377 = vmatpush1.bf16.msra.mxu1 %v5355_v2 }
 0x571   : > { %3378 = vmatprep.subr.bf16.mxu1 %v5363_v37 }
 0x573   : > { %3328 = vmatpush1.bf16.msra.mxu0 %v5331_v45 }
 0x574   : > { %3329 = vmatprep.subr.bf16.mxu0 %v5336_v47  ;;  %3379 = vmatpush1.bf16.msra.mxu1 %v5361_v11 }
 0x575   : > { %3380 = vmatprep.subr.bf16.mxu1 %v5369_v14 }
 0x577   : > { %3330 = vmatpush1.bf16.msra.mxu0 %v5334_v48 }
 0x578   : > { %3331 = vmatprep.subr.bf16.mxu0 %v5339_v49  ;;  %3381 = vmatpush1.bf16.msra.mxu1 %v5367_v16 }
 0x579   : > { %3382 = vmatprep.subr.bf16.mxu1 %v5375_v60 }
 0x57b   : > { %3332 = vmatpush1.bf16.msra.mxu0 %v5337_v51 }
 0x57c   : > { %3333 = vmatprep.subr.bf16.mxu0 %v5342_v21  ;;  %3383 = vmatpush1.bf16.msra.mxu1 %v5373_v52 }
 0x57d   : > { %3384 = vmatprep.subr.bf16.mxu1 %v5381_v18 }
 0x57f   : > { %3334 = vmatpush1.bf16.msra.mxu0 %v5340_v6 }
 0x580   : > { %3335 = vmatprep.subr.bf16.mxu0 %v5348_v56  ;;  %3385 = vmatpush1.bf16.msra.mxu1 %v5379_v46 }
 0x581   : > { %3386 = vmatprep.subr.bf16.mxu1 %v5387_v27 }
 0x583   : > { %3336 = vmatpush2.bf16.msra.mxu0 %v5346_v58 }
 0x584   : > { %3337 = vmatprep.subr.bf16.mxu0 %v5354_v62  ;;  %3387 = vmatpush1.bf16.msra.mxu1 %v5385_v29 }
 0x587   : > { %3338 = vmatpush2.bf16.msra.mxu0 %v5352_v0 }
 0x588   : > { %3339 = vmatprep.subr.bf16.mxu0 %v5360_v5 }
 0x58b   : > { %3340 = vmatpush2.bf16.msra.mxu0 %v5358_v9 }
 0x58c   : > { %3341 = vmatprep.subr.bf16.mxu0 %v5366_v13 }
 0x58f   : > { %3342 = vmatpush2.bf16.msra.mxu0 %v5364_v15 }
 0x590   : > { %3343 = vmatprep.subr.bf16.mxu0 %v5372_v31 }
 0x593   : > { %3344 = vmatpush2.bf16.msra.mxu0 %v5370_v50 }
 0x594   : > { %3345 = vmatprep.subr.bf16.mxu0 %v5378_v17 }
 0x597   : > { %3346 = vmatpush2.bf16.msra.mxu0 %v5376_v7 }
 0x598   : > { %3347 = vmatprep.subr.bf16.mxu0 %v5384_v59 }
 0x59b   : > { %3348 = vmatpush2.bf16.msra.mxu0 %v5382_v28 }
 0x59c   : > { %3349 = vmatprep.subr.bf16.mxu0 %v5390_v30 }
 0x59f   : > { %3350 = vmatpush2.bf16.msra.mxu0 %v5388_v25 }
 0x621   : > { %v2928_v19 = vpop.f32.mrf.mxu0 }
 0x623   : > { %v2930_v33 = vpop.f32.mrf.mxu0 }
 0x625   : > { %v2875_v34 = vpop.f32.mrf.mxu1  ;;  %v2932_v8 = vpop.f32.mrf.mxu0 }
 0x626   : > { %v2876_v35 = vadd.f32 %v2875_v34, %v2594_v32 }
 0x627   : > { %v2877_v36 = vpop.f32.mrf.mxu1  ;;  %v2934_v38 = vpop.f32.mrf.mxu0 }
 0x628   : > { %v2929_v22 = vadd.f32 %v2928_v19, %v2876_v35  ;;  %v2878_v5 = vadd.f32 %v2877_v36, %v2598_v63 }
 0x629   : > { %v2879_v39 = vpop.f32.mrf.mxu1 }
 0x62a   : > { %v4540_v40 = vmul.f32 -1.442695, %v2929_v22  ;;  %v2880_v41 = vadd.f32 %v2879_v39, %v2594_v32  ;;  %v2938_v44 = vpop.f32.mrf.mxu0  ;;  %v2931_v11 = vadd.f32 %v2930_v33, %v2878_v5  ;;  %v5403_v5 = vld [vmem:[#allocation11 + $0x58] sm:$0xff]  }
 0x62b   : > { %v2881_v43 = vpop.f32.mrf.mxu1 }
 0x62c   : > { %5487 = vpow2.f32 %v4540_v40  ;;  %v2933_v3 = vadd.f32 %v2932_v8, %v2880_v41  ;;  %v2940_v49 = vpop.f32.mrf.mxu0  ;;  %v2882_v13 = vadd.f32 %v2881_v43, %v2598_v63  ;;  %v2971_v16 = vsub.f32 %v2931_v11, %v6375_v1 }
 0x62e   : > { %v4541_v45 = vmul.f32 -1.442695, %v2933_v3  ;;  %v2885_v47 = vpop.f32.mrf.mxu1  ;;  %v2942_v56 = vpop.f32.mrf.mxu0  ;;  %v2935_v31 = vadd.f32 %v2934_v38, %v2882_v13 }
 0x62f   : > { %v2886_v48 = vadd.f32 %v2885_v47, %v2594_v32 }
 0x630   : > { %5489 = vpow2.f32 %v4541_v45  ;;  %v2887_v51 = vpop.f32.mrf.mxu1  ;;  %v2972_v18 = vsub.f32 %v2935_v31, %v6378_v42  ;;  %v2944_v30 = vpop.f32.mrf.mxu0 }
 0x631   : > { %v2939_v21 = vadd.f32 %v2938_v44, %v2886_v48  ;;  %v2888_v50 = vadd.f32 %v2887_v51, %v2598_v63 }
 0x632   : > { %v2889_v53 = vpop.f32.mrf.mxu1 }
 0x633   : > { %v4542_v6 = vmul.f32 -1.442695, %v2939_v21  ;;  %v2890_v54 = vadd.f32 %v2889_v53, %v2594_v32  ;;  %v2941_v59 = vadd.f32 %v2940_v49, %v2888_v50  ;;  %v5391_v21 = vld [vmem:[#allocation11 + $0x38] sm:$0xff]   ;;  %v5392_v53 = vld [vmem:[#allocation11 + $0x30] sm:$0xff]  }
 0x634   : > { %v2891_v17 = vpop.f32.mrf.mxu1  ;;  %4725 = vmatprep.subr.bf16.mxu1 %v5391_v21 }
 0x635   : > { %5491 = vpow2.f32 %v4542_v6  ;;  %v2943_v57 = vadd.f32 %v2942_v56, %v2890_v54  ;;  %v2892_v27 = vadd.f32 %v2891_v17, %v2598_v63  ;;  %v2973_v25 = vsub.f32 %v2941_v59, %v6391_v23  ;;  %v5393_v6 = vld [vmem:[#allocation11 + $0x28] sm:$0xff]   ;;  %v5394_v54 = vld [vmem:[#allocation11 + $0x20] sm:$0xff]   ;;  %v5395_v56 = vld [vmem:[#allocation11 + $0x18] sm:$0xff]  }
 0x636   : > { %v5400_v63 = vld [vmem:[#allocation11 + $0x70] sm:$0xff]  }
 0x637   : > { %v4543_v58 = vmul.f32 -1.442695, %v2943_v57  ;;  %v2945_v4 = vadd.f32 %v2944_v30, %v2892_v27  ;;  %v5396_v57 = vld [vmem:[#allocation11 + $0x10] sm:$0xff]  }
 0x639   : > { %v5488_v10 = vpop.eup %5487  ;;  %5493 = vpow2.f32 %v4543_v58  ;;  %v2974_v38 = vsub.f32 %v2945_v4, %v6399_v12  ;;  %v5397_v58 = vld [vmem:[#allocation11 + $0x8] sm:$0xff]  }
 0x63a   : > { %v2959_v62 = vadd.f32 1.0, %v5488_v10  ;;  %v5398_v10 = vld [vmem:[#allocation11] sm:$0xff]  }
 0x63c   : > { %5495 = vrcp.f32 %v2959_v62  ;;  %v5399_v62 = vld [vmem:[#allocation11 + $0x78] sm:$0xff]  }
 0x63d   : > { %v5490_v0 = vpop.eup %5489  ;;  %4745 = vmatprep.subr.bf16.mxu0 %v5399_v62 }
 0x63e   : > { %v2960_v2 = vadd.f32 1.0, %v5490_v0  ;;  %v5401_v0 = vld [vmem:[#allocation11 + $0x68] sm:$0xff]  }
 0x640   : > { %5497 = vrcp.f32 %v2960_v2  ;;  %v5402_v2 = vld [vmem:[#allocation11 + $0x60] sm:$0xff]  }
 0x642   : > { %v5492_v37 = vpop.eup %5491 }
 0x643   : > { %v2961_v9 = vadd.f32 1.0, %v5492_v37  ;;  %v3067_v37 = vld [vmem:[#allocation10 + $0xa] sm:$0x3] }
 0x644   : > { %v3072_v11 = vrot.slane %v3067_v37, %v6247_v26 }
 0x645   : > { %5499 = vrcp.f32 %v2961_v9 }
 0x646   : > { %v5494_v14 = vpop.eup %5493 }
 0x647   : > { %v2962_v15 = vadd.f32 1.0, %v5494_v14 }
 0x649   : > { %v5496_v60 = vpop.eup %5495  ;;  %5501 = vrcp.f32 %v2962_v15 }
 0x64a   : > { %v2975_v52 = vmul.f32 %v5496_v60, %v2971_v16 }
 0x64c   : > { %v6417_v46 = vadd.f32 %v2975_v52, %v6375_v1 }
 0x64d   : > { %v5498_v7 = vpop.eup %5497 }
 0x64e   : > { %v2976_v28 = vmul.f32 %v5498_v7, %v2972_v18  ;;  %v2999_v19 = vrot.slane %v6417_v46, 7  ;;  %v2987_v8 = vrot.slane %v6417_v46, 6 }
 0x650   : > { %v6420_v29 = vadd.f32 %v2976_v28, %v6378_v42 }
 0x652   : > { %v5500_v32 = vpop.eup %5499  ;;  %v2988_v33 = vrot.slane %v6420_v29, 6  ;;  %v3013_v34 = vpack.c.bf16 %v6420_v29, %v6417_v46  ;;  %v3000_v1 = vrot.slane %v6420_v29, 7 }
 0x653   : > { %v2977_v35 = vmul.f32 %v5500_v32, %v2973_v25 }
 0x654   : > { %3405 = vmatmul.mubr.bf16.vlgmr.msra.gmra.mxu1 %v3013_v34  ;;  %v3001_v42 = vsel %vm645_vm0, %v2999_v19, %v3000_v1  ;;  %v2989_v36 = vsel %vm632_vm1, %v2987_v8, %v2988_v33 }
 0x655   : > { %v6432_v22 = vadd.f32 %v2977_v35, %v6391_v23  ;;  %v4594_v39 = vpack.c.bf16 %v3001_v42, %v2999_v19  ;;  %v4598_v40 = vpack.c.bf16 %v2989_v36, %v2987_v8  ;;  %3414 = vmatprep.mubr.bf16.mxu1 %v5900_v61  ;;  %4726 = vmatpush3.bf16.msra.mxu1 %v5391_v21 }
 0x656   : > { %v5502_v41 = vpop.eup %5501  ;;  %4727 = vmatprep.subr.bf16.mxu1 %v5392_v53 }
 0x657   : > { %v2978_v43 = vmul.f32 %v5502_v41, %v2974_v38  ;;  %4595 = vmatprep.mubr.msk.bf16.mxu0 %vm6223_vm5, %v4594_v39  ;;  %v3002_v23 = vrot.slane %v6432_v22, 7  ;;  %v2990_v44 = vrot.slane %v6432_v22, 6  ;;  %v3076_v39 = vrot.slane %v3067_v37, %v6250_v55 }
 0x658   : > { %4599 = vmatmul.mubr.msk.bf16.vlgmr.msra.gmra.mxu0 %vm6230_vm6, %v4598_v40 }
 0x659   : > { %v6441_v3 = vadd.f32 %v2978_v43, %v6399_v12  ;;  %v3003_v20 = vsel %vm645_vm0, %v3000_v1, %v3002_v23  ;;  %v2991_v48 = vsel %vm632_vm1, %v2988_v33, %v2990_v44  ;;  %4728 = vmatpush3.bf16.msra.mxu1 %v5392_v53  ;;  %4746 = vmatpush3.bf16.msra.mxu0 %v5399_v62 }
 0x65a   : > { %4729 = vmatprep.subr.bf16.mxu1 %v5393_v6  ;;  %4747 = vmatprep.subr.bf16.mxu0 %v5400_v63 }
 0x65b   : > { %v3016_v45 = vpack.c.bf16 %v6441_v3, %v6432_v22  ;;  %v3004_v61 = vrot.slane %v6441_v3, 7  ;;  %v2992_v47 = vrot.slane %v6441_v3, 6 }
 0x65d   : > { %3415 = vmatmul.mubr.bf16.gmra.mxu1 %v3016_v45  ;;  %v3005_v24 = vsel %vm645_vm0, %v3002_v23, %v3004_v61  ;;  %v2993_v12 = vsel %vm632_vm1, %v2990_v44, %v2992_v47  ;;  %4748 = vmatpush3.bf16.msra.mxu0 %v5400_v63 }
 0x65e   : > { %v3015_v49 = vpack.c.bf16 %v3005_v24, %v3003_v20  ;;  %v3014_v51 = vpack.c.bf16 %v2993_v12, %v2991_v48  ;;  %4730 = vmatpush3.bf16.msra.mxu1 %v5393_v6  ;;  %4749 = vmatprep.subr.bf16.mxu0 %v5401_v0 }
 0x65f   : > { %4731 = vmatprep.subr.bf16.mxu1 %v5394_v54 }
 0x660   : > { %3361 = vmatprep.mubr.bf16.mxu0 %v3015_v49 }
 0x661   : > { %3362 = vmatmul.mubr.bf16.gmra.mxu0 %v3014_v51 }
 0x662   : > { %4732 = vmatpush3.bf16.msra.mxu1 %v5394_v54  ;;  %4750 = vmatpush3.bf16.msra.mxu0 %v5401_v0 }
 0x663   : > { %4733 = vmatprep.subr.bf16.mxu1 %v5395_v56  ;;  %4751 = vmatprep.subr.bf16.mxu0 %v5402_v2 }
 0x666   : > { %4734 = vmatpush3.bf16.msra.mxu1 %v5395_v56  ;;  %4752 = vmatpush3.bf16.msra.mxu0 %v5402_v2 }
 0x667   : > { %4735 = vmatprep.subr.bf16.mxu1 %v5396_v57  ;;  %4753 = vmatprep.subr.bf16.mxu0 %v5403_v5 }
 0x66a   : > { %4736 = vmatpush3.bf16.msra.mxu1 %v5396_v57  ;;  %4754 = vmatpush3.bf16.msra.mxu0 %v5403_v5 }
 0x66b   : > { %4737 = vmatprep.subr.bf16.mxu1 %v5397_v58 }
 0x66e   : > { %4738 = vmatpush3.bf16.msra.mxu1 %v5397_v58 }
 0x66f   : > { %4739 = vmatprep.subr.bf16.mxu1 %v5398_v10 }
 0x672   : > { %4740 = vmatpush3.bf16.msra.mxu1 %v5398_v10 }
 0x714   : > { %v3406_v9 = vpop.f32.mrf.mxu1 }
 0x716   : > { %v3408_v13 = vpop.f32.mrf.mxu1 }
 0x718   : > { %v3353_v14 = vpop.f32.mrf.mxu0  ;;  %v3410_v15 = vpop.f32.mrf.mxu1 }
 0x719   : > { %v3354_v16 = vadd.f32 %v3353_v14, %v3072_v11 }
 0x71a   : > { %v3355_v31 = vpop.f32.mrf.mxu0  ;;  %v3412_v50 = vpop.f32.mrf.mxu1 }
 0x71b   : > { %v3407_v60 = vadd.f32 %v3406_v9, %v3354_v16  ;;  %v3356_v43 = vadd.f32 %v3355_v31, %v3076_v39  ;;  %v5407_v16 = vld [vmem:[#allocation11 + $0xb8] sm:$0xff]   ;;  %v5408_v31 = vld [vmem:[#allocation11 + $0xb0] sm:$0xff]  }
 0x71c   : > { %v3357_v52 = vpop.f32.mrf.mxu0  ;;  %4765 = vmatprep.subr.bf16.mxu1 %v5407_v16 }
 0x71d   : > { %v4600_v17 = vmul.f32 -1.442695, %v3407_v60  ;;  %v3358_v18 = vadd.f32 %v3357_v52, %v3072_v11  ;;  %v3416_v27 = vpop.f32.mrf.mxu1  ;;  %v3409_v61 = vadd.f32 %v3408_v13, %v3356_v43  ;;  %v5409_v60 = vld [vmem:[#allocation11 + $0xa8] sm:$0xff]   ;;  %v4613_v43 = vld [vmem:[#allocation13 + $0x1] ss:$0 sm:$0xff] }
 0x71e   : > { %v3359_v7 = vpop.f32.mrf.mxu0 }
 0x71f   : > { %5503 = vpow2.f32 %v4600_v17  ;;  %v3411_v59 = vadd.f32 %v3410_v15, %v3358_v18  ;;  %v3418_v4 = vpop.f32.mrf.mxu1  ;;  %v3360_v44 = vadd.f32 %v3359_v7, %v3076_v39  ;;  %v3449_v48 = vsub.f32 %v3409_v61, %v6417_v46  ;;  %v5406_v15 = vld [vmem:[#allocation11 + $0x40] sm:$0xff]  }
 0x720   : > { %v4604_v17 = vld [vmem:[#allocation13] ss:$0 sm:$0xff] }
 0x721   : > { %v4601_v28 = vmul.f32 -1.442695, %v3411_v59  ;;  %v3363_v30 = vpop.f32.mrf.mxu0  ;;  %v3420_v1 = vpop.f32.mrf.mxu1  ;;  %v3413_v20 = vadd.f32 %v3412_v50, %v3360_v44 }
 0x722   : > { %v3364_v25 = vadd.f32 %v3363_v30, %v3072_v11 }
 0x723   : > { %5505 = vpow2.f32 %v4601_v28  ;;  %v3365_v26 = vpop.f32.mrf.mxu0  ;;  %v3450_v55 = vsub.f32 %v3413_v20, %v6420_v29  ;;  %v3422_v56 = vpop.f32.mrf.mxu1 }
 0x724   : > { %v3417_v19 = vadd.f32 %v3416_v27, %v3364_v25  ;;  %v3366_v49 = vadd.f32 %v3365_v26, %v3076_v39 }
 0x725   : > { %v3367_v32 = vpop.f32.mrf.mxu0 }
 0x726   : > { %v4602_v33 = vmul.f32 -1.442695, %v3417_v19  ;;  %v3368_v34 = vadd.f32 %v3367_v32, %v3072_v11  ;;  %v3419_v54 = vadd.f32 %v3418_v4, %v3366_v49 }
 0x727   : > { %v3369_v12 = vpop.f32.mrf.mxu0 }
 0x728   : > { %5507 = vpow2.f32 %v4602_v33  ;;  %v3421_v8 = vadd.f32 %v3420_v1, %v3368_v34  ;;  %v3370_v53 = vadd.f32 %v3369_v12, %v3076_v39  ;;  %v3451_v0 = vsub.f32 %v3419_v54, %v6432_v22  ;;  %v5412_v34 = vld [vmem:[#allocation11 + $0x90] sm:$0xff]   ;;  %v5413_v1 = vld [vmem:[#allocation11 + $0x88] sm:$0xff]   ;;  %v5419_v39 = vld [vmem:[#allocation14 + $0x18] sm:$0xff]  }
 0x72a   : > { %v4603_v35 = vmul.f32 -1.442695, %v3421_v8  ;;  %v3423_v10 = vadd.f32 %v3422_v56, %v3370_v53  ;;  %v5414_v8 = vld [vmem:[#allocation11 + $0x80] sm:$0xff]   ;;  %v5421_v53 = vld [vmem:[#allocation14 + $0x8] sm:$0xff]  }
 0x72c   : > { %v5504_v42 = vpop.eup %5503  ;;  %5509 = vpow2.f32 %v4603_v35  ;;  %v3452_v5 = vsub.f32 %v3423_v10, %v6441_v3  ;;  %v5415_v35 = vld [vmem:[#allocation14 + $0x38] sm:$0xff]  }
 0x72d   : > { %v3437_v36 = vadd.f32 1.0, %v5504_v42  ;;  %v5416_v42 = vld [vmem:[#allocation14 + $0x30] sm:$0xff]  }
 0x72f   : > { %5511 = vrcp.f32 %v3437_v36  ;;  %v5417_v36 = vld [vmem:[#allocation14 + $0x28] sm:$0xff]  }
 0x730   : > { %v5506_v38 = vpop.eup %5505 }
 0x731   : > { %v3438_v40 = vadd.f32 1.0, %v5506_v38  ;;  %v5418_v38 = vld [vmem:[#allocation14 + $0x20] sm:$0xff]  }
 0x733   : > { %5513 = vrcp.f32 %v3438_v40 }
 0x735   : > { %v5508_v41 = vpop.eup %5507 }
 0x736   : > { %v3439_v23 = vadd.f32 1.0, %v5508_v41 }
 0x738   : > { %5515 = vrcp.f32 %v3439_v23 }
 0x739   : > { %v5510_v45 = vpop.eup %5509 }
 0x73a   : > { %v3440_v47 = vadd.f32 1.0, %v5510_v45 }
 0x73c   : > { %v5512_v24 = vpop.eup %5511  ;;  %5517 = vrcp.f32 %v3440_v47 }
 0x73d   : > { %v3453_v51 = vmul.f32 %v5512_v24, %v3449_v48 }
 0x73f   : > { %v3457_v57 = vadd.f32 %v3453_v51, %v6417_v46  ;;  %v5404_v46 = vld [vmem:[#allocation11 + $0x50] sm:$0xff]  }
 0x740   : > { %v5514_v21 = vpop.eup %5513  ;;  %4755 = vmatprep.subr.bf16.mxu0 %v5404_v46 }
 0x741   : > { %v3454_v6 = vmul.f32 %v5514_v21, %v3450_v55  ;;  %4756 = vmatpush3.bf16.msra.mxu0 %v5404_v46  ;;  %v5420_v21 = vld [vmem:[#allocation14 + $0x10] sm:$0xff]   ;;  %v4631_v46 = vld [vmem:[#allocation16] ss:$0 sm:$0xff] }
 0x743   : > { %v3458_v58 = vadd.f32 %v3454_v6, %v6420_v29  ;;  %v5405_v29 = vld [vmem:[#allocation11 + $0x48] sm:$0xff]  }
 0x744   : > { %4757 = vmatprep.subr.bf16.mxu0 %v5405_v29  ;;  %v5422_v6 = vld [vmem:[#allocation14] sm:$0xff]  }
 0x745   : > { %v5516_v62 = vpop.eup %5515  ;;  %v3461_v63 = vpack.c.bf16 %v3458_v58, %v3457_v57  ;;  %4758 = vmatpush3.bf16.msra.mxu0 %v5405_v29  ;;  %v4622_v57 = vld [vmem:[#allocation13 + $0x2] ss:$0 sm:$0xff] }
 0x746   : > { %v3455_v2 = vmul.f32 %v5516_v62, %v3451_v0  ;;  %4759 = vmatprep.subr.bf16.mxu0 %v5406_v15 }
 0x747   : > { %4741 = vmatprep.mubr.bf16.mxu1 %v3461_v63 }
 0x748   : > { %v3459_v11 = vadd.f32 %v3455_v2, %v6432_v22  ;;  %v5410_v22 = vld [vmem:[#allocation11 + $0xa0] sm:$0xff]  }
 0x749   : > { %v5518_v37 = vpop.eup %5517  ;;  %4760 = vmatpush3.bf16.msra.mxu0 %v5406_v15 }
 0x74a   : > { %v3456_v9 = vmul.f32 %v5518_v37, %v3452_v5  ;;  %4785 = vmatprep.subr.bf16.mxu0 %v5415_v35 }
 0x74c   : > { %v3460_v13 = vadd.f32 %v3456_v9, %v6441_v3  ;;  %v5411_v3 = vld [vmem:[#allocation11 + $0x98] sm:$0xff]  }
 0x74e   : > { %v3462_v14 = vpack.c.bf16 %v3460_v13, %v3459_v11 }
 0x750   : > { %4742 = vmatmul.mubr.bf16.vlgmr.msra.gmra.mxu1 %v3462_v14 }
 0x751   : > { %4766 = vmatpush3.bf16.msra.mxu1 %v5407_v16 }
 0x752   : > { %4767 = vmatprep.subr.bf16.mxu1 %v5408_v31 }
 0x755   : > { %4768 = vmatpush3.bf16.msra.mxu1 %v5408_v31 }
 0x756   : > { %4769 = vmatprep.subr.bf16.mxu1 %v5409_v60 }
 0x759   : > { %4770 = vmatpush3.bf16.msra.mxu1 %v5409_v60 }
 0x75a   : > { %4771 = vmatprep.subr.bf16.mxu1 %v5410_v22 }
 0x75d   : > { %4772 = vmatpush3.bf16.msra.mxu1 %v5410_v22 }
 0x75e   : > { %4773 = vmatprep.subr.bf16.mxu1 %v5411_v3 }
 0x761   : > { %4774 = vmatpush3.bf16.msra.mxu1 %v5411_v3 }
 0x762   : > { %4775 = vmatprep.subr.bf16.mxu1 %v5412_v34 }
 0x765   : > { %4776 = vmatpush3.bf16.msra.mxu1 %v5412_v34 }
 0x766   : > { %4777 = vmatprep.subr.bf16.mxu1 %v5413_v1 }
 0x769   : > { %4778 = vmatpush3.bf16.msra.mxu1 %v5413_v1 }
 0x76a   : > { %4779 = vmatprep.subr.bf16.mxu1 %v5414_v8 }
 0x76d   : > { %4780 = vmatpush3.bf16.msra.mxu1 %v5414_v8 }
 0x810   : > { %v4743_v50 = vpop.f32.mrf.mxu1 }
 0x811   : > { %v3577_v27 = vadd.f32 %v4743_v50, %v4604_v17 }
 0x812   : > { %v3568_v52 = vpop.f32.mrf.mxu1 }
 0x813   : > { %v3569_v7 = vadd.f32 %v4604_v17, %v3568_v52  ;;  %v3585_v19 = vmax.f32 %v3577_v27, 0.0 }
 0x814   : > { %v4744_v18 = vpop.f32.mrf.mxu1 }
 0x815   : > { %v3580_v59 = vadd.f32 %v4744_v18, %v4604_v17  ;;  %v3583_v4 = vmax.f32 %v3569_v7, 0.0 }
 0x816   : > { %v3571_v28 = vpop.f32.mrf.mxu1 }
 0x817   : > { %v3572_v30 = vadd.f32 %v4604_v17, %v3571_v28  ;;  %v3586_v25 = vmax.f32 %v3580_v59, 0.0 }
 0x819   : > { %v3584_v26 = vmax.f32 %v3572_v30, 0.0  ;;  %v3588_v33 = vpack.c.bf16 %v3586_v25, %v3585_v19 }
 0x81b   : > { %v3587_v32 = vpack.c.bf16 %v3584_v26, %v3583_v4 }
 0x81d   : > { %4761 = vmatprep.mubr.bf16.mxu0 %v3587_v32 }
 0x81e   : > { %4762 = vmatmul.mubr.bf16.vlgmr.msra.gmra.mxu0 %v3588_v33 }
 0x81f   : > { %4786 = vmatpush3.bf16.msra.mxu0 %v5415_v35 }
 0x820   : > { %4787 = vmatprep.subr.bf16.mxu0 %v5416_v42 }
 0x823   : > { %4788 = vmatpush3.bf16.msra.mxu0 %v5416_v42 }
 0x824   : > { %4789 = vmatprep.subr.bf16.mxu0 %v5417_v36 }
 0x827   : > { %4790 = vmatpush3.bf16.msra.mxu0 %v5417_v36 }
 0x828   : > { %4791 = vmatprep.subr.bf16.mxu0 %v5418_v38 }
 0x82b   : > { %4792 = vmatpush3.bf16.msra.mxu0 %v5418_v38 }
 0x82c   : > { %4793 = vmatprep.subr.bf16.mxu0 %v5419_v39 }
 0x82f   : > { %4794 = vmatpush3.bf16.msra.mxu0 %v5419_v39 }
 0x830   : > { %4795 = vmatprep.subr.bf16.mxu0 %v5420_v21 }
 0x833   : > { %4796 = vmatpush3.bf16.msra.mxu0 %v5420_v21 }
 0x834   : > { %4797 = vmatprep.subr.bf16.mxu0 %v5421_v53 }
 0x837   : > { %4798 = vmatpush3.bf16.msra.mxu0 %v5421_v53 }
 0x838   : > { %4799 = vmatprep.subr.bf16.mxu0 %v5422_v6 }
 0x83b   : > { %4800 = vmatpush3.bf16.msra.mxu0 %v5422_v6 }
 0x8de   : > { %v4763_v40 = vpop.f32.mrf.mxu0 }
 0x8df   : > { %v3705_v61 = vadd.f32 %v4763_v40, %v4613_v43 }
 0x8e0   : > { %v3696_v41 = vpop.f32.mrf.mxu0 }
 0x8e1   : > { %v3697_v44 = vadd.f32 %v4613_v43, %v3696_v41  ;;  %v3713_v49 = vmax.f32 %v3705_v61, 0.0 }
 0x8e2   : > { %v4764_v23 = vpop.f32.mrf.mxu0 }
 0x8e3   : > { %v3708_v45 = vadd.f32 %v4764_v23, %v4613_v43  ;;  %v3711_v48 = vmax.f32 %v3697_v44, 0.0 }
 0x8e4   : > { %v3699_v47 = vpop.f32.mrf.mxu0 }
 0x8e5   : > { %v3700_v20 = vadd.f32 %v4613_v43, %v3699_v47  ;;  %v3714_v24 = vmax.f32 %v3708_v45, 0.0 }
 0x8e7   : > { %v3712_v12 = vmax.f32 %v3700_v20, 0.0  ;;  %v3716_v55 = vpack.c.bf16 %v3714_v24, %v3713_v49 }
 0x8e9   : > { %v3715_v51 = vpack.c.bf16 %v3712_v12, %v3711_v48 }
 0x8eb   : > { %4781 = vmatprep.mubr.bf16.mxu1 %v3715_v51 }
 0x8ec   : > { %4782 = vmatmul.mubr.bf16.vlgmr.msra.gmra.mxu1 %v3716_v55 }
 0x9ac   : > { %v4783_v54 = vpop.f32.mrf.mxu1 }
 0x9ad   : > { %v3833_v63 = vadd.f32 %v4783_v54, %v4622_v57 }
 0x9ae   : > { %v3824_v56 = vpop.f32.mrf.mxu1 }
 0x9af   : > { %v3825_v10 = vadd.f32 %v4622_v57, %v3824_v56  ;;  %v3841_v11 = vmax.f32 %v3833_v63, 0.0 }
 0x9b0   : > { %v4784_v58 = vpop.f32.mrf.mxu1 }
 0x9b1   : > { %v3836_v62 = vadd.f32 %v4784_v58, %v4622_v57  ;;  %v3839_v37 = vmax.f32 %v3825_v10, 0.0 }
 0x9b2   : > { %v3827_v0 = vpop.f32.mrf.mxu1 }
 0x9b3   : > { %v3828_v2 = vadd.f32 %v4622_v57, %v3827_v0  ;;  %v3842_v5 = vmax.f32 %v3836_v62, 0.0 }
 0x9b5   : > { %v3840_v9 = vmax.f32 %v3828_v2, 0.0  ;;  %v3844_v14 = vpack.c.bf16 %v3842_v5, %v3841_v11 }
 0x9b7   : > { %v3843_v13 = vpack.c.bf16 %v3840_v9, %v3839_v37 }
 0x9b9   : > { %4801 = vmatprep.mubr.bf16.mxu0 %v3843_v13 }
 0x9ba   : > { %4802 = vmatmul.mubr.bf16.vlgmr.msra.gmra.mxu0 %v3844_v14 }
 0xa7a   : > { %v4803_v29 = vpop.f32.mrf.mxu0 }
 0xa7b   : > { %v3959_v15 = vadd.f32 %v4803_v29, %v4631_v46 }
 0xa7c   : > { %v3950_v16 = vpop.f32.mrf.mxu0 }
 0xa7d   : > { %3967 = vst [vmem:[%s500_s2 + $0x10] sm:$0xff] %v3959_v15  ;;  %v4642_v31 = vmul.f32 -1.442695, %v3959_v15  ;;  %v3951_v60 = vadd.f32 %v4631_v46, %v3950_v16 }
 0xa7e   : > { %v4804_v22 = vpop.f32.mrf.mxu0 }
 0xa7f   : > { %5519 = vpow2.f32 %v4642_v31  ;;  %3965 = vst [vmem:[%s500_s2] sm:$0xff] %v3951_v60  ;;  %v4640_v3 = vmul.f32 -1.442695, %v3951_v60  ;;  %v3962_v50 = vadd.f32 %v4804_v22, %v4631_v46 }
 0xa80   : > { %v3953_v52 = vpop.f32.mrf.mxu0 }
 0xa81   : > { %5521 = vpow2.f32 %v4640_v3  ;;  %3968 = vst [vmem:[%s500_s2 + $0x18] sm:$0xff] %v3962_v50  ;;  %v4643_v17 = vmul.f32 -1.442695, %v3962_v50  ;;  %v3954_v18 = vadd.f32 %v4631_v46, %v3953_v52 }
 0xa83   : > { %5523 = vpow2.f32 %v4643_v17  ;;  %3966 = vst [vmem:[%s500_s2 + $0x8] sm:$0xff] %v3954_v18  ;;  %v4641_v7 = vmul.f32 -1.442695, %v3954_v18 }
 0xa84   : > { %5784 = shalt.err (!%p5781_p0)
}
 0xa85   : > { %s5785_s1 = scalar_lea.hbm %s6472_s26, 512  ;;  %s5789_s18 = scalar_lea.hbm %s6562_s10, 1024 }
 0xa86   : > { %p5786_p2 = scmp.ne.s32.totalorder %s6472_s26, %s5785_s1  ;;  %p5790_p9 = scmp.lt.s32.totalorder %s6472_s26, %s6562_s10 }
 0xa87   : > { %p5791_p10 = scmp.lt.s32.totalorder %s5789_s18, %s5785_s1 }
 0xa88   : > { %p5787_p4 = pnand %p5786_p2, %p6605_p13 }
 0xa89   : > { %p5792_p12 = por %p5791_p10, %p5790_p9 }
 0xa8a   : > { %p5788_p5 = pneg %p5787_p4 }
 0xa8c   : > { %p5793_p11 = pnand %p5792_p12, %p5788_p5 }
 0xa8e   : > { %5796 = shalt.err (!%p5793_p11)
}
 0xa8f   : > { %s5905_s25 = smov 128   ;;  %s5906_s3 = smov 8   ;;  %5525 = vpow2.f32 %v4641_v7  ;;  %v5520_v59 = vpop.eup %5519 }
 0xa90   : > { %4840 = dma.vmem_to_hbm [thread:$0]  (%p6605_p13), %s6465_s20, 512, %s6472_s26, %s4003_s29, %s5905_s25, %s5905_s25, %s5906_s3   ;;  %v3983_v27 = vadd.f32 1.0, %v5520_v59  ;;  %v5522_v28 = vpop.eup %5521 }
 0xa91   : > { %v3981_v30 = vadd.f32 1.0, %v5522_v28  ;;  %v5524_v25 = vpop.eup %5523  ;;  %s493_s22 = scalar_lea.vmem [#allocation17], %s6166_s4  ;;  %s6506_s1 = scalar_lea.hbm %s6561_s9, %s4653_s21 }
 0xa92   : > { %5527 = vrcp.f32 %v3983_v27  ;;  %v3984_v4 = vadd.f32 1.0, %v5524_v25  ;;  %s4016_s20 = sshll.u32 %s493_s22, 4  ;;  %s3998_s4 = scalar_lea.sflag [#allocation4], %s6163_s30  ;;  %s6508_s20 = int_to_ptr.vmem [resolvable:$true] %s4016_s20 }
 0xa93   : > { %5529 = vrcp.f32 %v3981_v30  ;;  %s5797_s17 = scalar_lea.vmem %s6508_s20, 512  ;;  %s5907_s2 = smov [#allocation17]  }
 0xa94   : > { %5531 = vrcp.f32 %v3984_v4  ;;  %p5798_p7 = scmp.ne.s32.totalorder %s6508_s20, %s5797_s17  ;;  %s5801_s19 = sshll.u32 %s5907_s2, 4  ;;  %s5802_s19 = int_to_ptr.vmem [resolvable:$false] %s5801_s19 }
 0xa95   : > { %s5803_s18 = scalar_lea.vmem %s5802_s19, 1024  ;;  %p5804_p3 = scmp.lt.s32.totalorder %s6508_s20, %s5802_s19 }
 0xa96   : > { %p5799_p8 = pnand %p5798_p7, %p6605_p13  ;;  %p5805_p6 = scmp.lt.s32.totalorder %s5803_s18, %s5797_s17 }
 0xa98   : > { %p5800_p1 = pneg %p5799_p8  ;;  %p5806_p0 = por %p5805_p6, %p5804_p3 }
 0xa9a   : > { %p5807_p2 = pnand %p5806_p0, %p5800_p1 }
 0xa9c   : > { %v5526_v26 = vpop.eup %5525 }
 0xa9d   : > { %v3982_v19 = vadd.f32 1.0, %v5526_v26 }
 0xa9f   : > { %5533 = vrcp.f32 %v3982_v19  ;;  %v5528_v32 = vpop.eup %5527 }
 0xaa0   : > { %3995 = vst [vmem:[%s493_s22 + $0x10] sm:$0xff] %v5528_v32  ;;  %v5530_v33 = vpop.eup %5529 }
 0xaa1   : > { %3993 = vst [vmem:[%s493_s22] sm:$0xff] %v5530_v33  ;;  %v5532_v34 = vpop.eup %5531 }
 0xaa2   : > { %3996 = vst [vmem:[%s493_s22 + $0x18] sm:$0xff] %v5532_v34 }
 0xaac   : > { %v5534_v1 = vpop.eup %5533 }
 0xaad   : > { %3994 = vst [vmem:[%s493_s22 + $0x8] sm:$0xff] %v5534_v1 }
 0xaae   : > { %5810 = shalt.err (!%p5807_p2)
}
 0xaaf   : > { %s5811_s21 = scalar_lea.hbm %s6506_s1, 512  ;;  %s5815_s11 = scalar_lea.hbm %s6561_s9, 1024 }
 0xab0   : > { %p5812_p4 = scmp.ne.s32.totalorder %s6506_s1, %s5811_s21  ;;  %p5816_p10 = scmp.lt.s32.totalorder %s6506_s1, %s6561_s9 }
 0xab1   : > { %p5817_p12 = scmp.lt.s32.totalorder %s5815_s11, %s5811_s21 }
 0xab2   : > { %p5813_p5 = pnand %p5812_p4, %p6605_p13 }
 0xab3   : > { %p5818_p11 = por %p5817_p12, %p5816_p10 }
 0xab4   : > { %p5814_p9 = pneg %p5813_p5 }
 0xab6   : > { %p5819_p7 = pnand %p5818_p11, %p5814_p9 }
 0xab8   : > { %5822 = shalt.err (!%p5819_p7)
}
 0xab9   : > { %4839 = dma.vmem_to_hbm [thread:$0]  (%p6605_p13), %s6508_s20, 512, %s6506_s1, %s3998_s4, %s5905_s25, %s5905_s25, %s5906_s3  }
 0xaba PF: > { %s4047_s29 = sand.u32 1, %s5869_s13   ;;  %p6606_p8 = scmp.ne.s32.totalorder %s6583_s24, 0 }
 0xabb   : > { %p6607_p1 = scmp.ge.s32.totalorder %s5881_s16, 2  ;;  %s4048_s17 = scalar_lea.sflag [#allocation4], %s4047_s29 }
 0xabd   : > { %p4873_p3 = pnand %p6607_p1, %p6606_p8 }
 0xabf   : > { %p4874_p6 = pneg %p4873_p3 }
 0xac1   : > { %5860 = dma.done.wait (%p4874_p6), %s4048_s17, 512  }
 0xac2   : > { %5862 = vsyncadd (%p4874_p6), %s4048_s17, 4294966784  ;;  %s4057_s2 = scalar_lea.sflag [#allocation19], %s4047_s29 }
 0xac3   : > { %5864 = dma.done.wait (%p4874_p6), %s4057_s2, 512  }
 0xac4   : > { %5866 = vsyncadd (%p4874_p6), %s4057_s2, 4294966784  ;;  %p31_p13 = scmp.ge.s32.totalorder %s6088_s23, 4   ;;  %s6608_s13 = smov %s5873_s14 }
 0xac5   : > { %s6609_s14 = smov %s5877_s15  ;;  %s6610_s15 = smov %s6099_s12 }
 0xac6   : > { %s6611_s16 = smov %s6088_s23  ;;  %33 = sbr.rel (!%p31_p13) target bundleno = 16 (0x10), region = 164 }
 0xacb   :  { %4062 = vsyncpa [#allocation3], 1 }
 0xacc   :  { %4064 = vsyncpa [#allocation3 + $0x1], 1 }
 0xacd   :  { %4065 = vsyncpa [#allocation6], 1 }
 0xace   :  { %4066 = vsyncpa [#allocation9], 1 }
 0xacf   :  { %4067 = vsyncpa [#allocation12], 1 }
 0xad0   :  { %4068 = vsyncpa [#allocation15], 1 }
 0xad1   :  { %4069 = vsyncpa [#allocation4], 1 }
 0xad2   :  { %4071 = vsyncpa [#allocation4 + $0x1], 1 }
 0xad3   :  { %4072 = vsyncpa [#allocation19], 1 }
 0xad4   :  { %4074 = vsyncpa [#allocation19 + $0x1], 1 }

</bundles_post_ra>
